<compile_context>
chip_gen: v6e
topology: v6e:2x2x1
jax: 0.10.0
libtpu: 0.0.40
codegen_flags: <defaults>
</compile_context>

<pallas_src>
import functools

import jax
import jax.numpy as jnp
from jax import lax
from jax.experimental import pallas as pl
from jax.experimental.pallas import tpu as pltpu

C_IN, C_MID, C_OUT = 64, 64, 256
BN_EPS = 1e-5
_LANE_TILE_CAP = 8192              # 256-ch f32 out block = 8 MiB; 2x(in+out) ~ 20 MiB
_VMEM_LIMIT = 32 * 1024 * 1024     # scoped VMEM limit, valid on v5e/v6e/v7x


def _vmem_capacity_bytes() -> int:
    try:
        cap = getattr(pltpu.get_tpu_info(), "vmem_capacity_bytes", None)
        if cap:
            return int(cap)
    except Exception:
        pass
    return 64 * 1024 * 1024   # conservative fallback (v7x per-TC VMEM)


def _pick_hw_tile(hw: int, cap: int):
    """Return (tile, ragged).  tile is either the full hw or a multiple of 128."""
    if hw <= cap:
        return hw, False
    if hw % 128 == 0:
        t = cap - cap % 128
        while t >= 128:
            if hw % t == 0:
                return t, False
            t -= 128
    # No friendly divisor: capped multiple-of-128 tile + cdiv grid + masking.
    return max(128, cap - cap % 128), True


# ---------------------------------------------------------------------------
# Fold math: given Sx = sum_pixels(x), Gx = sum_pixels(x x^T), derive BOTH BN
# layers' batch statistics analytically and fold the whole chain into
#   out = wf @ x + bf.
# Transpose/eye-free; usable both inside a Pallas kernel and in plain XLA.
# ---------------------------------------------------------------------------
def _fold_math(sx, gx, w1, g1, b1, w3, g3, b3, inv_p):
    sum_h = jnp.dot(w1, sx, preferred_element_type=jnp.float32)            # (64,1)
    a = jnp.dot(w1, gx, preferred_element_type=jnp.float32)                # W1 Gx (64,64)
    mean_h = sum_h * inv_p
    ex2_h = jnp.sum(a * w1, axis=1, keepdims=True) * inv_p                 # diag(W1 Gx W1^T)/P
    var_h = jnp.maximum(ex2_h - mean_h * mean_h, 0.0)
    s1 = g1 * lax.rsqrt(var_h + BN_EPS)                                    # (64,1)
    t1 = b1 - mean_h * s1
    gram_h = lax.dot_general(a, w1, (((1,), (1,)), ((), ())),              # W1 Gx W1^T
                             preferred_element_type=jnp.float32)
    c3 = jnp.dot(w3, t1, preferred_element_type=jnp.float32)               # (256,1)
    q = jnp.dot(w3, s1 * mean_h, preferred_element_type=jnp.float32)       # W3p mean_h
    bmat = jnp.dot(w3, s1 * gram_h, preferred_element_type=jnp.float32)    # W3 D1 G
    ey2 = jnp.dot(bmat * w3, s1, preferred_element_type=jnp.float32) * inv_p  # diag(W3p G W3p^T)/P
    var_y = jnp.maximum(ey2 - q * q, 0.0)
    s3 = g3 * lax.rsqrt(var_y + BN_EPS)                                    # (256,1)
    t3 = b3 - (q + c3) * s3
    wf = s3 * jnp.dot(w3, s1 * w1, preferred_element_type=jnp.float32)     # (256,64)
    bf = c3 * s3 + t3                                                      # (256,1)
    return wf, bf


# ---------------------------------------------------------------------------
# Fused fast path: whole x (and output) resident in VMEM -> single HBM read of x.
# ---------------------------------------------------------------------------
def _fused_kernel(x_ref, w1_ref, w3_ref, g1_ref, b1_ref, g3_ref, b3_ref, o_ref,
                  *, inv_p, mxu_bf16):
    n_batch = x_ref.shape[0]
    w1 = w1_ref[...]
    w3 = w3_ref[...]

    def stats_step(n, carry):
        sx, gx = carry
        xn = x_ref[n]                                                      # (64, HW)
        sx = sx + jnp.sum(xn, axis=1, keepdims=True)
        gx = gx + lax.dot_general(xn, xn, (((1,), (1,)), ((), ())),
                                  preferred_element_type=jnp.float32)
        return sx, gx

    sx, gx = lax.fori_loop(
        0, n_batch, stats_step,
        (jnp.zeros((C_IN, 1), jnp.float32), jnp.zeros((C_IN, C_IN), jnp.float32)))

    wf, bf = _fold_math(sx, gx, w1, g1_ref[...], b1_ref[...], w3,
                        g3_ref[...], b3_ref[...], inv_p)
    if mxu_bf16:
        wf = wf.astype(jnp.bfloat16)

    @pl.loop(0, n_batch)
    def _(n):
        xn = x_ref[n]
        if mxu_bf16:
            xn = xn.astype(jnp.bfloat16)
        y = jnp.dot(wf, xn, preferred_element_type=jnp.float32)            # (256, HW)
        o_ref[n] = (y + bf).astype(o_ref.dtype)


def _fused_forward(x3d, w1, g1, b1, w3, g3, b3, inv_p, mxu_bf16):
    N, _, HW = x3d.shape
    return pl.pallas_call(
        functools.partial(_fused_kernel, inv_p=inv_p, mxu_bf16=mxu_bf16),
        out_shape=jax.ShapeDtypeStruct((N, C_OUT, HW), jnp.float32),
        grid=(1,),
        in_specs=[
            pl.BlockSpec((N, C_IN, HW), lambda i: (0, 0, 0)),
            pl.BlockSpec((C_MID, C_IN), lambda i: (0, 0)),
            pl.BlockSpec((C_OUT, C_MID), lambda i: (0, 0)),
            pl.BlockSpec((C_MID, 1), lambda i: (0, 0)),
            pl.BlockSpec((C_MID, 1), lambda i: (0, 0)),
            pl.BlockSpec((C_OUT, 1), lambda i: (0, 0)),
            pl.BlockSpec((C_OUT, 1), lambda i: (0, 0)),
        ],
        out_specs=pl.BlockSpec((N, C_OUT, HW), lambda i: (0, 0, 0)),
        compiler_params=pltpu.CompilerParams(
            dimension_semantics=("arbitrary",),
            vmem_limit_bytes=_VMEM_LIMIT),
    )(x3d, w1, w3, g1, b1, g3, b3)


# ---------------------------------------------------------------------------
# Streamed path: pass 1 (raw-input stats, 2-way core split) + XLA fold + pass 2 apply.
# ---------------------------------------------------------------------------
def _stats_kernel(x_ref, sx_ref, gx_ref, *, half, total, n_hw, tile_hw, hw, ragged):
    c = pl.program_id(0)          # virtual-core axis ('parallel' -> both TCs on v7x)
    j = pl.program_id(1)

    @pl.when(j == 0)
    def _():
        sx_ref[...] = jnp.zeros_like(sx_ref)
        gx_ref[...] = jnp.zeros_like(gx_ref)

    flat = c * half + j

    @pl.when(flat < total)
    def _():
        x = x_ref[0].astype(jnp.float32)                                   # (64, tile)
        if ragged:
            hw_blk = flat % n_hw
            valid = hw - hw_blk * tile_hw                                  # lanes with real data
            lane = lax.broadcasted_iota(jnp.int32, x.shape, 1)
            x = jnp.where(lane < valid, x, 0.0)
        sx_ref[0] = sx_ref[0] + jnp.sum(x, axis=1, keepdims=True)
        gx_ref[0] = gx_ref[0] + lax.dot_general(
            x, x, (((1,), (1,)), ((), ())), preferred_element_type=jnp.float32)


def _apply_kernel(x_ref, wf_ref, bf_ref, o_ref, *, mxu_bf16):
    x = x_ref[0]                                                           # (64, tile)
    wf = wf_ref[...]
    if mxu_bf16:
        x = x.astype(jnp.bfloat16)
        wf = wf.astype(jnp.bfloat16)
    y = jnp.dot(wf, x, preferred_element_type=jnp.float32)                 # (256, tile)
    o_ref[0] = (y + bf_ref[...]).astype(o_ref.dtype)


def _streamed_forward(x3d, w1, g1, b1, w3, g3, b3, inv_p, mxu_bf16, lane_tile_cap):
    N, _, HW = x3d.shape
    tile_hw, ragged = _pick_hw_tile(HW, lane_tile_cap)
    n_hw = pl.cdiv(HW, tile_hw)
    total = N * n_hw
    half = pl.cdiv(total, 2)

    def x_stats_map(c, j):
        flat = jnp.minimum(c * half + j, total - 1)   # clamp; invalid steps are skipped
        return (flat // n_hw, 0, flat % n_hw)

    psx, pgx = pl.pallas_call(
        functools.partial(_stats_kernel, half=half, total=total, n_hw=n_hw,
                          tile_hw=tile_hw, hw=HW, ragged=ragged),
        out_shape=(jax.ShapeDtypeStruct((2, C_IN, 1), jnp.float32),
                   jax.ShapeDtypeStruct((2, C_IN, C_IN), jnp.float32)),
        grid=(2, half),
        in_specs=[pl.BlockSpec((1, C_IN, tile_hw), x_stats_map)],
        out_specs=(pl.BlockSpec((1, C_IN, 1), lambda c, j: (c, 0, 0)),
                   pl.BlockSpec((1, C_IN, C_IN), lambda c, j: (c, 0, 0))),
        compiler_params=pltpu.CompilerParams(
            dimension_semantics=("parallel", "arbitrary"),
            vmem_limit_bytes=_VMEM_LIMIT),
    )(x3d)

    # Reduce per-core partials and fold parameters in plain XLA (tiny, runs once).
    sx = jnp.sum(psx, axis=0)
    gx = jnp.sum(pgx, axis=0)
    wf, bf = _fold_math(sx, gx, w1, g1, b1, w3, g3, b3, inv_p)

    out3d = pl.pallas_call(
        functools.partial(_apply_kernel, mxu_bf16=mxu_bf16),
        out_shape=jax.ShapeDtypeStruct((N, C_OUT, HW), jnp.float32),
        grid=(N, n_hw),
        in_specs=[
            pl.BlockSpec((1, C_IN, tile_hw), lambda n, j: (n, 0, j)),
            pl.BlockSpec((C_OUT, C_MID), lambda n, j: (0, 0)),
            pl.BlockSpec((C_OUT, 1), lambda n, j: (0, 0)),
        ],
        out_specs=pl.BlockSpec((1, C_OUT, tile_hw), lambda n, j: (n, 0, j)),
        compiler_params=pltpu.CompilerParams(
            dimension_semantics=("parallel", "parallel"),
            vmem_limit_bytes=_VMEM_LIMIT),
    )(x3d, wf, bf)
    return out3d


# ---------------------------------------------------------------------------
# Public entry point.
# ---------------------------------------------------------------------------
def shallow_resnet_forward(x_nchw, params, *, fused=None, mxu_bf16=False,
                           lane_tile_cap=_LANE_TILE_CAP):
    """x_nchw: (N, 64, H, W) f32 -> (N, 256, H, W) f32.  No layout transposes."""
    w1, g1, b1, w3, g3, b3 = params
    N, C, H, W = x_nchw.shape
    assert C == C_IN
    HW = H * W
    inv_p = 1.0 / float(N * HW)
    x3d = x_nchw.reshape(N, C_IN, HW)   # pure reshape, no data movement

    if fused is None:
        # Double-buffered in+out blocks must comfortably fit in VMEM.
        need = 2 * 4 * N * HW * (C_IN + C_OUT)
        fused = need <= min(28 * 1024 * 1024, _vmem_capacity_bytes() // 2)

    if fused:
        out3d = _fused_forward(x3d, w1, g1, b1, w3, g3, b3, inv_p, mxu_bf16)
    else:
        out3d = _streamed_forward(x3d, w1, g1, b1, w3, g3, b3, inv_p,
                                  mxu_bf16, lane_tile_cap)
    return out3d.reshape(N, C_OUT, H, W)


def init_params(key):
    """Synthetic weights with the module's shapes.
    conv1.weight (64,64,1,1)  -> w1 (C_MID, C_IN)  = weight[:, :, 0, 0]
    conv3.weight (256,64,1,1) -> w3 (C_OUT, C_MID) = weight[:, :, 0, 0]
    bn gamma/beta stored as (C, 1) column vectors.
    # TODO(synk): pretrained torchvision resnet50 weights are not loadable in-script;
    # synthetic parameters with identical shapes are used instead.
    """
    k1, k2, k3, k4, k5, k6 = jax.random.split(key, 6)
    w1 = jax.random.normal(k1, (C_MID, C_IN), jnp.float32) * 0.05
    g1 = 1.0 + 0.1 * jax.random.normal(k2, (C_MID, 1), jnp.float32)
    b1 = 0.1 * jax.random.normal(k3, (C_MID, 1), jnp.float32)
    w3 = jax.random.normal(k4, (C_OUT, C_MID), jnp.float32) * 0.05
    g3 = 1.0 + 0.1 * jax.random.normal(k5, (C_OUT, 1), jnp.float32)
    b3 = 0.1 * jax.random.normal(k6, (C_OUT, 1), jnp.float32)
    return (w1, g1, b1, w3, g3, b3)


def reference_forward(x_nchw, params):
    """Pure-JAX reference mirroring the PyTorch train-mode forward (unfused)."""
    w1, g1, b1, w3, g3, b3 = params
    N, C, H, W = x_nchw.shape
    x = x_nchw.reshape(N, C_IN, H * W)
    h = jnp.einsum('oc,nck->nok', w1, x)
    m1 = h.mean(axis=(0, 2), keepdims=True)
    v1 = jnp.mean((h - m1) ** 2, axis=(0, 2), keepdims=True)
    h = (h - m1) / jnp.sqrt(v1 + BN_EPS) * g1.reshape(1, C_MID, 1) + b1.reshape(1, C_MID, 1)
    y = jnp.einsum('oc,nck->nok', w3, h)
    m3 = y.mean(axis=(0, 2), keepdims=True)
    v3 = jnp.mean((y - m3) ** 2, axis=(0, 2), keepdims=True)
    y = (y - m3) / jnp.sqrt(v3 + BN_EPS) * g3.reshape(1, C_OUT, 1) + b3.reshape(1, C_OUT, 1)
    return y.reshape(N, C_OUT, H, W)


if __name__ == "__main__":
    key = jax.random.PRNGKey(0)
    kx, kp = jax.random.split(key)
    # Small but module-consistent: input channels must be 64 for conv1.
    x = jax.random.normal(kx, (2, C_IN, 16, 16), jnp.float32)
    params = init_params(kp)
    ref = jax.block_until_ready(reference_forward(x, params))

    # 1) Fused (VMEM-resident) fast path — auto-selected for this size.
    out = jax.block_until_ready(shallow_resnet_forward(x, params))
    assert out.shape == (2, C_OUT, 16, 16)
    assert jnp.allclose(out, ref, atol=1e-3, rtol=1e-3), float(jnp.max(jnp.abs(out - ref)))

    # 2) Streamed two-pass path.
    out_s = jax.block_until_ready(shallow_resnet_forward(x, params, fused=False))
    assert jnp.allclose(out_s, ref, atol=1e-3, rtol=1e-3), float(jnp.max(jnp.abs(out_s - ref)))

    # 3) Streamed path with a ragged lane tile (cdiv grid + stats masking).
    x2 = jax.random.normal(kx, (1, C_IN, 8, 25), jnp.float32)   # HW = 200, not /128
    ref2 = jax.block_until_ready(reference_forward(x2, params))
    out2 = jax.block_until_ready(
        shallow_resnet_forward(x2, params, fused=False, lane_tile_cap=128))
    assert jnp.allclose(out2, ref2, atol=1e-3, rtol=1e-3), float(jnp.max(jnp.abs(out2 - ref2)))

    # 4) Optional bf16 MXU operands (v5e/v7x lever); accumulation stays f32.
    out_b = jax.block_until_ready(shallow_resnet_forward(x, params, fused=False, mxu_bf16=True))
    assert jnp.allclose(out_b, ref, atol=1e-1, rtol=1e-1), float(jnp.max(jnp.abs(out_b - ref)))

    print("KERNEL_OK")
</pallas_src>

<mosaic_0001>
module attributes {stable_mosaic.version = 11 : i64} {
  func.func @_fused_kernel(%arg0: i32, %arg1: memref<2x64x256xf32, #tpu.memory_space<vmem>>, %arg2: memref<64x64xf32, #tpu.memory_space<vmem>>, %arg3: memref<256x64xf32, #tpu.memory_space<vmem>>, %arg4: memref<64x1xf32, #tpu.memory_space<vmem>>, %arg5: memref<64x1xf32, #tpu.memory_space<vmem>>, %arg6: memref<256x1xf32, #tpu.memory_space<vmem>>, %arg7: memref<256x1xf32, #tpu.memory_space<vmem>>, %arg8: memref<2x256x256xf32, #tpu.memory_space<vmem>>) attributes {dimension_semantics = [#tpu.dimension_semantics<arbitrary>], iteration_bounds = array<i64: 1>, scalar_prefetch = 0 : i64, scratch_operands = 0 : i64, tpu.core_type = #tpu.core_type<tc>, window_params = [{pipeline_mode = #tpu.pipeline_mode<synchronous>, transform_indices = @transform_0, window_bounds = array<i64: 2, 64, 256>}, {pipeline_mode = #tpu.pipeline_mode<synchronous>, transform_indices = @transform_1, window_bounds = array<i64: 64, 64>}, {pipeline_mode = #tpu.pipeline_mode<synchronous>, transform_indices = @transform_2, window_bounds = array<i64: 256, 64>}, {pipeline_mode = #tpu.pipeline_mode<synchronous>, transform_indices = @transform_3, window_bounds = array<i64: 64, 1>}, {pipeline_mode = #tpu.pipeline_mode<synchronous>, transform_indices = @transform_4, window_bounds = array<i64: 64, 1>}, {pipeline_mode = #tpu.pipeline_mode<synchronous>, transform_indices = @transform_5, window_bounds = array<i64: 256, 1>}, {pipeline_mode = #tpu.pipeline_mode<synchronous>, transform_indices = @transform_6, window_bounds = array<i64: 256, 1>}, {pipeline_mode = #tpu.pipeline_mode<synchronous>, transform_indices = @transform_7, window_bounds = array<i64: 2, 256, 256>}]} {
    %c0 = arith.constant 0 : index
    %c0_0 = arith.constant 0 : index
    %0 = vector.load %arg2[%c0, %c0_0] : memref<64x64xf32, #tpu.memory_space<vmem>>, vector<64x64xf32>
    %c0_1 = arith.constant 0 : index
    %c0_2 = arith.constant 0 : index
    %1 = vector.load %arg3[%c0_1, %c0_2] : memref<256x64xf32, #tpu.memory_space<vmem>>, vector<256x64xf32>
    %cst = arith.constant 0.000000e+00 : f32
    %2 = vector.broadcast %cst : f32 to vector<64x1xf32>
    %cst_3 = arith.constant 0.000000e+00 : f32
    %3 = vector.broadcast %cst_3 : f32 to vector<64x64xf32>
    %c0_i32 = arith.constant 0 : i32
    %c2_i32 = arith.constant 2 : i32
    %4 = arith.addi %c0_i32, %c2_i32 : i32
    %c1_i32 = arith.constant 1 : i32
    %5:2 = scf.for %arg9 = %c0_i32 to %4 step %c1_i32 iter_args(%arg10 = %2, %arg11 = %3) -> (vector<64x1xf32>, vector<64x64xf32>)  : i32 {
      %59 = arith.index_cast %arg9 : i32 to index
      %c0_33 = arith.constant 0 : index
      %c0_34 = arith.constant 0 : index
      %60 = vector.load %arg1[%59, %c0_33, %c0_34] : memref<2x64x256xf32, #tpu.memory_space<vmem>>, vector<1x64x256xf32>
      %61 = vector.shape_cast %60 : vector<1x64x256xf32> to vector<64x256xf32>
      %cst_35 = arith.constant dense<0.000000e+00> : vector<64xf32>
      %62 = vector.multi_reduction <add>, %61, %cst_35 [1] : vector<64x256xf32> to vector<64xf32>
      %63 = vector.shape_cast %62 : vector<64xf32> to vector<64x1xf32>
      %64 = arith.addf %arg10, %63 : vector<64x1xf32>
      %cst_36 = arith.constant dense<0.000000e+00> : vector<64x64xf32>
      %65 = tpu.matmul %61, %61, %cst_36 {dimension_numbers = #tpu.dot_dimension_numbers<[1], [1], [0], [0], [0, 0, 1, 0], [], []>} : vector<64x256xf32>, vector<64x256xf32>, vector<64x64xf32> -> vector<64x64xf32>
      %66 = arith.addf %arg11, %65 : vector<64x64xf32>
      scf.yield %64, %66 : vector<64x1xf32>, vector<64x64xf32>
    }
    %c2_i32_4 = arith.constant 2 : i32
    %c0_5 = arith.constant 0 : index
    %c0_6 = arith.constant 0 : index
    %6 = vector.load %arg4[%c0_5, %c0_6] : memref<64x1xf32, #tpu.memory_space<vmem>>, vector<64x1xf32>
    %c0_7 = arith.constant 0 : index
    %c0_8 = arith.constant 0 : index
    %7 = vector.load %arg5[%c0_7, %c0_8] : memref<64x1xf32, #tpu.memory_space<vmem>>, vector<64x1xf32>
    %c0_9 = arith.constant 0 : index
    %c0_10 = arith.constant 0 : index
    %8 = vector.load %arg6[%c0_9, %c0_10] : memref<256x1xf32, #tpu.memory_space<vmem>>, vector<256x1xf32>
    %c0_11 = arith.constant 0 : index
    %c0_12 = arith.constant 0 : index
    %9 = vector.load %arg7[%c0_11, %c0_12] : memref<256x1xf32, #tpu.memory_space<vmem>>, vector<256x1xf32>
    %cst_13 = arith.constant dense<0.000000e+00> : vector<64x1xf32>
    %10 = tpu.matmul %0, %5#0, %cst_13 {dimension_numbers = #tpu.dot_dimension_numbers<[1], [0], [0], [1], [0, 0, 1, 1], [], []>} : vector<64x64xf32>, vector<64x1xf32>, vector<64x1xf32> -> vector<64x1xf32>
    %cst_14 = arith.constant dense<0.000000e+00> : vector<64x64xf32>
    %11 = tpu.matmul %0, %5#1, %cst_14 {dimension_numbers = #tpu.dot_dimension_numbers<[1], [0], [0], [1], [0, 0, 1, 1], [], []>} : vector<64x64xf32>, vector<64x64xf32>, vector<64x64xf32> -> vector<64x64xf32>
    %cst_15 = arith.constant 0.001953125 : f32
    %12 = vector.broadcast %cst_15 : f32 to vector<64x1xf32>
    %13 = arith.mulf %10, %12 : vector<64x1xf32>
    %14 = arith.mulf %11, %0 : vector<64x64xf32>
    %cst_16 = arith.constant dense<0.000000e+00> : vector<64xf32>
    %15 = vector.multi_reduction <add>, %14, %cst_16 [1] : vector<64x64xf32> to vector<64xf32>
    %16 = vector.shape_cast %15 : vector<64xf32> to vector<64x1xf32>
    %cst_17 = arith.constant 0.001953125 : f32
    %17 = vector.broadcast %cst_17 : f32 to vector<64x1xf32>
    %18 = arith.mulf %16, %17 : vector<64x1xf32>
    %19 = arith.mulf %13, %13 : vector<64x1xf32>
    %20 = arith.subf %18, %19 : vector<64x1xf32>
    %cst_18 = arith.constant 0.000000e+00 : f32
    %21 = vector.broadcast %cst_18 : f32 to vector<64x1xf32>
    %22 = arith.maximumf %20, %21 : vector<64x1xf32>
    %cst_19 = arith.constant 9.99999974E-6 : f32
    %23 = vector.broadcast %cst_19 : f32 to vector<64x1xf32>
    %24 = arith.addf %22, %23 : vector<64x1xf32>
    %25 = math.rsqrt %24 : vector<64x1xf32>
    %26 = arith.mulf %6, %25 : vector<64x1xf32>
    %27 = arith.mulf %13, %26 : vector<64x1xf32>
    %28 = arith.subf %7, %27 : vector<64x1xf32>
    %cst_20 = arith.constant dense<0.000000e+00> : vector<64x64xf32>
    %29 = tpu.matmul %11, %0, %cst_20 {dimension_numbers = #tpu.dot_dimension_numbers<[1], [1], [0], [0], [0, 0, 1, 0], [], []>} : vector<64x64xf32>, vector<64x64xf32>, vector<64x64xf32> -> vector<64x64xf32>
    %cst_21 = arith.constant dense<0.000000e+00> : vector<256x1xf32>
    %30 = tpu.matmul %1, %28, %cst_21 {dimension_numbers = #tpu.dot_dimension_numbers<[1], [0], [0], [1], [0, 0, 1, 1], [], []>} : vector<256x64xf32>, vector<64x1xf32>, vector<256x1xf32> -> vector<256x1xf32>
    %31 = arith.mulf %26, %13 : vector<64x1xf32>
    %cst_22 = arith.constant dense<0.000000e+00> : vector<256x1xf32>
    %32 = tpu.matmul %1, %31, %cst_22 {dimension_numbers = #tpu.dot_dimension_numbers<[1], [0], [0], [1], [0, 0, 1, 1], [], []>} : vector<256x64xf32>, vector<64x1xf32>, vector<256x1xf32> -> vector<256x1xf32>
    %33 = vector.broadcast %26 : vector<64x1xf32> to vector<64x64xf32>
    %34 = arith.mulf %33, %29 : vector<64x64xf32>
    %cst_23 = arith.constant dense<0.000000e+00> : vector<256x64xf32>
    %35 = tpu.matmul %1, %34, %cst_23 {dimension_numbers = #tpu.dot_dimension_numbers<[1], [0], [0], [1], [0, 0, 1, 1], [], []>} : vector<256x64xf32>, vector<64x64xf32>, vector<256x64xf32> -> vector<256x64xf32>
    %36 = arith.mulf %35, %1 : vector<256x64xf32>
    %cst_24 = arith.constant dense<0.000000e+00> : vector<256x1xf32>
    %37 = tpu.matmul %36, %26, %cst_24 {dimension_numbers = #tpu.dot_dimension_numbers<[1], [0], [0], [1], [0, 0, 1, 1], [], []>} : vector<256x64xf32>, vector<64x1xf32>, vector<256x1xf32> -> vector<256x1xf32>
    %cst_25 = arith.constant 0.001953125 : f32
    %38 = vector.broadcast %cst_25 : f32 to vector<256x1xf32>
    %39 = arith.mulf %37, %38 : vector<256x1xf32>
    %40 = arith.mulf %32, %32 : vector<256x1xf32>
    %41 = arith.subf %39, %40 : vector<256x1xf32>
    %cst_26 = arith.constant 0.000000e+00 : f32
    %42 = vector.broadcast %cst_26 : f32 to vector<256x1xf32>
    %43 = arith.maximumf %41, %42 : vector<256x1xf32>
    %cst_27 = arith.constant 9.99999974E-6 : f32
    %44 = vector.broadcast %cst_27 : f32 to vector<256x1xf32>
    %45 = arith.addf %43, %44 : vector<256x1xf32>
    %46 = math.rsqrt %45 : vector<256x1xf32>
    %47 = arith.mulf %8, %46 : vector<256x1xf32>
    %48 = arith.addf %32, %30 : vector<256x1xf32>
    %49 = arith.mulf %48, %47 : vector<256x1xf32>
    %50 = arith.subf %9, %49 : vector<256x1xf32>
    %51 = vector.broadcast %26 : vector<64x1xf32> to vector<64x64xf32>
    %52 = arith.mulf %51, %0 : vector<64x64xf32>
    %cst_28 = arith.constant dense<0.000000e+00> : vector<256x64xf32>
    %53 = tpu.matmul %1, %52, %cst_28 {dimension_numbers = #tpu.dot_dimension_numbers<[1], [0], [0], [1], [0, 0, 1, 1], [], []>} : vector<256x64xf32>, vector<64x64xf32>, vector<256x64xf32> -> vector<256x64xf32>
    %54 = vector.broadcast %47 : vector<256x1xf32> to vector<256x64xf32>
    %55 = arith.mulf %54, %53 : vector<256x64xf32>
    %56 = arith.mulf %30, %47 : vector<256x1xf32>
    %57 = arith.addf %56, %50 : vector<256x1xf32>
    %c0_i32_29 = arith.constant 0 : i32
    %c2_i32_30 = arith.constant 2 : i32
    %58 = arith.addi %c0_i32_29, %c2_i32_30 : i32
    %c1_i32_31 = arith.constant 1 : i32
    scf.for %arg9 = %c0_i32_29 to %58 step %c1_i32_31  : i32 {
      %c1_i32_33 = arith.constant 1 : i32
      %59 = arith.muli %arg9, %c1_i32_33 : i32
      %c0_i32_34 = arith.constant 0 : i32
      %60 = arith.addi %c0_i32_34, %59 : i32
      %61 = arith.index_cast %60 : i32 to index
      %c0_35 = arith.constant 0 : index
      %c0_36 = arith.constant 0 : index
      %62 = vector.load %arg1[%61, %c0_35, %c0_36] : memref<2x64x256xf32, #tpu.memory_space<vmem>>, vector<1x64x256xf32>
      %63 = vector.shape_cast %62 : vector<1x64x256xf32> to vector<64x256xf32>
      %cst_37 = arith.constant dense<0.000000e+00> : vector<256x256xf32>
      %64 = tpu.matmul %55, %63, %cst_37 {dimension_numbers = #tpu.dot_dimension_numbers<[1], [0], [0], [1], [0, 0, 1, 1], [], []>} : vector<256x64xf32>, vector<64x256xf32>, vector<256x256xf32> -> vector<256x256xf32>
      %65 = vector.broadcast %57 : vector<256x1xf32> to vector<256x256xf32>
      %66 = arith.addf %64, %65 : vector<256x256xf32>
      %67 = arith.index_cast %60 : i32 to index
      %c0_38 = arith.constant 0 : index
      %c0_39 = arith.constant 0 : index
      %68 = vector.load %arg8[%67, %c0_38, %c0_39] : memref<2x256x256xf32, #tpu.memory_space<vmem>>, vector<1x256x256xf32>
      %69 = vector.shape_cast %68 : vector<1x256x256xf32> to vector<256x256xf32>
      %70 = vector.shape_cast %66 : vector<256x256xf32> to vector<1x256x256xf32>
      tpu.vector_store %arg8[%67, %c0_38, %c0_39], %70 {strides = array<i32>} : memref<2x256x256xf32, #tpu.memory_space<vmem>>, vector<1x256x256xf32>,
    }
    %c2_i32_32 = arith.constant 2 : i32
    return
  }
  func.func @transform_0(%arg0: i32) -> (i32, i32, i32) {
    %c0_i32 = arith.constant 0 : i32
    %c0_i32_0 = arith.constant 0 : i32
    %c0_i32_1 = arith.constant 0 : i32
    %c0_i32_2 = arith.constant 0 : i32
    return %c0_i32, %c0_i32_0, %c0_i32_1 : i32, i32, i32
  }
  func.func @transform_1(%arg0: i32) -> (i32, i32) {
    %c0_i32 = arith.constant 0 : i32
    %c0_i32_0 = arith.constant 0 : i32
    %c0_i32_1 = arith.constant 0 : i32
    return %c0_i32, %c0_i32_0 : i32, i32
  }
  func.func @transform_2(%arg0: i32) -> (i32, i32) {
    %c0_i32 = arith.constant 0 : i32
    %c0_i32_0 = arith.constant 0 : i32
    %c0_i32_1 = arith.constant 0 : i32
    return %c0_i32, %c0_i32_0 : i32, i32
  }
  func.func @transform_3(%arg0: i32) -> (i32, i32) {
    %c0_i32 = arith.constant 0 : i32
    %c0_i32_0 = arith.constant 0 : i32
    %c0_i32_1 = arith.constant 0 : i32
    return %c0_i32, %c0_i32_0 : i32, i32
  }
  func.func @transform_4(%arg0: i32) -> (i32, i32) {
    %c0_i32 = arith.constant 0 : i32
    %c0_i32_0 = arith.constant 0 : i32
    %c0_i32_1 = arith.constant 0 : i32
    return %c0_i32, %c0_i32_0 : i32, i32
  }
  func.func @transform_5(%arg0: i32) -> (i32, i32) {
    %c0_i32 = arith.constant 0 : i32
    %c0_i32_0 = arith.constant 0 : i32
    %c0_i32_1 = arith.constant 0 : i32
    return %c0_i32, %c0_i32_0 : i32, i32
  }
  func.func @transform_6(%arg0: i32) -> (i32, i32) {
    %c0_i32 = arith.constant 0 : i32
    %c0_i32_0 = arith.constant 0 : i32
    %c0_i32_1 = arith.constant 0 : i32
    return %c0_i32, %c0_i32_0 : i32, i32
  }
  func.func @transform_7(%arg0: i32) -> (i32, i32, i32) {
    %c0_i32 = arith.constant 0 : i32
    %c0_i32_0 = arith.constant 0 : i32
    %c0_i32_1 = arith.constant 0 : i32
    %c0_i32_2 = arith.constant 0 : i32
    return %c0_i32, %c0_i32_0, %c0_i32_1 : i32, i32, i32
  }
}

</mosaic_0001>

<bundles_post_ra>
// kernel: tpu_custom_call.1
= control target key start
LH: loop header
LB: loop body
LE: loop exit
PB: predicated region body
PF: predicated region fallthrough
CT: control target
= control target key end

     0   :  { %12 = vsyncpa [#allocation3], 0  ;;  %v5038_v40 = vmov 0.0   ;;  %v5040_v41 = vmov 0.0   ;;  %v5042_v42 = vmov 0.0   ;;  %v5044_v43 = vmov 0.0   ;;  %s6800_s0 = inlined_call_operand.vmem [shape: f32[2,64,256], index: 0, kind: input, shape index: {}]   ;;  %s6801_s1 = inlined_call_operand.vmem [shape: f32[64,64], index: 1, kind: input, shape index: {}]   ;;  %s6802_s2 = inlined_call_operand.vmem [shape: f32[256,64], index: 2, kind: input, shape index: {}]   ;;  %s6803_s3 = inlined_call_operand.vmem [shape: f32[64,1], index: 3, kind: input, shape index: {}]   ;;  %s6804_s4 = inlined_call_operand.vmem [shape: f32[64,1], index: 4, kind: input, shape index: {}]   ;;  %s6805_s5 = inlined_call_operand.vmem [shape: f32[256,1], index: 5, kind: input, shape index: {}]   ;;  %s6806_s6 = inlined_call_operand.vmem [shape: f32[256,1], index: 6, kind: input, shape index: {}]   ;;  %s6807_s7 = inlined_call_operand.hbm [shape: f32[2,256,256], index: 7, kind: output, shape index: {}]  }
   0x1   :  { %v4841_v0 = vld [vmem:[%s6801_s1] sm:$0xff]  ;;  %v4846_v1 = vld [vmem:[%s6801_s1 + $0x8] sm:$0xff]  ;;  %v4851_v2 = vld [vmem:[%s6801_s1 + $0x10] sm:$0xff]  ;;  %v5046_v44 = vmov 0.0   ;;  %v5048_v45 = vmov 0.0   ;;  %v5050_v46 = vmov 0.0  }
   0x2   :  { %v4856_v3 = vld [vmem:[%s6801_s1 + $0x18] sm:$0xff]  ;;  %v4861_v4 = vld [vmem:[%s6801_s1 + $0x20] sm:$0xff]  ;;  %v4866_v5 = vld [vmem:[%s6801_s1 + $0x28] sm:$0xff]  ;;  %v5052_v47 = vmov 0.0   ;;  %v5054_v48 = vmov 0.0   ;;  %v5056_v49 = vmov 0.0  }
   0x3   :  { %v4871_v6 = vld [vmem:[%s6801_s1 + $0x30] sm:$0xff]  ;;  %v4876_v7 = vld [vmem:[%s6801_s1 + $0x38] sm:$0xff]  ;;  %v4881_v8 = vld [vmem:[%s6802_s2] sm:$0xff]  ;;  %v5058_v50 = vmov 0.0   ;;  %v5060_v51 = vmov 0.0   ;;  %v5062_v52 = vmov 0.0  }
   0x4   :  { %v4886_v9 = vld [vmem:[%s6802_s2 + $0x8] sm:$0xff]  ;;  %v4891_v10 = vld [vmem:[%s6802_s2 + $0x10] sm:$0xff]  ;;  %v4896_v11 = vld [vmem:[%s6802_s2 + $0x18] sm:$0xff]  ;;  %v5064_v53 = vmov 0.0   ;;  %v5066_v54 = vmov 0.0   ;;  %v5068_v55 = vmov 0.0  }
   0x5   :  { %v4901_v12 = vld [vmem:[%s6802_s2 + $0x20] sm:$0xff]  ;;  %v4906_v13 = vld [vmem:[%s6802_s2 + $0x28] sm:$0xff]  ;;  %v4911_v14 = vld [vmem:[%s6802_s2 + $0x30] sm:$0xff] }
   0x6   :  { %v4916_v15 = vld [vmem:[%s6802_s2 + $0x38] sm:$0xff]  ;;  %v4921_v16 = vld [vmem:[%s6802_s2 + $0x40] sm:$0xff]  ;;  %v4926_v17 = vld [vmem:[%s6802_s2 + $0x48] sm:$0xff] }
   0x7   :  { %v4931_v18 = vld [vmem:[%s6802_s2 + $0x50] sm:$0xff]  ;;  %v4936_v19 = vld [vmem:[%s6802_s2 + $0x58] sm:$0xff]  ;;  %v4941_v20 = vld [vmem:[%s6802_s2 + $0x60] sm:$0xff] }
   0x8   :  { %v4946_v21 = vld [vmem:[%s6802_s2 + $0x68] sm:$0xff]  ;;  %v4951_v22 = vld [vmem:[%s6802_s2 + $0x70] sm:$0xff]  ;;  %v4956_v23 = vld [vmem:[%s6802_s2 + $0x78] sm:$0xff] }
   0x9   :  { %v4961_v24 = vld [vmem:[%s6802_s2 + $0x80] sm:$0xff]  ;;  %v4966_v25 = vld [vmem:[%s6802_s2 + $0x88] sm:$0xff]  ;;  %v4971_v26 = vld [vmem:[%s6802_s2 + $0x90] sm:$0xff] }
   0xa   :  { %6853 = vst [vmem:[#allocation5_spill] sm:$0xff] %v4971_v26  ;;  %v4976_v27 = vld [vmem:[%s6802_s2 + $0x98] sm:$0xff]  ;;  %v4981_v28 = vld [vmem:[%s6802_s2 + $0xa0] sm:$0xff]  ;;  %v4986_v29 = vld [vmem:[%s6802_s2 + $0xa8] sm:$0xff] }
   0xb   :  { %6854 = vst [vmem:[#allocation6_spill] sm:$0xff] %v4976_v27  ;;  %6855 = vst [vmem:[#allocation7_spill] sm:$0xff] %v4981_v28  ;;  %v4991_v30 = vld [vmem:[%s6802_s2 + $0xb0] sm:$0xff]  ;;  %v4996_v31 = vld [vmem:[%s6802_s2 + $0xb8] sm:$0xff] }
   0xc   :  { %6856 = vst [vmem:[#allocation8_spill] sm:$0xff] %v4986_v29  ;;  %6857 = vst [vmem:[#allocation9_spill] sm:$0xff] %v4991_v30  ;;  %v5001_v32 = vld [vmem:[%s6802_s2 + $0xc0] sm:$0xff]  ;;  %v5006_v33 = vld [vmem:[%s6802_s2 + $0xc8] sm:$0xff] }
   0xd   :  { %6858 = vst [vmem:[#allocation10_spill] sm:$0xff] %v4996_v31  ;;  %6859 = vst [vmem:[#allocation11_spill] sm:$0xff] %v5001_v32  ;;  %v5011_v34 = vld [vmem:[%s6802_s2 + $0xd0] sm:$0xff]  ;;  %v5016_v35 = vld [vmem:[%s6802_s2 + $0xd8] sm:$0xff] }
   0xe   :  { %6860 = vst [vmem:[#allocation12_spill] sm:$0xff] %v5006_v33  ;;  %6861 = vst [vmem:[#allocation13_spill] sm:$0xff] %v5011_v34  ;;  %v5021_v36 = vld [vmem:[%s6802_s2 + $0xe0] sm:$0xff]  ;;  %v5026_v37 = vld [vmem:[%s6802_s2 + $0xe8] sm:$0xff] }
   0xf   :  { %6862 = vst [vmem:[#allocation14_spill] sm:$0xff] %v5016_v35  ;;  %6863 = vst [vmem:[#allocation15_spill] sm:$0xff] %v5021_v36  ;;  %v5031_v38 = vld [vmem:[%s6802_s2 + $0xf0] sm:$0xff]  ;;  %v5036_v39 = vld [vmem:[%s6802_s2 + $0xf8] sm:$0xff]  ;;  %s5070_s2 = smov 0  }
  0x10   :  { %6864 = vst [vmem:[#allocation16_spill] sm:$0xff] %v5026_v37  ;;  %6865 = vst [vmem:[#allocation17_spill] sm:$0xff] %v5031_v38 }
  0x11   :  { %6866 = vst [vmem:[#allocation18_spill] sm:$0xff] %v5036_v39 }
  0x12 LB: > { %s3705_s9 = sshll.u32 %s4786_s2, 7  ;;  %s72_s2 = sadd.s32 1, %s4786_s2   ;;  %s4786_s2 = sphi %s5070_s2, %s72_s2   ;;  %v4782_v55 = vphi %v5068_v55, %v6891_v55   ;;  %v4778_v54 = vphi %v5066_v54, %v6890_v54   ;;  %v4774_v53 = vphi %v5064_v53, %v6889_v53   ;;  %v4770_v52 = vphi %v5062_v52, %v6888_v52   ;;  %v4766_v51 = vphi %v5060_v51, %v6887_v51   ;;  %v4762_v50 = vphi %v5058_v50, %v6886_v50   ;;  %v4758_v49 = vphi %v5056_v49, %v6885_v49   ;;  %v4754_v48 = vphi %v5054_v48, %v6884_v48   ;;  %v4750_v47 = vphi %v5052_v47, %v6883_v47   ;;  %v4746_v46 = vphi %v5050_v46, %v6882_v46   ;;  %v4742_v45 = vphi %v5048_v45, %v6881_v45   ;;  %v4738_v44 = vphi %v5046_v44, %v6880_v44   ;;  %v4734_v43 = vphi %v5044_v43, %v6879_v43   ;;  %v4730_v42 = vphi %v5042_v42, %v6878_v42   ;;  %v4726_v41 = vphi %v5040_v41, %v6877_v41   ;;  %v4722_v40 = vphi %v5038_v40, %v6876_v40  }
  0x13   : > { %s5127_s12 = scalar_lea.vmem %s6800_s0, %s3705_s9  ;;  %p5202_p0 = scmp.ge.s32.totalorder %s72_s2, 2  }
  0x14   : > { %v5130_v56 = vld [vmem:[%s5127_s12 + $0x78] sm:$0xff]  ;;  %v5133_v57 = vld [vmem:[%s5127_s12 + $0x70] sm:$0xff]  ;;  %v5136_v58 = vld [vmem:[%s5127_s12 + $0x68] sm:$0xff]  ;;  %vm333_vm0 = vcmask (%p5202_p0), 523264  }
  0x15   : > { %156 = vmatprep.subr.mxu0 %v5130_v56  ;;  %4360 = vmatprep.subr.mxu1 %v5130_v56  ;;  %v5143_v59 = vld [vmem:[%s5127_s12 + $0x60] sm:$0xff]  ;;  %v101_v60 = vld [vmem:[%s5127_s12 + $0x48] sm:$0xff]  ;;  %v103_v63 = vld [vmem:[%s5127_s12 + $0x58] sm:$0xff] }
  0x16   : > { %157 = vmatpush1.xpose.msra.mxu0 %v5133_v57  ;;  %4368 = vmatpush1.xpose.msra.mxu1 %v5133_v57  ;;  %v97_v61 = vld [vmem:[%s5127_s12 + $0x28] sm:$0xff]  ;;  %v96_v62 = vld [vmem:[%s5127_s12 + $0x20] sm:$0xff]  ;;  %v102_v36 = vld [vmem:[%s5127_s12 + $0x50] sm:$0xff] }
  0x17   : > { %158 = vmatprep.subr.mxu0 %v5136_v58  ;;  %4361 = vmatprep.subr.mxu1 %v5136_v58  ;;  %v93_v39 = vld [vmem:[%s5127_s12 + $0x8] sm:$0xff]  ;;  %v114_v38 = vadd.f32 %v97_v61, %v96_v62  ;;  %v92_v37 = vld [vmem:[%s5127_s12] sm:$0xff]  ;;  %v99_v35 = vld [vmem:[%s5127_s12 + $0x38] sm:$0xff]  ;;  %v123_v27 = vadd.f32 %v103_v63, %v102_v36 }
  0x18   : > { %224 = vmatprep.mubr.f32.mxu1 %v101_v60  ;;  %204 = vmatprep.mubr.f32.mxu0 %v93_v39  ;;  %v108_v34 = vadd.f32 %v93_v39, %v92_v37  ;;  %v98_v33 = vld [vmem:[%s5127_s12 + $0x30] sm:$0xff]  ;;  %v95_v32 = vld [vmem:[%s5127_s12 + $0x18] sm:$0xff]  ;;  %v100_v28 = vld [vmem:[%s5127_s12 + $0x40] sm:$0xff] }
  0x19   : > { %v94_v31 = vld [vmem:[%s5127_s12 + $0x10] sm:$0xff]  ;;  %115 = vadd.xlane.f32.xlu1 %v114_v38  ;;  %v117_v30 = vadd.f32 %v99_v35, %v98_v33  ;;  %v120_v26 = vadd.f32 %v101_v60, %v100_v28  ;;  %v126_v38 = vadd.f32 %v5136_v58, %v5143_v59 }
  0x1a   : > { %159 = vmatpush1.xpose.msra.mxu0 %v5143_v59  ;;  %4369 = vmatpush1.xpose.msra.mxu1 %v5143_v59  ;;  %v111_v29 = vadd.f32 %v95_v32, %v94_v31 }
  0x1b   : > { %160 = vmatprep.subr.mxu0 %v103_v63  ;;  %4362 = vmatprep.subr.mxu1 %v103_v63 }
  0x1c   : > { %109 = vadd.xlane.f32.xlu0 %v108_v34  ;;  %v129_v34 = vadd.f32 %v5130_v56, %v5133_v57 }
  0x1d   : > { %118 = vadd.xlane.f32.xlu1 %v117_v30 }
  0x1e   : > { %161 = vmatpush1.xpose.msra.mxu0 %v102_v36  ;;  %4370 = vmatpush1.xpose.msra.mxu1 %v102_v36 }
  0x1f   : > { %162 = vmatprep.subr.mxu0 %v101_v60  ;;  %4363 = vmatprep.subr.mxu1 %v101_v60 }
  0x20   : > { %112 = vadd.xlane.f32.xlu0 %v111_v29 }
  0x21   : > { %124 = vadd.xlane.f32.xlu1 %v123_v27 }
  0x22   : > { %163 = vmatpush1.xpose.msra.mxu0 %v100_v28  ;;  %4371 = vmatpush1.xpose.msra.mxu1 %v100_v28 }
  0x23   : > { %164 = vmatprep.subr.mxu0 %v99_v35  ;;  %4364 = vmatprep.subr.mxu1 %v99_v35 }
  0x24   : > { %121 = vadd.xlane.f32.xlu0 %v120_v26 }
  0x25   : > { %130 = vadd.xlane.f32.xlu1 %v129_v34 }
  0x26   : > { %165 = vmatpush1.xpose.msra.mxu0 %v98_v33  ;;  %4372 = vmatpush1.xpose.msra.mxu1 %v98_v33 }
  0x27   : > { %166 = vmatprep.subr.mxu0 %v97_v61  ;;  %4365 = vmatprep.subr.mxu1 %v97_v61 }
  0x28   : > { %127 = vadd.xlane.f32.xlu0 %v126_v38 }
  0x2a   : > { %167 = vmatpush1.xpose.msra.mxu0 %v96_v62  ;;  %4373 = vmatpush1.xpose.msra.mxu1 %v96_v62 }
  0x2b   : > { %168 = vmatprep.subr.mxu0 %v95_v32  ;;  %4366 = vmatprep.subr.mxu1 %v95_v32 }
  0x2e   : > { %169 = vmatpush1.xpose.msra.mxu0 %v94_v31  ;;  %4374 = vmatpush1.xpose.msra.mxu1 %v94_v31 }
  0x2f   : > { %170 = vmatprep.subr.mxu0 %v93_v39  ;;  %4367 = vmatprep.subr.mxu1 %v93_v39 }
  0x32   : > { %171 = vmatpush1.xpose.msra.mxu0 %v92_v37  ;;  %4375 = vmatpush1.xpose.msra.mxu1 %v92_v37 }
  0x35   : > { %205 = vmatmul.mubr.f32.vlgmr.msra.gmra.mxu0 %v92_v37  ;;  %225 = vmatmul.mubr.f32.vlgmr.msra.gmra.mxu1 %v100_v28 }
  0x36   : > { %209 = vmatprep.mubr.f32.mxu0 %v95_v32  ;;  %229 = vmatprep.mubr.f32.mxu1 %v103_v63 }
  0x39   : > { %210 = vmatmul.mubr.f32.gmra.mxu0 %v94_v31  ;;  %230 = vmatmul.mubr.f32.gmra.mxu1 %v102_v36 }
  0x3a   : > { %214 = vmatprep.mubr.f32.mxu0 %v97_v61  ;;  %234 = vmatprep.mubr.f32.mxu1 %v5136_v58 }
  0x3d   : > { %215 = vmatmul.mubr.f32.gmra.mxu0 %v96_v62  ;;  %235 = vmatmul.mubr.f32.gmra.mxu1 %v5143_v59 }
  0x3e   : > { %219 = vmatprep.mubr.f32.mxu0 %v99_v35  ;;  %239 = vmatprep.mubr.f32.mxu1 %v5130_v56 }
  0x41   : > { %220 = vmatmul.mubr.f32.gmra.mxu0 %v98_v33  ;;  %240 = vmatmul.mubr.f32.gmra.mxu1 %v5133_v57 }
  0x42   :  { %3972 = vmatprep.mubr.msk.f32.mxu0 (%p5202_p0), %vm333_vm0, %v4841_v0  ;;  %4056 = vmatprep.mubr.msk.f32.mxu1 (%p5202_p0), %vm333_vm0, %v4881_v8 }
  0xa2   : > { %v116_v26 = vpop.xlane.xlu1 %115 }
  0xa3   : > { %v5170_v53 = vadd.f32 %v4774_v53, %v116_v26  }
  0xa5   : > { %v110_v27 = vpop.xlane.xlu0 %109  ;;  %v6867_v28 = vmov %v5170_v53 }
  0xa6   : > { %v5173_v55 = vadd.f32 %v4782_v55, %v110_v27   ;;  %v119_v30 = vpop.xlane.xlu1 %118 }
  0xa7   : > { %v5176_v52 = vadd.f32 %v4770_v52, %v119_v30  }
  0xa8   : > { %v6868_v29 = vmov %v5173_v55 }
  0xa9   : > { %v113_v31 = vpop.xlane.xlu0 %112  ;;  %v6869_v32 = vmov %v5176_v52 }
  0xaa   : > { %v5179_v54 = vadd.f32 %v4778_v54, %v113_v31   ;;  %v125_v36 = vpop.xlane.xlu1 %124 }
  0xab   : > { %v137_v37 = vadd.f32 %v4762_v50, %v125_v36  }
  0xac   : > { %v6870_v35 = vmov %v5179_v54 }
  0xad   : > { %v122_v33 = vpop.xlane.xlu0 %121 }
  0xae   : > { %v136_v39 = vadd.f32 %v4766_v51, %v122_v33   ;;  %v131_v56 = vpop.xlane.xlu1 %130 }
  0xaf   : > { %v139_v58 = vadd.f32 %v4754_v48, %v131_v56  }
  0xb1   : > { %v128_v57 = vpop.xlane.xlu0 %127  ;;  %3956 = vmatprep.subr.mxu0 (%p5202_p0), %v139_v58 }
  0xb2   : > { %v138_v59 = vadd.f32 %v4758_v49, %v128_v57   ;;  %3957 = vmatpush3.msra.mxu0 (%p5202_p0), %v139_v58 }
  0xb4   :  { %3958 = vmatprep.subr.mxu0 (%p5202_p0), %v138_v59 }
  0xb5   :  { %3959 = vmatpush3.msra.mxu0 (%p5202_p0), %v138_v59 }
  0xb6   :  { %3960 = vmatprep.subr.mxu0 (%p5202_p0), %v137_v37 }
  0xb7   :  { %3961 = vmatpush3.msra.mxu0 (%p5202_p0), %v137_v37 }
  0xb8   :  { %3962 = vmatprep.subr.mxu0 (%p5202_p0), %v136_v39 }
  0xb9   :  { %3963 = vmatpush3.msra.mxu0 (%p5202_p0), %v136_v39 }
  0xba   :  { %3964 = vmatprep.subr.mxu0 (%p5202_p0), %v6869_v32 }
  0xbb   :  { %3965 = vmatpush3.msra.mxu0 (%p5202_p0), %v6869_v32 }
  0xbc   :  { %3966 = vmatprep.subr.mxu0 (%p5202_p0), %v6867_v28 }
  0xbd   :  { %3967 = vmatpush3.msra.mxu0 (%p5202_p0), %v6867_v28 }
  0xbe   :  { %3968 = vmatprep.subr.mxu0 (%p5202_p0), %v6870_v35 }
  0xbf   :  { %3969 = vmatpush3.msra.mxu0 (%p5202_p0), %v6870_v35 }
  0xc0   :  { %3970 = vmatprep.subr.mxu0 (%p5202_p0), %v6868_v29 }
  0xc1   :  { %3971 = vmatpush3.msra.mxu0 (%p5202_p0), %v6868_v29 }
  0xc2   :  { %3973 = vmatmul.mubr.msk.f32.vlgmr.msra.gmra.mxu0 (%p5202_p0), %vm333_vm0, %v4846_v1 }
  0xc3   :  { %3975 = vmatprep.mubr.msk.f32.mxu0 (%p5202_p0), %vm333_vm0, %v4851_v2 }
  0xc6   :  { %3976 = vmatmul.mubr.msk.f32.gmra.mxu0 (%p5202_p0), %vm333_vm0, %v4856_v3 }
  0xc7   :  { %3978 = vmatprep.mubr.msk.f32.mxu0 (%p5202_p0), %vm333_vm0, %v4861_v4 }
  0xca   :  { %3979 = vmatmul.mubr.msk.f32.gmra.mxu0 (%p5202_p0), %vm333_vm0, %v4866_v5 }
  0xcb   :  { %3981 = vmatprep.mubr.msk.f32.mxu0 (%p5202_p0), %vm333_vm0, %v4871_v6 }
  0xce   :  { %3982 = vmatmul.mubr.msk.f32.gmra.mxu0 (%p5202_p0), %vm333_vm0, %v4876_v7 }
  0xcf   :  { %4000 = vmatprep.mubr.msk.f32.mxu0 (%p5202_p0), %vm333_vm0, %v4841_v0 }
  0xf5   : > { %v206_v53 = vpop.f32.mrf.mxu0  ;;  %v226_v55 = vpop.f32.mrf.mxu1 }
  0xf6   : > { %v5186_v47 = vadd.f32 %v4750_v47, %v206_v53   ;;  %v5189_v43 = vadd.f32 %v4734_v43, %v226_v55   ;;  %v6889_v53 = vmov %v6867_v28  ;;  %v6891_v55 = vmov %v6868_v29 }
  0xf7   : > { %v208_v52 = vpop.f32.mrf.mxu0  ;;  %v228_v54 = vpop.f32.mrf.mxu1 }
  0xf8   : > { %v6871_v60 = vmov %v5186_v47  ;;  %v6872_v61 = vmov %v5189_v43  ;;  %v6888_v52 = vmov %v6869_v32  ;;  %v6890_v54 = vmov %v6870_v35 }
  0xf9   : > { %v211_v62 = vpop.f32.mrf.mxu0  ;;  %v231_v50 = vpop.f32.mrf.mxu1 }
  0xfa   : > { %v5192_v46 = vadd.f32 %v4746_v46, %v211_v62   ;;  %v250_v34 = vadd.f32 %v4730_v42, %v231_v50   ;;  %v6886_v50 = vmov %v137_v37 }
  0xfb   : > { %v213_v48 = vpop.f32.mrf.mxu0  ;;  %v233_v51 = vpop.f32.mrf.mxu1 }
  0xfc   : > { %v6873_v63 = vmov %v5192_v46  ;;  %v6878_v42 = vmov %v250_v34  ;;  %v6884_v48 = vmov %v139_v58  ;;  %v6887_v51 = vmov %v136_v39 }
  0xfd   : > { %v216_v49 = vpop.f32.mrf.mxu0  ;;  %v236_v38 = vpop.f32.mrf.mxu1 }
  0xfe   : > { %v5196_v45 = vadd.f32 %v4742_v45, %v216_v49   ;;  %v251_v27 = vadd.f32 %v4726_v41, %v236_v38   ;;  %v6885_v49 = vmov %v138_v59 }
  0xff   : > { %v218_v47 = vpop.f32.mrf.mxu0  ;;  %v238_v43 = vpop.f32.mrf.mxu1 }
 0x100   : > { %v6874_v26 = vmov %v5196_v45  ;;  %v6877_v41 = vmov %v251_v27  ;;  %v6879_v43 = vmov %v6872_v61  ;;  %v6883_v47 = vmov %v6871_v60  ;;  %71 = sbr.rel (!%p5202_p0) target bundleno = 18 (0x12), region = 65 }
 0x101   : > { %v221_v30 = vpop.f32.mrf.mxu0  ;;  %v241_v31 = vpop.f32.mrf.mxu1  ;;  %v6881_v45 = vmov %v6874_v26 }
 0x102   : > { %v248_v36 = vadd.f32 %v4738_v44, %v221_v30   ;;  %v252_v33 = vadd.f32 %v4722_v40, %v241_v31   ;;  %v4792_v30 = vmov (%p5202_p0), 0  }
 0x103   : > { %v223_v46 = vpop.f32.mrf.mxu0  ;;  %v243_v56 = vpop.f32.mrf.mxu1  ;;  %4543 = vset.pattern.permute.xlu1 (%p5202_p0), %v4792_v30  ;;  %4542 = vset.pattern.permute.xlu0 (%p5202_p0), %v4792_v30 }
 0x104   : > { %v6876_v40 = vmov %v252_v33  ;;  %v6880_v44 = vmov %v248_v36  ;;  %v6882_v46 = vmov %v6873_v63  ;;  %3984 = vmatprep.subr.mxu0 (%p5202_p0), %v252_v33 }
 0x105   :  { %3985 = vmatpush3.msra.mxu0 %v252_v33 }
 0x106   :  { %3986 = vmatprep.subr.mxu0 %v251_v27 }
 0x107   :  { %3987 = vmatpush3.msra.mxu0 %v251_v27 }
 0x108   :  { %3988 = vmatprep.subr.mxu0 %v250_v34 }
 0x109   :  { %3989 = vmatpush3.msra.mxu0 %v250_v34 }
 0x10a   :  { %3990 = vmatprep.subr.mxu0 %v6872_v61 }
 0x10b   :  { %3991 = vmatpush3.msra.mxu0 %v6872_v61 }
 0x10c   :  { %3992 = vmatprep.subr.mxu0 %v248_v36 }
 0x10d   :  { %3993 = vmatpush3.msra.mxu0 %v248_v36 }
 0x10e   :  { %3994 = vmatprep.subr.mxu0 %v6874_v26 }
 0x10f   :  { %3995 = vmatpush3.msra.mxu0 %v6874_v26 }
 0x110   :  { %3996 = vmatprep.subr.mxu0 %v6873_v63 }
 0x111   :  { %3997 = vmatpush3.msra.mxu0 %v6873_v63 }
 0x112   :  { %3998 = vmatprep.subr.mxu0 %v6871_v60 }
 0x113   :  { %3999 = vmatpush3.msra.mxu0 %v6871_v60 }
 0x114   :  { %4001 = vmatmul.mubr.msk.f32.vlgmr.msra.gmra.mxu0 %vm333_vm0, %v4846_v1  ;;  %4012 = vmatprep.subr.msk.mxu0 %vm333_vm0, %v4876_v7 }
 0x115   :  { %4003 = vmatprep.mubr.msk.f32.mxu0 %vm333_vm0, %v4851_v2  ;;  %4013 = vmatpush3.xpose.msk.msra.mxu0 %vm333_vm0, %v4876_v7 }
 0x116   :  { %4014 = vmatprep.subr.msk.mxu0 %vm333_vm0, %v4871_v6 }
 0x118   :  { %4004 = vmatmul.mubr.msk.f32.gmra.mxu0 %vm333_vm0, %v4856_v3 }
 0x119   :  { %4006 = vmatprep.mubr.msk.f32.mxu0 %vm333_vm0, %v4861_v4  ;;  %4015 = vmatpush3.xpose.msk.msra.mxu0 %vm333_vm0, %v4871_v6 }
 0x11a   :  { %4016 = vmatprep.subr.msk.mxu0 %vm333_vm0, %v4866_v5 }
 0x11c   :  { %4007 = vmatmul.mubr.msk.f32.gmra.mxu0 %vm333_vm0, %v4866_v5 }
 0x11d   :  { %4009 = vmatprep.mubr.msk.f32.mxu0 %vm333_vm0, %v4871_v6  ;;  %4017 = vmatpush3.xpose.msk.msra.mxu0 %vm333_vm0, %v4866_v5 }
 0x11e   :  { %4018 = vmatprep.subr.msk.mxu0 %vm333_vm0, %v4861_v4 }
 0x120   :  { %4010 = vmatmul.mubr.msk.f32.gmra.mxu0 %vm333_vm0, %v4876_v7 }
 0x121   :  { %4019 = vmatpush3.xpose.msk.msra.mxu0 %vm333_vm0, %v4861_v4 }
 0x122   :  { %4020 = vmatprep.subr.msk.mxu0 %vm333_vm0, %v4856_v3 }
 0x125   :  { %4021 = vmatpush3.xpose.msk.msra.mxu0 %vm333_vm0, %v4856_v3 }
 0x126   :  { %4022 = vmatprep.subr.msk.mxu0 %vm333_vm0, %v4851_v2 }
 0x129   :  { %4023 = vmatpush3.xpose.msk.msra.mxu0 %vm333_vm0, %v4851_v2 }
 0x12a   :  { %4024 = vmatprep.subr.msk.mxu0 %vm333_vm0, %v4846_v1 }
 0x12d   :  { %4025 = vmatpush3.xpose.msk.msra.mxu0 %vm333_vm0, %v4846_v1 }
 0x12e   :  { %4026 = vmatprep.subr.msk.mxu0 %vm333_vm0, %v4841_v0 }
 0x131   :  { %4027 = vmatpush3.xpose.msk.msra.mxu0 %vm333_vm0, %v4841_v0 }
 0x182   :  { %v5332_v40 = vpop.f32.mrf.mxu0 }
 0x184   :  { %v5334_v41 = vpop.f32.mrf.mxu0 }
 0x186   :  { %v5336_v42 = vpop.f32.mrf.mxu0 }
 0x188   :  { %v434_v44 = vpop.f32.mrf.mxu0 }
 0x18a   :  { %v3980_v45 = vpop.f32.mrf.mxu0 }
 0x18b   :  { %v5364_v31 = vmul.f32 0.001953125, %v3980_v45 }
 0x18c   :  { %v444_v28 = vpop.f32.mrf.mxu0 }
 0x18d   :  { %v5366_v36 = vmul.f32 0.001953125, %v444_v28  ;;  %v621_v46 = vmul.f32 %v5364_v31, %v5364_v31 }
 0x18e   :  { %v3983_v29 = vpop.f32.mrf.mxu0 }
 0x18f   :  { %v5370_v56 = vmul.f32 0.001953125, %v3983_v29 }
 0x190   :  { %v454_v32 = vpop.f32.mrf.mxu0 }
 0x191   :  { %v623_v45 = vmul.f32 %v5370_v56, %v5370_v56 }
 0x1d4   :  { %v4002_v35 = vpop.f32.mrf.mxu0 }
 0x1d5   :  { %v577_v26 = vmul.f32 %v4002_v35, %v4846_v1 }
 0x1d6   :  { %v529_v37 = vpop.f32.mrf.mxu0 }
 0x1d7   :  { %4028 = vmatprep.mubr.msk.f32.mxu0 %vm333_vm0, %v529_v37  ;;  %v576_v48 = vmul.f32 %v529_v37, %v4841_v0  ;;  %v587_v43 = vsel %vm333_vm0, %v577_v26, 0.0 }
 0x1d8   :  { %v4005_v39 = vpop.f32.mrf.mxu0  ;;  %4029 = vmatmul.mubr.msk.f32.vlgmr.msra.gmra.mxu0 %vm333_vm0, %v4002_v35 }
 0x1d9   :  { %v579_v51 = vmul.f32 %v4005_v39, %v4856_v3  ;;  %v584_v27 = vsel %vm333_vm0, %v576_v48, 0.0 }
 0x1da   :  { %v539_v57 = vpop.f32.mrf.mxu0 }
 0x1db   :  { %4031 = vmatprep.mubr.msk.f32.mxu0 %vm333_vm0, %v539_v57  ;;  %v578_v62 = vmul.f32 %v539_v57, %v4851_v2  ;;  %v593_v47 = vsel %vm333_vm0, %v579_v51, 0.0  ;;  %v620_v57 = vmul.f32 %v5366_v36, %v5366_v36 }
 0x1dc   :  { %v4008_v58 = vpop.f32.mrf.mxu0  ;;  %4032 = vmatmul.mubr.msk.f32.gmra.mxu0 %vm333_vm0, %v4005_v39  ;;  %v5372_v39 = vmul.f32 0.001953125, %v434_v44  ;;  %v5384_v44 = vmul.f32 0.001953125, %v5336_v42 }
 0x1dd   :  { %v581_v59 = vmul.f32 %v4008_v58, %v4866_v5  ;;  %v590_v49 = vsel %vm333_vm0, %v578_v62, 0.0 }
 0x1de   :  { %v549_v53 = vpop.f32.mrf.mxu0  ;;  %v618_v62 = vmul.f32 %v5372_v39, %v5372_v39 }
 0x1df   :  { %v580_v55 = vmul.f32 %v549_v53, %v4861_v4  ;;  %4034 = vmatprep.mubr.msk.f32.mxu0 %vm333_vm0, %v549_v53  ;;  %v599_v60 = vsel %vm333_vm0, %v581_v59, 0.0 }
 0x1e0   :  { %600 = vadd.xlane.f32.xlu1 %v599_v60  ;;  %v4011_v61 = vpop.f32.mrf.mxu0  ;;  %4035 = vmatmul.mubr.msk.f32.gmra.mxu0 %vm333_vm0, %v4008_v58  ;;  %v5378_v60 = vmul.f32 0.001953125, %v454_v32 }
 0x1e1   :  { %v583_v52 = vmul.f32 %v4011_v61, %v4876_v7  ;;  %v596_v63 = vsel %vm333_vm0, %v580_v55, 0.0 }
 0x1e2   :  { %v559_v54 = vpop.f32.mrf.mxu0  ;;  %v622_v32 = vmul.f32 %v5378_v60, %v5378_v60 }
 0x1e3   :  { %v582_v50 = vmul.f32 %v559_v54, %v4871_v6  ;;  %4037 = vmatprep.mubr.msk.f32.mxu0 %vm333_vm0, %v559_v54  ;;  %v605_v34 = vsel %vm333_vm0, %v583_v52, 0.0  ;;  %v5381_v54 = vmul.f32 0.001953125, %v5334_v41 }
 0x1e4   :  { %597 = vadd.xlane.f32.xlu1 %v596_v63  ;;  %606 = vadd.xlane.f32.xlu0 %v605_v34 }
 0x1e5   :  { %4038 = vmatmul.mubr.msk.f32.gmra.mxu0 %vm333_vm0, %v4011_v61  ;;  %v602_v38 = vsel %vm333_vm0, %v582_v50, 0.0  ;;  %v616_v42 = vmul.f32 %v5381_v54, %v5381_v54 }
 0x1e6   :  { %4120 = vmatprep.mubr.msk.f32.mxu0 %vm333_vm0, %v4881_v8 }
 0x1e8   :  { %591 = vadd.xlane.f32.xlu1 %v590_v49  ;;  %603 = vadd.xlane.f32.xlu0 %v602_v38 }
 0x1ec   :  { %585 = vadd.xlane.f32.xlu1 %v584_v27  ;;  %594 = vadd.xlane.f32.xlu0 %v593_v47  ;;  %v5391_v27 = vmul.f32 0.001953125, %v5332_v40  ;;  %v619_v47 = vmul.f32 %v5384_v44, %v5384_v44 }
 0x1f0   :  { %588 = vadd.xlane.f32.xlu0 %v587_v43 }
 0x269   :  { %v601_v33 = vpop.xlane.xlu1 %600 }
 0x26a   :  { %v613_v35 = vmul.f32 0.001953125, %v601_v33 }
 0x26c   :  { %v629_v37 = vsub.f32 %v613_v35, %v621_v46 }
 0x26d   :  { %v598_v58 = vpop.xlane.xlu1 %597  ;;  %v607_v59 = vpop.xlane.xlu0 %606 }
 0x26e   :  { %v637_v28 = vmax.f32 %v629_v37, 0.0  ;;  %v612_v53 = vmul.f32 0.001953125, %v598_v58  ;;  %v615_v55 = vmul.f32 0.001953125, %v607_v59 }
 0x270   :  { %v645_v61 = vadd.f32 1e-05, %v637_v28  ;;  %v628_v29 = vsub.f32 %v612_v53, %v620_v57  ;;  %v631_v52 = vsub.f32 %v615_v55, %v623_v45  ;;  %v617_v28 = vmul.f32 %v5391_v27, %v5391_v27 }
 0x271   :  { %v592_v50 = vpop.xlane.xlu1 %591  ;;  %v604_v63 = vpop.xlane.xlu0 %603 }
 0x272   :  { %4544 = vrsqrt.f32 %v645_v61  ;;  %v636_v34 = vmax.f32 %v628_v29, 0.0  ;;  %v639_v48 = vmax.f32 %v631_v52, 0.0  ;;  %v610_v51 = vmul.f32 0.001953125, %v592_v50  ;;  %v258_v50 = vld [vmem:[%s6803_s3 + $0x28] sm:$0xff] }
 0x273   :  { %v614_v49 = vmul.f32 0.001953125, %v604_v63 }
 0x274   :  { %v644_v38 = vadd.f32 1e-05, %v636_v34  ;;  %v647_v26 = vadd.f32 1e-05, %v639_v48  ;;  %v626_v41 = vsub.f32 %v610_v51, %v618_v62 }
 0x275   :  { %v630_v43 = vsub.f32 %v614_v49, %v622_v32  ;;  %v586_v30 = vpop.xlane.xlu1 %585  ;;  %v595_v33 = vpop.xlane.xlu0 %594  ;;  %v257_v49 = vld [vmem:[%s6803_s3 + $0x20] sm:$0xff] }
 0x276   :  { %4546 = vrsqrt.f32 %v644_v38  ;;  %v634_v46 = vmax.f32 %v626_v41, 0.0  ;;  %v608_v35 = vmul.f32 0.001953125, %v586_v30  ;;  %v611_v37 = vmul.f32 0.001953125, %v595_v33  ;;  %v260_v38 = vld [vmem:[%s6803_s3 + $0x38] sm:$0xff]  ;;  %v259_v30 = vld [vmem:[%s6803_s3 + $0x30] sm:$0xff] }
 0x277   :  { %4548 = vrsqrt.f32 %v647_v26  ;;  %v638_v57 = vmax.f32 %v630_v43, 0.0  ;;  %v268_v43 = vld [vmem:[%s6804_s4 + $0x38] sm:$0xff] }
 0x278   :  { %v624_v58 = vsub.f32 %v608_v35, %v616_v42  ;;  %v627_v59 = vsub.f32 %v611_v37, %v619_v47  ;;  %v642_v53 = vadd.f32 1e-05, %v634_v46 }
 0x279   :  { %v646_v45 = vadd.f32 1e-05, %v638_v57  ;;  %v589_v40 = vpop.xlane.xlu0 %588  ;;  %v267_v57 = vld [vmem:[%s6804_s4 + $0x30] sm:$0xff] }
 0x27a   :  { %v635_v55 = vmax.f32 %v627_v59, 0.0  ;;  %v609_v61 = vmul.f32 0.001953125, %v589_v40  ;;  %v632_v29 = vmax.f32 %v624_v58, 0.0  ;;  %v256_v58 = vld [vmem:[%s6803_s3 + $0x18] sm:$0xff]  ;;  %v255_v40 = vld [vmem:[%s6803_s3 + $0x10] sm:$0xff] }
 0x27b   :  { %4550 = vrsqrt.f32 %v646_v45 }
 0x27c   :  { %v643_v52 = vadd.f32 1e-05, %v635_v55  ;;  %v625_v62 = vsub.f32 %v609_v61, %v617_v28  ;;  %4552 = vrsqrt.f32 %v642_v53  ;;  %v640_v48 = vadd.f32 1e-05, %v632_v29  ;;  %v266_v53 = vld [vmem:[%s6804_s4 + $0x28] sm:$0xff]  ;;  %v265_v29 = vld [vmem:[%s6804_s4 + $0x20] sm:$0xff] }
 0x27e   :  { %v633_v63 = vmax.f32 %v625_v62, 0.0  ;;  %4554 = vrsqrt.f32 %v643_v52 }
 0x27f   :  { %v4545_v34 = vpop.eup %4544 }
 0x280   :  { %v641_v51 = vadd.f32 1e-05, %v633_v63  ;;  %v5402_v32 = vmul.f32 %v4545_v34, %v258_v50 }
 0x282   :  { %4556 = vrsqrt.f32 %v641_v51  ;;  %1382 = vperm.xlu1 %4543, %v5402_v32  }
 0x283   :  { %v4547_v26 = vpop.eup %4546  ;;  %4558 = vrsqrt.f32 %v640_v48  ;;  %v253_v48 = vld [vmem:[%s6803_s3] sm:$0xff] }
 0x284   :  { %v4549_v41 = vpop.eup %4548  ;;  %v5411_v42 = vmul.f32 %v4547_v26, %v257_v49  ;;  %v264_v49 = vld [vmem:[%s6804_s4 + $0x18] sm:$0xff] }
 0x285   :  { %v5413_v47 = vmul.f32 %v4549_v41, %v260_v38 }
 0x286   :  { %1377 = vperm.xlu1 %4543, %v5411_v42  }
 0x287   :  { %1392 = vperm.xlu0 %4542, %v5413_v47   ;;  %v671_v33 = vmul.f32 %v5413_v47, %v5370_v56  ;;  %v669_v56 = vmul.f32 %v5402_v32, %v5364_v31  ;;  %v254_v31 = vld [vmem:[%s6803_s3 + $0x8] sm:$0xff] }
 0x288   :  { %v4551_v46 = vpop.eup %4550 }
 0x289   :  { %4104 = vmatprep.subr.mxu0 %v671_v33  ;;  %v679_v35 = vsub.f32 %v268_v43, %v671_v33  ;;  %v5425_v37 = vmul.f32 %v4551_v46, %v259_v30  ;;  %v4553_v59 = vpop.eup %4552  ;;  %v677_v50 = vsub.f32 %v266_v53, %v669_v56  ;;  %v6904_v53 = vld [vmem:[#allocation17_spill] sm:$0xff] }
 0x28a   :  { %4105 = vmatpush3.msra.mxu0 %v671_v33  ;;  %v5453_v52 = vmul.f32 %v4553_v59, %v255_v40  ;;  %v6899_v59 = vld [vmem:[#allocation12_spill] sm:$0xff]  ;;  %v6902_v40 = vld [vmem:[#allocation15_spill] sm:$0xff] }
 0x28b   :  { %4040 = vmatprep.subr.mxu1 %v679_v35  ;;  %v670_v45 = vmul.f32 %v5425_v37, %v5378_v60  ;;  %v4555_v28 = vpop.eup %4554  ;;  %v668_v60 = vmul.f32 %v5411_v42, %v5366_v36 }
 0x28c   :  { %4041 = vmatpush3.msra.mxu1 %v679_v35  ;;  %v5443_v61 = vmul.f32 %v4555_v28, %v256_v58  ;;  %v666_v38 = vmul.f32 %v5453_v52, %v5372_v39  ;;  %v262_v39 = vld [vmem:[%s6804_s4 + $0x8] sm:$0xff]  ;;  %v6898_v58 = vld [vmem:[#allocation11_spill] sm:$0xff]  ;;  %v6903_v28 = vld [vmem:[#allocation16_spill] sm:$0xff] }
 0x28d   :  { %4106 = vmatprep.subr.mxu0 %v670_v45  ;;  %v678_v55 = vsub.f32 %v267_v57, %v670_v45  ;;  %v676_v51 = vsub.f32 %v265_v29, %v668_v60  ;;  %v6897_v57 = vld [vmem:[#allocation10_spill] sm:$0xff] }
 0x28e   :  { %4107 = vmatpush3.msra.mxu0 %v670_v45  ;;  %1372 = vperm.xlu1 %4543, %v5443_v61   ;;  %v667_v36 = vmul.f32 %v5443_v61, %v5384_v44  ;;  %v263_v44 = vld [vmem:[%s6804_s4 + $0x10] sm:$0xff]  ;;  %v6900_v45 = vld [vmem:[#allocation13_spill] sm:$0xff] }
 0x28f   :  { %v4557_v62 = vpop.eup %4556  ;;  %4042 = vmatprep.subr.mxu1 %v678_v55  ;;  %4108 = vmatprep.subr.mxu0 %v669_v56  ;;  %v674_v30 = vsub.f32 %v263_v44, %v666_v38 }
 0x290   :  { %v4559_v63 = vpop.eup %4558  ;;  %4043 = vmatpush3.msra.mxu1 %v678_v55  ;;  %v5458_v34 = vmul.f32 %v4557_v62, %v254_v31  ;;  %4109 = vmatpush3.msra.mxu0 %v669_v56  ;;  %v675_v41 = vsub.f32 %v264_v49, %v667_v36  ;;  %v6901_v56 = vld [vmem:[#allocation14_spill] sm:$0xff] }
 0x291   :  { %4044 = vmatprep.subr.mxu1 %v677_v50  ;;  %4110 = vmatprep.subr.mxu0 %v668_v60  ;;  %v656_v26 = vmul.f32 %v4559_v63, %v253_v48  ;;  %v6905_v55 = vld [vmem:[#allocation18_spill] sm:$0xff] }
 0x292   :  { %4045 = vmatpush3.msra.mxu1 %v677_v50  ;;  %4111 = vmatpush3.msra.mxu0 %v668_v60  ;;  %v665_v43 = vmul.f32 %v5458_v34, %v5391_v27  ;;  %v261_v27 = vld [vmem:[%s6804_s4] sm:$0xff] }
 0x293   :  { %4046 = vmatprep.subr.mxu1 %v676_v51  ;;  %1387 = vperm.xlu1 %4543, %v5425_v37   ;;  %v664_v33 = vmul.f32 %v656_v26, %v5381_v54  ;;  %v6892_v54 = vld [vmem:[#allocation5_spill] sm:$0xff] }
 0x294   :  { %4112 = vmatprep.subr.mxu0 %v667_v36  ;;  %4047 = vmatpush3.msra.mxu1 %v676_v51  ;;  %v673_v46 = vsub.f32 %v262_v39, %v665_v43 }
 0x295   :  { %4113 = vmatpush3.msra.mxu0 %v667_v36  ;;  %4048 = vmatprep.subr.mxu1 %v675_v41  ;;  %v672_v35 = vsub.f32 %v261_v27, %v664_v33 }
 0x296   :  { %4114 = vmatprep.subr.mxu0 %v666_v38  ;;  %4049 = vmatpush3.msra.mxu1 %v675_v41 }
 0x297   :  { %4115 = vmatpush3.msra.mxu0 %v666_v38  ;;  %1367 = vperm.xlu1 %4543, %v5453_v52  }
 0x298   :  { %4050 = vmatprep.subr.mxu1 %v674_v30  ;;  %4116 = vmatprep.subr.mxu0 %v665_v43 }
 0x299   :  { %4051 = vmatpush3.msra.mxu1 %v674_v30  ;;  %4117 = vmatpush3.msra.mxu0 %v665_v43 }
 0x29a   :  { %4052 = vmatprep.subr.mxu1 %v673_v46  ;;  %4118 = vmatprep.subr.mxu0 %v664_v33 }
 0x29b   :  { %4053 = vmatpush3.msra.mxu1 %v673_v46  ;;  %4119 = vmatpush3.msra.mxu0 %v664_v33 }
 0x29c   :  { %1362 = vperm.xlu1 %4543, %v5458_v34   ;;  %4054 = vmatprep.subr.mxu1 %v672_v35 }
 0x29d   :  { %4232 = vmatprep.subr.mxu0 %v5413_v47  ;;  %4055 = vmatpush3.msra.mxu1 %v672_v35 }
 0x29e   :  { %4121 = vmatmul.mubr.msk.f32.vlgmr.msra.gmra.mxu0 %vm333_vm0, %v4886_v9  ;;  %4057 = vmatmul.mubr.msk.f32.vlgmr.msra.gmra.mxu1 %vm333_vm0, %v4886_v9 }
 0x29f   :  { %4233 = vmatpush3.msra.mxu0 %v5413_v47  ;;  %4059 = vmatprep.mubr.msk.f32.mxu1 %vm333_vm0, %v4891_v10  ;;  %v6895_v47 = vld [vmem:[#allocation8_spill] sm:$0xff] }
 0x2a0   :  { %4234 = vmatprep.subr.mxu0 %v5425_v37  ;;  %1357 = vperm.xlu1 %4543, %v656_v26  }
 0x2a1   :  { %4235 = vmatpush3.msra.mxu0 %v5425_v37  ;;  %4123 = vmatprep.mubr.msk.f32.mxu0 %vm333_vm0, %v4891_v10  ;;  %v6896_v37 = vld [vmem:[#allocation9_spill] sm:$0xff] }
 0x2a2   :  { %4236 = vmatprep.subr.mxu0 %v5402_v32  ;;  %4060 = vmatmul.mubr.msk.f32.gmra.mxu1 %vm333_vm0, %v4896_v11 }
 0x2a3   :  { %4237 = vmatpush3.msra.mxu0 %v5402_v32  ;;  %4062 = vmatprep.mubr.msk.f32.mxu1 %vm333_vm0, %v4901_v12  ;;  %v6893_v32 = vld [vmem:[#allocation6_spill] sm:$0xff] }
 0x2a4   :  { %4238 = vmatprep.subr.mxu0 %v5411_v42  ;;  %4124 = vmatmul.mubr.msk.f32.gmra.mxu0 %vm333_vm0, %v4896_v11 }
 0x2a5   :  { %4239 = vmatpush3.msra.mxu0 %v5411_v42  ;;  %4126 = vmatprep.mubr.msk.f32.mxu0 %vm333_vm0, %v4901_v12  ;;  %v6894_v42 = vld [vmem:[#allocation7_spill] sm:$0xff] }
 0x2a6   :  { %4240 = vmatprep.subr.mxu0 %v5443_v61  ;;  %4063 = vmatmul.mubr.msk.f32.gmra.mxu1 %vm333_vm0, %v4906_v13 }
 0x2a7   :  { %4241 = vmatpush3.msra.mxu0 %v5443_v61  ;;  %4065 = vmatprep.mubr.msk.f32.mxu1 %vm333_vm0, %v4911_v14  ;;  %v4030_v61 = vpop.f32.mrf.mxu0 }
 0x2a8   :  { %4242 = vmatprep.subr.mxu0 %v5453_v52  ;;  %4127 = vmatmul.mubr.msk.f32.gmra.mxu0 %vm333_vm0, %v4906_v13 }
 0x2a9   :  { %4243 = vmatpush3.msra.mxu0 %v5453_v52  ;;  %4129 = vmatprep.mubr.msk.f32.mxu0 %vm333_vm0, %v4911_v14  ;;  %v770_v60 = vpop.f32.mrf.mxu0 }
 0x2aa   :  { %4244 = vmatprep.subr.mxu0 %v5458_v34  ;;  %4066 = vmatmul.mubr.msk.f32.gmra.mxu1 %vm333_vm0, %v4916_v15 }
 0x2ab   :  { %4245 = vmatpush3.msra.mxu0 %v5458_v34  ;;  %4068 = vmatprep.mubr.msk.f32.mxu1 %vm333_vm0, %v4921_v16  ;;  %v4033_v31 = vpop.f32.mrf.mxu0 }
 0x2ac   :  { %4246 = vmatprep.subr.mxu0 %v656_v26  ;;  %4130 = vmatmul.mubr.msk.f32.gmra.mxu0 %vm333_vm0, %v4916_v15 }
 0x2ad   :  { %4247 = vmatpush3.msra.mxu0 %v656_v26  ;;  %4132 = vmatprep.mubr.msk.f32.mxu0 %vm333_vm0, %v4921_v16  ;;  %v780_v29 = vpop.f32.mrf.mxu0 }
 0x2ae   :  { %4069 = vmatmul.mubr.msk.f32.gmra.mxu1 %vm333_vm0, %v4926_v17 }
 0x2af   :  { %4071 = vmatprep.mubr.msk.f32.mxu1 %vm333_vm0, %v4931_v18  ;;  %v4036_v52 = vpop.f32.mrf.mxu0 }
 0x2b0   :  { %4133 = vmatmul.mubr.msk.f32.gmra.mxu0 %vm333_vm0, %v4926_v17 }
 0x2b1   :  { %4135 = vmatprep.mubr.msk.f32.mxu0 %vm333_vm0, %v4931_v18  ;;  %v790_v62 = vpop.f32.mrf.mxu0 }
 0x2b2   :  { %4072 = vmatmul.mubr.msk.f32.gmra.mxu1 %vm333_vm0, %v4936_v19 }
 0x2b3   :  { %4074 = vmatprep.mubr.msk.f32.mxu1 %vm333_vm0, %v4941_v20  ;;  %v4039_v63 = vpop.f32.mrf.mxu0 }
 0x2b4   :  { %4136 = vmatmul.mubr.msk.f32.gmra.mxu0 %vm333_vm0, %v4936_v19 }
 0x2b5   :  { %4138 = vmatprep.mubr.msk.f32.mxu0 %vm333_vm0, %v4941_v20  ;;  %v800_v49 = vpop.f32.mrf.mxu0 }
 0x2b6   :  { %4075 = vmatmul.mubr.msk.f32.gmra.mxu1 %vm333_vm0, %v4946_v21 }
 0x2b7   :  { %4077 = vmatprep.mubr.msk.f32.mxu1 %vm333_vm0, %v4951_v22 }
 0x2b8   :  { %4139 = vmatmul.mubr.msk.f32.gmra.mxu0 %vm333_vm0, %v4946_v21 }
 0x2b9   :  { %4141 = vmatprep.mubr.msk.f32.mxu0 %vm333_vm0, %v4951_v22 }
 0x2ba   :  { %4078 = vmatmul.mubr.msk.f32.gmra.mxu1 %vm333_vm0, %v4956_v23 }
 0x2bb   :  { %4080 = vmatprep.mubr.msk.f32.mxu1 %vm333_vm0, %v4961_v24 }
 0x2bc   :  { %4142 = vmatmul.mubr.msk.f32.gmra.mxu0 %vm333_vm0, %v4956_v23 }
 0x2bd   :  { %4144 = vmatprep.mubr.msk.f32.mxu0 %vm333_vm0, %v4961_v24 }
 0x2be   :  { %4081 = vmatmul.mubr.msk.f32.gmra.mxu1 %vm333_vm0, %v4966_v25 }
 0x2bf   :  { %4083 = vmatprep.mubr.msk.f32.mxu1 %vm333_vm0, %v6892_v54 }
 0x2c0   :  { %4145 = vmatmul.mubr.msk.f32.gmra.mxu0 %vm333_vm0, %v4966_v25 }
 0x2c1   :  { %4147 = vmatprep.mubr.msk.f32.mxu0 %vm333_vm0, %v6892_v54 }
 0x2c2   :  { %4084 = vmatmul.mubr.msk.f32.gmra.mxu1 %vm333_vm0, %v6893_v32 }
 0x2c3   :  { %4086 = vmatprep.mubr.msk.f32.mxu1 %vm333_vm0, %v6894_v42 }
 0x2c4   :  { %4148 = vmatmul.mubr.msk.f32.gmra.mxu0 %vm333_vm0, %v6893_v32 }
 0x2c5   :  { %4150 = vmatprep.mubr.msk.f32.mxu0 %vm333_vm0, %v6894_v42 }
 0x2c6   :  { %4087 = vmatmul.mubr.msk.f32.gmra.mxu1 %vm333_vm0, %v6895_v47 }
 0x2c7   :  { %4089 = vmatprep.mubr.msk.f32.mxu1 %vm333_vm0, %v6896_v37 }
 0x2c8   :  { %4151 = vmatmul.mubr.msk.f32.gmra.mxu0 %vm333_vm0, %v6895_v47 }
 0x2c9   :  { %4153 = vmatprep.mubr.msk.f32.mxu0 %vm333_vm0, %v6896_v37 }
 0x2ca   :  { %4090 = vmatmul.mubr.msk.f32.gmra.mxu1 %vm333_vm0, %v6897_v57 }
 0x2cb   :  { %4092 = vmatprep.mubr.msk.f32.mxu1 %vm333_vm0, %v6898_v58 }
 0x2cc   :  { %4154 = vmatmul.mubr.msk.f32.gmra.mxu0 %vm333_vm0, %v6897_v57 }
 0x2cd   :  { %4156 = vmatprep.mubr.msk.f32.mxu0 %vm333_vm0, %v6898_v58 }
 0x2ce   :  { %4093 = vmatmul.mubr.msk.f32.gmra.mxu1 %vm333_vm0, %v6899_v59 }
 0x2cf   :  { %4095 = vmatprep.mubr.msk.f32.mxu1 %vm333_vm0, %v6900_v45 }
 0x2d0   :  { %4157 = vmatmul.mubr.msk.f32.gmra.mxu0 %vm333_vm0, %v6899_v59 }
 0x2d1   :  { %4159 = vmatprep.mubr.msk.f32.mxu0 %vm333_vm0, %v6900_v45 }
 0x2d2   :  { %4096 = vmatmul.mubr.msk.f32.gmra.mxu1 %vm333_vm0, %v6901_v56 }
 0x2d3   :  { %4098 = vmatprep.mubr.msk.f32.mxu1 %vm333_vm0, %v6902_v40 }
 0x2d4   :  { %4160 = vmatmul.mubr.msk.f32.gmra.mxu0 %vm333_vm0, %v6901_v56 }
 0x2d5   :  { %4162 = vmatprep.mubr.msk.f32.mxu0 %vm333_vm0, %v6902_v40 }
 0x2d6   :  { %4099 = vmatmul.mubr.msk.f32.gmra.mxu1 %vm333_vm0, %v6903_v28 }
 0x2d7   :  { %4101 = vmatprep.mubr.msk.f32.mxu1 %vm333_vm0, %v6904_v53 }
 0x2d8   :  { %4163 = vmatmul.mubr.msk.f32.gmra.mxu0 %vm333_vm0, %v6903_v28 }
 0x2d9   :  { %4165 = vmatprep.mubr.msk.f32.mxu0 %vm333_vm0, %v6904_v53 }
 0x2da   :  { %4102 = vmatmul.mubr.msk.f32.gmra.mxu1 %vm333_vm0, %v6905_v55 }
 0x2db   :  { %4184 = vmatprep.mubr.msk.f32.mxu1 %vm333_vm0, %v4881_v8 }
 0x2dc   :  { %4166 = vmatmul.mubr.msk.f32.gmra.mxu0 %vm333_vm0, %v6905_v55 }
 0x2fd   :  { %v1383_v50 = vpop.permute.xlu1 %1382 }
 0x2fe   :  { %v1400_v26 = vmul.f32 %v4036_v52, %v1383_v50 }
 0x301   :  { %v1378_v48 = vpop.permute.xlu1 %1377 }
 0x302   :  { %v1393_v36 = vpop.permute.xlu0 %1392  ;;  %v1399_v43 = vmul.f32 %v1378_v48, %v790_v62 }
 0x303   :  { %v1402_v34 = vmul.f32 %v4039_v63, %v1393_v36  ;;  %v2308_v52 = vmul.f32 %v1393_v36, %v4876_v7 }
 0x305   :  { %4168 = vmatprep.subr.mxu1 %v1402_v34 }
 0x306   :  { %4169 = vmatpush3.msra.mxu1 %v1402_v34 }
 0x309   :  { %v1373_v51 = vpop.permute.xlu1 %1372 }
 0x30a   :  { %v1398_v39 = vmul.f32 %v4033_v31, %v1373_v51 }
 0x30e   :  { %v1388_v38 = vpop.permute.xlu1 %1387 }
 0x30f   :  { %v1401_v44 = vmul.f32 %v1388_v38, %v800_v49  ;;  %v2307_v62 = vmul.f32 %v1388_v38, %v4871_v6  ;;  %v2304_v6 = vmul.f32 %v1373_v51, %v4856_v3 }
 0x311   :  { %4170 = vmatprep.subr.mxu1 %v1401_v44 }
 0x312   :  { %v1368_v41 = vpop.permute.xlu1 %1367  ;;  %4171 = vmatpush3.msra.mxu1 %v1401_v44 }
 0x313   :  { %4172 = vmatprep.subr.mxu1 %v1400_v26  ;;  %v1397_v33 = vmul.f32 %v1368_v41, %v780_v29  ;;  %v2303_v7 = vmul.f32 %v1368_v41, %v4851_v2 }
 0x314   :  { %4173 = vmatpush3.msra.mxu1 %v1400_v26 }
 0x315   :  { %4174 = vmatprep.subr.mxu1 %v1399_v43 }
 0x316   :  { %4175 = vmatpush3.msra.mxu1 %v1399_v43 }
 0x317   :  { %v1363_v30 = vpop.permute.xlu1 %1362  ;;  %4176 = vmatprep.subr.mxu1 %v1398_v39 }
 0x318   :  { %4177 = vmatpush3.msra.mxu1 %v1398_v39  ;;  %v1396_v46 = vmul.f32 %v4030_v61, %v1363_v30  ;;  %v2306_v61 = vmul.f32 %v1383_v50, %v4866_v5 }
 0x319   :  { %4178 = vmatprep.subr.mxu1 %v1397_v33 }
 0x31a   :  { %4179 = vmatpush3.msra.mxu1 %v1397_v33 }
 0x31b   :  { %v1358_v27 = vpop.permute.xlu1 %1357  ;;  %4180 = vmatprep.subr.mxu1 %v1396_v46 }
 0x31c   :  { %v1395_v35 = vmul.f32 %v1358_v27, %v770_v60  ;;  %4181 = vmatpush3.msra.mxu1 %v1396_v46  ;;  %v2305_v60 = vmul.f32 %v1378_v48, %v4861_v4  ;;  %v2302_v4 = vmul.f32 %v1363_v30, %v4846_v1  ;;  %v2301_v5 = vmul.f32 %v1358_v27, %v4841_v0 }
 0x31e   :  { %4182 = vmatprep.subr.mxu1 %v1395_v35 }
 0x31f   :  { %4183 = vmatpush3.msra.mxu1 %v1395_v35 }
 0x320   :  { %4185 = vmatmul.mubr.msk.f32.vlgmr.msra.gmra.mxu1 %vm333_vm0, %v4886_v9  ;;  %4296 = vmatprep.subr.mxu1 %v2308_v52 }
 0x321   :  { %4297 = vmatpush3.msra.mxu1 %v2308_v52  ;;  %4187 = vmatprep.mubr.msk.f32.mxu1 %vm333_vm0, %v4891_v10 }
 0x322   :  { %4298 = vmatprep.subr.mxu1 %v2307_v62 }
 0x323   :  { %4299 = vmatpush3.msra.mxu1 %v2307_v62 }
 0x324   :  { %4188 = vmatmul.mubr.msk.f32.gmra.mxu1 %vm333_vm0, %v4896_v11  ;;  %4300 = vmatprep.subr.mxu1 %v2306_v61 }
 0x325   :  { %4301 = vmatpush3.msra.mxu1 %v2306_v61  ;;  %4190 = vmatprep.mubr.msk.f32.mxu1 %vm333_vm0, %v4901_v12 }
 0x326   :  { %4302 = vmatprep.subr.mxu1 %v2305_v60 }
 0x327   :  { %4303 = vmatpush3.msra.mxu1 %v2305_v60 }
 0x328   :  { %4191 = vmatmul.mubr.msk.f32.gmra.mxu1 %vm333_vm0, %v4906_v13  ;;  %4304 = vmatprep.subr.mxu1 %v2304_v6 }
 0x329   :  { %4305 = vmatpush3.msra.mxu1 %v2304_v6  ;;  %4193 = vmatprep.mubr.msk.f32.mxu1 %vm333_vm0, %v4911_v14 }
 0x32a   :  { %4306 = vmatprep.subr.mxu1 %v2303_v7 }
 0x32b   :  { %4307 = vmatpush3.msra.mxu1 %v2303_v7 }
 0x32c   :  { %4194 = vmatmul.mubr.msk.f32.gmra.mxu1 %vm333_vm0, %v4916_v15  ;;  %4308 = vmatprep.subr.mxu1 %v2302_v4 }
 0x32d   :  { %4309 = vmatpush3.msra.mxu1 %v2302_v4  ;;  %4196 = vmatprep.mubr.msk.f32.mxu1 %vm333_vm0, %v4921_v16 }
 0x32e   :  { %4310 = vmatprep.subr.mxu1 %v2301_v5 }
 0x32f   :  { %4311 = vmatpush3.msra.mxu1 %v2301_v5 }
 0x330   :  { %4197 = vmatmul.mubr.msk.f32.gmra.mxu1 %vm333_vm0, %v4926_v17 }
 0x331   :  { %4199 = vmatprep.mubr.msk.f32.mxu1 %vm333_vm0, %v4931_v18 }
 0x334   :  { %4200 = vmatmul.mubr.msk.f32.gmra.mxu1 %vm333_vm0, %v4936_v19 }
 0x335   :  { %4202 = vmatprep.mubr.msk.f32.mxu1 %vm333_vm0, %v4941_v20 }
 0x338   :  { %4203 = vmatmul.mubr.msk.f32.gmra.mxu1 %vm333_vm0, %v4946_v21 }
 0x339   :  { %4205 = vmatprep.mubr.msk.f32.mxu1 %vm333_vm0, %v4951_v22 }
 0x33c   :  { %4206 = vmatmul.mubr.msk.f32.gmra.mxu1 %vm333_vm0, %v4956_v23 }
 0x33d   :  { %4208 = vmatprep.mubr.msk.f32.mxu1 %vm333_vm0, %v4961_v24 }
 0x340   :  { %4209 = vmatmul.mubr.msk.f32.gmra.mxu1 %vm333_vm0, %v4966_v25 }
 0x341   :  { %4211 = vmatprep.mubr.msk.f32.mxu1 %vm333_vm0, %v6892_v54 }
 0x344   :  { %4212 = vmatmul.mubr.msk.f32.gmra.mxu1 %vm333_vm0, %v6893_v32 }
 0x345   :  { %4214 = vmatprep.mubr.msk.f32.mxu1 %vm333_vm0, %v6894_v42 }
 0x348   :  { %4215 = vmatmul.mubr.msk.f32.gmra.mxu1 %vm333_vm0, %v6895_v47 }
 0x349   :  { %4217 = vmatprep.mubr.msk.f32.mxu1 %vm333_vm0, %v6896_v37 }
 0x34c   :  { %4218 = vmatmul.mubr.msk.f32.gmra.mxu1 %vm333_vm0, %v6897_v57 }
 0x34d   :  { %4220 = vmatprep.mubr.msk.f32.mxu1 %vm333_vm0, %v6898_v58 }
 0x350   :  { %4221 = vmatmul.mubr.msk.f32.gmra.mxu1 %vm333_vm0, %v6899_v59 }
 0x351   :  { %4223 = vmatprep.mubr.msk.f32.mxu1 %vm333_vm0, %v6900_v45 }
 0x354   :  { %4224 = vmatmul.mubr.msk.f32.gmra.mxu1 %vm333_vm0, %v6901_v56 }
 0x355   :  { %4226 = vmatprep.mubr.msk.f32.mxu1 %vm333_vm0, %v6902_v40 }
 0x358   :  { %4227 = vmatmul.mubr.msk.f32.gmra.mxu1 %vm333_vm0, %v6903_v28 }
 0x359   :  { %4229 = vmatprep.mubr.msk.f32.mxu1 %vm333_vm0, %v6904_v53 }
 0x35c   :  { %4230 = vmatmul.mubr.msk.f32.gmra.mxu1 %vm333_vm0, %v6905_v55 }
 0x35d   :  { %4312 = vmatprep.mubr.msk.f32.mxu1 %vm333_vm0, %v4881_v8 }
 0x35e   :  { %v5699_v0 = vpop.f32.mrf.mxu1 }
 0x360   :  { %4313 = vmatmul.mubr.msk.f32.vlgmr.msra.gmra.mxu1 %vm333_vm0, %v4886_v9  ;;  %v5705_v1 = vpop.f32.mrf.mxu1 }
 0x361   :  { %4315 = vmatprep.mubr.msk.f32.mxu1 %vm333_vm0, %v4891_v10 }
 0x362   :  { %v5711_v2 = vpop.f32.mrf.mxu1 }
 0x363   :  { %6906 = vst [vmem:[#allocation5_spill] sm:$0xff] %v5711_v2 }
 0x364   :  { %4316 = vmatmul.mubr.msk.f32.gmra.mxu1 %vm333_vm0, %v4896_v11  ;;  %v5717_v3 = vpop.f32.mrf.mxu1 }
 0x365   :  { %4318 = vmatprep.mubr.msk.f32.mxu1 %vm333_vm0, %v4901_v12  ;;  %6907 = vst [vmem:[#allocation6_spill] sm:$0xff] %v5717_v3 }
 0x366   :  { %v5723_v31 = vpop.f32.mrf.mxu1 }
 0x367   :  { %6908 = vst [vmem:[#allocation7_spill] sm:$0xff] %v5723_v31 }
 0x368   :  { %4319 = vmatmul.mubr.msk.f32.gmra.mxu1 %vm333_vm0, %v4906_v13  ;;  %v5729_v29 = vpop.f32.mrf.mxu1 }
 0x369   :  { %4321 = vmatprep.mubr.msk.f32.mxu1 %vm333_vm0, %v4911_v14  ;;  %6909 = vst [vmem:[#allocation8_spill] sm:$0xff] %v5729_v29 }
 0x36a   :  { %v5735_v50 = vpop.f32.mrf.mxu1 }
 0x36b   :  { %6910 = vst [vmem:[#allocation9_spill] sm:$0xff] %v5735_v50 }
 0x36c   :  { %4322 = vmatmul.mubr.msk.f32.gmra.mxu1 %vm333_vm0, %v4916_v15  ;;  %v5741_v63 = vpop.f32.mrf.mxu1 }
 0x36d   :  { %4324 = vmatprep.mubr.msk.f32.mxu1 %vm333_vm0, %v4921_v16  ;;  %6911 = vst [vmem:[#allocation10_spill] sm:$0xff] %v5741_v63 }
 0x36e   :  { %v5747_v36 = vpop.f32.mrf.mxu1 }
 0x36f   :  { %6912 = vst [vmem:[#allocation11_spill] sm:$0xff] %v5747_v36 }
 0x370   :  { %4325 = vmatmul.mubr.msk.f32.gmra.mxu1 %vm333_vm0, %v4926_v17  ;;  %v5753_v34 = vpop.f32.mrf.mxu1 }
 0x371   :  { %4327 = vmatprep.mubr.msk.f32.mxu1 %vm333_vm0, %v4931_v18  ;;  %6913 = vst [vmem:[#allocation12_spill] sm:$0xff] %v5753_v34 }
 0x372   :  { %v5759_v48 = vpop.f32.mrf.mxu1 }
 0x373   :  { %6914 = vst [vmem:[#allocation13_spill] sm:$0xff] %v5759_v48 }
 0x374   :  { %4328 = vmatmul.mubr.msk.f32.gmra.mxu1 %vm333_vm0, %v4936_v19  ;;  %v5765_v51 = vpop.f32.mrf.mxu1 }
 0x375   :  { %4330 = vmatprep.mubr.msk.f32.mxu1 %vm333_vm0, %v4941_v20  ;;  %6915 = vst [vmem:[#allocation14_spill] sm:$0xff] %v5765_v51 }
 0x376   :  { %v5771_v49 = vpop.f32.mrf.mxu1 }
 0x378   :  { %4331 = vmatmul.mubr.msk.f32.gmra.mxu1 %vm333_vm0, %v4946_v21  ;;  %v5777_v38 = vpop.f32.mrf.mxu1 }
 0x379   :  { %4333 = vmatprep.mubr.msk.f32.mxu1 %vm333_vm0, %v4951_v22 }
 0x37a   :  { %v5783_v44 = vpop.f32.mrf.mxu1 }
 0x37c   :  { %4334 = vmatmul.mubr.msk.f32.gmra.mxu1 %vm333_vm0, %v4956_v23  ;;  %v5787_v26 = vpop.f32.mrf.mxu1 }
 0x37d   :  { %4336 = vmatprep.mubr.msk.f32.mxu1 %vm333_vm0, %v4961_v24 }
 0x37e   :  { %v5789_v41 = vpop.f32.mrf.mxu1 }
 0x380   :  { %4337 = vmatmul.mubr.msk.f32.gmra.mxu1 %vm333_vm0, %v4966_v25  ;;  %v5791_v43 = vpop.f32.mrf.mxu1 }
 0x381   :  { %4339 = vmatprep.mubr.msk.f32.mxu1 %vm333_vm0, %v6892_v54 }
 0x382   :  { %v5793_v39 = vpop.f32.mrf.mxu1 }
 0x383   :  { %6916 = vst [vmem:[#allocation15_spill] sm:$0xff] %v5793_v39 }
 0x384   :  { %4340 = vmatmul.mubr.msk.f32.gmra.mxu1 %vm333_vm0, %v6893_v32  ;;  %v5795_v30 = vpop.f32.mrf.mxu1 }
 0x385   :  { %4342 = vmatprep.mubr.msk.f32.mxu1 %vm333_vm0, %v6894_v42  ;;  %6917 = vst [vmem:[#allocation16_spill] sm:$0xff] %v5795_v30 }
 0x386   :  { %v5797_v33 = vpop.f32.mrf.mxu1 }
 0x387   :  { %6918 = vst [vmem:[#allocation17_spill] sm:$0xff] %v5797_v33 }
 0x388   :  { %4343 = vmatmul.mubr.msk.f32.gmra.mxu1 %vm333_vm0, %v6895_v47  ;;  %v5799_v46 = vpop.f32.mrf.mxu1 }
 0x389   :  { %4345 = vmatprep.mubr.msk.f32.mxu1 %vm333_vm0, %v6896_v37  ;;  %6919 = vst [vmem:[#allocation18_spill] sm:$0xff] %v5799_v46 }
 0x38a   :  { %v5801_v27 = vpop.f32.mrf.mxu1 }
 0x38b   :  { %6920 = vst [vmem:[#allocation19_spill] sm:$0xff] %v5801_v27 }
 0x38c   :  { %4346 = vmatmul.mubr.msk.f32.gmra.mxu1 %vm333_vm0, %v6897_v57  ;;  %v5803_v35 = vpop.f32.mrf.mxu1 }
 0x38d   :  { %4348 = vmatprep.mubr.msk.f32.mxu1 %vm333_vm0, %v6898_v58  ;;  %6921 = vst [vmem:[#allocation20_spill] sm:$0xff] %v5803_v35 }
 0x38e   :  { %v5805_v52 = vpop.f32.mrf.mxu1 }
 0x38f   :  { %6922 = vst [vmem:[#allocation21_spill] sm:$0xff] %v5805_v52 }
 0x390   :  { %4349 = vmatmul.mubr.msk.f32.gmra.mxu1 %vm333_vm0, %v6899_v59  ;;  %v5807_v62 = vpop.f32.mrf.mxu1 }
 0x391   :  { %4351 = vmatprep.mubr.msk.f32.mxu1 %vm333_vm0, %v6900_v45  ;;  %6923 = vst [vmem:[#allocation22_spill] sm:$0xff] %v5807_v62 }
 0x392   :  { %v5809_v61 = vpop.f32.mrf.mxu1 }
 0x393   :  { %6924 = vst [vmem:[#allocation23_spill] sm:$0xff] %v5809_v61 }
 0x394   :  { %4352 = vmatmul.mubr.msk.f32.gmra.mxu1 %vm333_vm0, %v6901_v56  ;;  %v5811_v60 = vpop.f32.mrf.mxu1 }
 0x395   :  { %4354 = vmatprep.mubr.msk.f32.mxu1 %vm333_vm0, %v6902_v40  ;;  %6925 = vst [vmem:[#allocation24_spill] sm:$0xff] %v5811_v60 }
 0x396   :  { %v5813_v6 = vpop.f32.mrf.mxu1 }
 0x397   :  { %6926 = vst [vmem:[#allocation25_spill] sm:$0xff] %v5813_v6 }
 0x398   :  { %4355 = vmatmul.mubr.msk.f32.gmra.mxu1 %vm333_vm0, %v6903_v28  ;;  %v5815_v7 = vpop.f32.mrf.mxu1 }
 0x399   :  { %4357 = vmatprep.mubr.msk.f32.mxu1 %vm333_vm0, %v6904_v53  ;;  %6927 = vst [vmem:[#allocation26_spill] sm:$0xff] %v5815_v7 }
 0x39a   :  { %v5817_v4 = vpop.f32.mrf.mxu1 }
 0x39b   :  { %6928 = vst [vmem:[#allocation27_spill] sm:$0xff] %v5817_v4 }
 0x39c   :  { %4358 = vmatmul.mubr.msk.f32.gmra.mxu1 %vm333_vm0, %v6905_v55  ;;  %v5819_v5 = vpop.f32.mrf.mxu1 }
 0x39d   :  { %6929 = vst [vmem:[#allocation28_spill] sm:$0xff] %v5819_v5 }
 0x3e0   :  { %v4186_v46 = vpop.f32.mrf.mxu1 }
 0x3e1   :  { %v1629_v52 = vmul.f32 %v4186_v46, %v4886_v9 }
 0x3e2   :  { %v1469_v27 = vpop.f32.mrf.mxu1 }
 0x3e3   :  { %v1628_v35 = vmul.f32 %v1469_v27, %v4881_v8 }
 0x3e4   :  { %v4189_v33 = vpop.f32.mrf.mxu1 }
 0x3e5   :  { %4248 = vmatprep.mubr.msk.f32.mxu0 %vm333_vm0, %v1628_v35  ;;  %v1631_v7 = vmul.f32 %v4189_v33, %v4896_v11 }
 0x3e6   :  { %v1479_v61 = vpop.f32.mrf.mxu1  ;;  %4249 = vmatmul.mubr.msk.f32.vlgmr.msra.gmra.mxu0 %vm333_vm0, %v1629_v52 }
 0x3e7   :  { %v1630_v6 = vmul.f32 %v1479_v61, %v4891_v10 }
 0x3e8   :  { %v4192_v60 = vpop.f32.mrf.mxu1 }
 0x3e9   :  { %4251 = vmatprep.mubr.msk.f32.mxu0 %vm333_vm0, %v1630_v6  ;;  %v1633_v9 = vmul.f32 %v4192_v60, %v4906_v13 }
 0x3ea   :  { %v1489_v5 = vpop.f32.mrf.mxu1  ;;  %4252 = vmatmul.mubr.msk.f32.gmra.mxu0 %vm333_vm0, %v1631_v7 }
 0x3eb   :  { %v1632_v8 = vmul.f32 %v1489_v5, %v4901_v12 }
 0x3ec   :  { %v4195_v46 = vpop.f32.mrf.mxu1 }
 0x3ed   :  { %4254 = vmatprep.mubr.msk.f32.mxu0 %vm333_vm0, %v1632_v8  ;;  %v1635_v11 = vmul.f32 %v4195_v46, %v4916_v15 }
 0x3ee   :  { %v1499_v27 = vpop.f32.mrf.mxu1  ;;  %4255 = vmatmul.mubr.msk.f32.gmra.mxu0 %vm333_vm0, %v1633_v9 }
 0x3ef   :  { %v1634_v10 = vmul.f32 %v1499_v27, %v4911_v14 }
 0x3f0   :  { %v4198_v33 = vpop.f32.mrf.mxu1 }
 0x3f1   :  { %4257 = vmatprep.mubr.msk.f32.mxu0 %vm333_vm0, %v1634_v10  ;;  %v1637_v13 = vmul.f32 %v4198_v33, %v4926_v17 }
 0x3f2   :  { %v1509_v35 = vpop.f32.mrf.mxu1  ;;  %4258 = vmatmul.mubr.msk.f32.gmra.mxu0 %vm333_vm0, %v1635_v11 }
 0x3f3   :  { %v1636_v12 = vmul.f32 %v1509_v35, %v4921_v16 }
 0x3f4   :  { %v4201_v52 = vpop.f32.mrf.mxu1 }
 0x3f5   :  { %4260 = vmatprep.mubr.msk.f32.mxu0 %vm333_vm0, %v1636_v12  ;;  %v1639_v15 = vmul.f32 %v4201_v52, %v4936_v19 }
 0x3f6   :  { %v1519_v61 = vpop.f32.mrf.mxu1  ;;  %4261 = vmatmul.mubr.msk.f32.gmra.mxu0 %vm333_vm0, %v1637_v13 }
 0x3f7   :  { %v1638_v14 = vmul.f32 %v1519_v61, %v4931_v18 }
 0x3f8   :  { %v4204_v60 = vpop.f32.mrf.mxu1 }
 0x3f9   :  { %4263 = vmatprep.mubr.msk.f32.mxu0 %vm333_vm0, %v1638_v14  ;;  %v1641_v17 = vmul.f32 %v4204_v60, %v4946_v21 }
 0x3fa   :  { %v1529_v6 = vpop.f32.mrf.mxu1  ;;  %4264 = vmatmul.mubr.msk.f32.gmra.mxu0 %vm333_vm0, %v1639_v15 }
 0x3fb   :  { %v1640_v16 = vmul.f32 %v1529_v6, %v4941_v20 }
 0x3fc   :  { %v4207_v7 = vpop.f32.mrf.mxu1 }
 0x3fd   :  { %4266 = vmatprep.mubr.msk.f32.mxu0 %vm333_vm0, %v1640_v16  ;;  %v1643_v19 = vmul.f32 %v4207_v7, %v4956_v23  ;;  %v4122_v16 = vpop.f32.mrf.mxu0 }
 0x3fe   :  { %v1539_v5 = vpop.f32.mrf.mxu1  ;;  %4267 = vmatmul.mubr.msk.f32.gmra.mxu0 %vm333_vm0, %v1641_v17 }
 0x3ff   :  { %v1642_v18 = vmul.f32 %v1539_v5, %v4951_v22  ;;  %v1196_v17 = vpop.f32.mrf.mxu0 }
 0x400   :  { %v4210_v8 = vpop.f32.mrf.mxu1 }
 0x401   :  { %4269 = vmatprep.mubr.msk.f32.mxu0 %vm333_vm0, %v1642_v18  ;;  %v1645_v21 = vmul.f32 %v4210_v8, %v4966_v25  ;;  %v4125_v7 = vpop.f32.mrf.mxu0 }
 0x402   :  { %v1549_v9 = vpop.f32.mrf.mxu1  ;;  %4270 = vmatmul.mubr.msk.f32.gmra.mxu0 %vm333_vm0, %v1643_v19 }
 0x403   :  { %v1644_v20 = vmul.f32 %v1549_v9, %v4961_v24 }
 0x404   :  { %v4213_v46 = vpop.f32.mrf.mxu1 }
 0x405   :  { %4272 = vmatprep.mubr.msk.f32.mxu0 %vm333_vm0, %v1644_v20  ;;  %v1647_v23 = vmul.f32 %v4213_v46, %v6893_v32 }
 0x406   :  { %v1559_v27 = vpop.f32.mrf.mxu1  ;;  %4273 = vmatmul.mubr.msk.f32.gmra.mxu0 %vm333_vm0, %v1645_v21 }
 0x407   :  { %v1646_v22 = vmul.f32 %v1559_v27, %v6892_v54 }
 0x408   :  { %v4216_v10 = vpop.f32.mrf.mxu1 }
 0x409   :  { %4275 = vmatprep.mubr.msk.f32.mxu0 %vm333_vm0, %v1646_v22  ;;  %v1649_v25 = vmul.f32 %v4216_v10, %v6895_v47 }
 0x40a   :  { %v1569_v11 = vpop.f32.mrf.mxu1  ;;  %4276 = vmatmul.mubr.msk.f32.gmra.mxu0 %vm333_vm0, %v1647_v23 }
 0x40b   :  { %v1648_v24 = vmul.f32 %v1569_v11, %v6894_v42 }
 0x40c   :  { %v4219_v33 = vpop.f32.mrf.mxu1 }
 0x40d   :  { %4278 = vmatprep.mubr.msk.f32.mxu0 %vm333_vm0, %v1648_v24  ;;  %v1651_v32 = vmul.f32 %v4219_v33, %v6897_v57 }
 0x40e   :  { %v1579_v35 = vpop.f32.mrf.mxu1  ;;  %4279 = vmatmul.mubr.msk.f32.gmra.mxu0 %vm333_vm0, %v1649_v25 }
 0x40f   :  { %v1650_v54 = vmul.f32 %v1579_v35, %v6896_v37 }
 0x410   :  { %v4222_v12 = vpop.f32.mrf.mxu1 }
 0x411   :  { %4281 = vmatprep.mubr.msk.f32.mxu0 %vm333_vm0, %v1650_v54  ;;  %v1653_v47 = vmul.f32 %v4222_v12, %v6899_v59 }
 0x412   :  { %v1589_v13 = vpop.f32.mrf.mxu1  ;;  %4282 = vmatmul.mubr.msk.f32.gmra.mxu0 %vm333_vm0, %v1651_v32 }
 0x413   :  { %v1652_v42 = vmul.f32 %v1589_v13, %v6898_v58 }
 0x414   :  { %v4225_v52 = vpop.f32.mrf.mxu1 }
 0x415   :  { %4284 = vmatprep.mubr.msk.f32.mxu0 %vm333_vm0, %v1652_v42  ;;  %v1655_v57 = vmul.f32 %v4225_v52, %v6901_v56 }
 0x416   :  { %v1599_v61 = vpop.f32.mrf.mxu1  ;;  %4285 = vmatmul.mubr.msk.f32.gmra.mxu0 %vm333_vm0, %v1653_v47 }
 0x417   :  { %v1654_v37 = vmul.f32 %v1599_v61, %v6900_v45  ;;  %v2014_v61 = vmul.f32 %v4122_v16, %v4122_v16 }
 0x418   :  { %v4228_v14 = vpop.f32.mrf.mxu1 }
 0x419   :  { %4287 = vmatprep.mubr.msk.f32.mxu0 %vm333_vm0, %v1654_v37  ;;  %v1657_v59 = vmul.f32 %v4228_v14, %v6903_v28  ;;  %v5916_v37 = vadd.f32 %v4122_v16, %v5699_v0  ;;  %v5919_v14 = vadd.f32 %v1196_v17, %v5705_v1 }
 0x41a   :  { %v1609_v15 = vpop.f32.mrf.mxu1  ;;  %4288 = vmatmul.mubr.msk.f32.gmra.mxu0 %vm333_vm0, %v1655_v57  ;;  %v2013_v57 = vmul.f32 %v1196_v17, %v1196_v17 }
 0x41b   :  { %v1656_v58 = vmul.f32 %v1609_v15, %v6902_v40  ;;  %v1206_v40 = vpop.f32.mrf.mxu0 }
 0x41c   :  { %v4231_v60 = vpop.f32.mrf.mxu1 }
 0x41d   :  { %4290 = vmatprep.mubr.msk.f32.mxu0 %vm333_vm0, %v1656_v58  ;;  %v1659_v56 = vmul.f32 %v4231_v60, %v6905_v55  ;;  %v4128_v5 = vpop.f32.mrf.mxu0  ;;  %v2016_v58 = vmul.f32 %v4125_v7, %v4125_v7  ;;  %v2015_v60 = vmul.f32 %v1206_v40, %v1206_v40 }
 0x41e   :  { %v1619_v6 = vpop.f32.mrf.mxu1  ;;  %4291 = vmatmul.mubr.msk.f32.gmra.mxu0 %vm333_vm0, %v1657_v59  ;;  %v5924_v59 = vadd.f32 %v4125_v7, %v5711_v2 }
 0x41f   :  { %v1658_v45 = vmul.f32 %v1619_v6, %v6904_v53  ;;  %v1216_v28 = vpop.f32.mrf.mxu0  ;;  %v5927_v6 = vadd.f32 %v1206_v40, %v5717_v3 }
 0x420   :  { %v5934_v16 = vmul.f32 %v1216_v28, %v1216_v28  ;;  %v5937_v17 = vadd.f32 %v1216_v28, %v5729_v29 }
 0x421   :  { %4293 = vmatprep.mubr.msk.f32.mxu0 %vm333_vm0, %v1658_v45  ;;  %v4131_v18 = vpop.f32.mrf.mxu0  ;;  %6937 = vst [vmem:[#allocation36_spill] sm:$0xff] %v5927_v6  ;;  %v5929_v45 = vmul.f32 %v4128_v5, %v4128_v5 }
 0x422   :  { %4294 = vmatmul.mubr.msk.f32.gmra.mxu0 %vm333_vm0, %v1659_v56  ;;  %v5932_v56 = vadd.f32 %v4128_v5, %v5723_v31  ;;  %6938 = vst [vmem:[#allocation37_spill] sm:$0xff] %v5937_v17  ;;  %v5939_v62 = vmul.f32 %v4131_v18, %v4131_v18  ;;  %v5942_v7 = vadd.f32 %v4131_v18, %v5735_v50 }
 0x423   :  { %v1226_v19 = vpop.f32.mrf.mxu0 }
 0x424   :  { %v5944_v2 = vmul.f32 %v1226_v19, %v1226_v19  ;;  %v5947_v3 = vadd.f32 %v1226_v19, %v5741_v63 }
 0x425   :  { %v4134_v8 = vpop.f32.mrf.mxu0 }
 0x426   :  { %6939 = vst [vmem:[#allocation38_spill] sm:$0xff] %v5947_v3  ;;  %v5949_v6 = vmul.f32 %v4134_v8, %v4134_v8  ;;  %v5952_v5 = vadd.f32 %v4134_v8, %v5747_v36 }
 0x427   :  { %v1236_v9 = vpop.f32.mrf.mxu0 }
 0x428   :  { %6940 = vst [vmem:[#allocation39_spill] sm:$0xff] %v5952_v5  ;;  %v5954_v31 = vmul.f32 %v1236_v9, %v1236_v9  ;;  %v5957_v29 = vadd.f32 %v1236_v9, %v5753_v34 }
 0x429   :  { %v4137_v20 = vpop.f32.mrf.mxu0 }
 0x42a   :  { %6941 = vst [vmem:[#allocation40_spill] sm:$0xff] %v5957_v29  ;;  %v5959_v17 = vmul.f32 %v4137_v20, %v4137_v20 }
 0x42b   :  { %v1246_v21 = vpop.f32.mrf.mxu0 }
 0x42c   :  { %v5964_v19 = vmul.f32 %v1246_v21, %v1246_v21  ;;  %v5967_v63 = vadd.f32 %v1246_v21, %v5765_v51 }
 0x42d   :  { %v4140_v46 = vpop.f32.mrf.mxu0 }
 0x42e   :  { %6942 = vst [vmem:[#allocation41_spill] sm:$0xff] %v5967_v63  ;;  %v5969_v8 = vmul.f32 %v4140_v46, %v4140_v46  ;;  %v5972_v5 = vadd.f32 %v4140_v46, %v5771_v49 }
 0x42f   :  { %v1256_v53 = vpop.f32.mrf.mxu0 }
 0x430   :  { %v5974_v3 = vmul.f32 %v1256_v53, %v1256_v53 }
 0x431   :  { %v4143_v27 = vpop.f32.mrf.mxu0 }
 0x433   :  { %v1266_v55 = vpop.f32.mrf.mxu0 }
 0x434   :  { %v5984_v46 = vmul.f32 %v1266_v55, %v1266_v55 }
 0x435   :  { %v5885_v22 = vpop.f32.mrf.mxu0 }
 0x437   :  { %v5887_v23 = vpop.f32.mrf.mxu0 }
 0x439   :  { %v5889_v10 = vpop.f32.mrf.mxu0 }
 0x43b   :  { %v5891_v11 = vpop.f32.mrf.mxu0 }
 0x43d   :  { %v5893_v24 = vpop.f32.mrf.mxu0 }
 0x43f   :  { %v5895_v25 = vpop.f32.mrf.mxu0 }
 0x441   :  { %v5897_v33 = vpop.f32.mrf.mxu0 }
 0x443   :  { %v5899_v35 = vpop.f32.mrf.mxu0 }
 0x445   :  { %v5901_v54 = vpop.f32.mrf.mxu0 }
 0x447   :  { %v5903_v32 = vpop.f32.mrf.mxu0 }
 0x448   :  { %6930 = vst [vmem:[#allocation29_spill] sm:$0xff] %v5903_v32 }
 0x449   :  { %v5905_v12 = vpop.f32.mrf.mxu0 }
 0x44a   :  { %6931 = vst [vmem:[#allocation30_spill] sm:$0xff] %v5905_v12 }
 0x44b   :  { %v5907_v13 = vpop.f32.mrf.mxu0 }
 0x44c   :  { %6932 = vst [vmem:[#allocation31_spill] sm:$0xff] %v5907_v13 }
 0x44d   :  { %v5909_v42 = vpop.f32.mrf.mxu0 }
 0x44e   :  { %6933 = vst [vmem:[#allocation32_spill] sm:$0xff] %v5909_v42 }
 0x44f   :  { %v5911_v47 = vpop.f32.mrf.mxu0 }
 0x450   :  { %6934 = vst [vmem:[#allocation33_spill] sm:$0xff] %v5911_v47 }
 0x451   :  { %v5913_v52 = vpop.f32.mrf.mxu0 }
 0x452   :  { %6935 = vst [vmem:[#allocation34_spill] sm:$0xff] %v5913_v52 }
 0x453   :  { %v5921_v15 = vpop.f32.mrf.mxu0 }
 0x454   :  { %6936 = vst [vmem:[#allocation35_spill] sm:$0xff] %v5921_v15 }
 0x4a6   :  { %v4250_v4 = vpop.f32.mrf.mxu0 }
 0x4a7   :  { %v1982_v40 = vmul.f32 0.001953125, %v4250_v4  ;;  %v5962_v4 = vadd.f32 %v4137_v20, %v5759_v48  ;;  %v5979_v20 = vmul.f32 %v4143_v27, %v4143_v27 }
 0x4a8   :  { %v1822_v28 = vpop.f32.mrf.mxu0 }
 0x4a9   :  { %v2046_v18 = vsub.f32 %v1982_v40, %v2014_v61  ;;  %v1981_v50 = vmul.f32 0.001953125, %v1822_v28  ;;  %v5977_v61 = vadd.f32 %v1256_v53, %v5777_v38  ;;  %v5982_v40 = vadd.f32 %v4143_v27, %v5783_v44 }
 0x4aa   :  { %v4253_v36 = vpop.f32.mrf.mxu0  ;;  %v5995_v53 = vadd.f32 %v5885_v22, %v5789_v41 }
 0x4ab   :  { %v2078_v9 = vmax.f32 %v2046_v18, 0.0  ;;  %v2045_v34 = vsub.f32 %v1981_v50, %v2013_v57  ;;  %v1984_v29 = vmul.f32 0.001953125, %v4253_v36  ;;  %v5987_v50 = vadd.f32 %v1266_v55, %v5787_v26 }
 0x4ac   :  { %v1832_v21 = vpop.f32.mrf.mxu0  ;;  %v5991_v36 = vmul.f32 %v5885_v22, %v5885_v22  ;;  %v6003_v55 = vadd.f32 %v5887_v23, %v5791_v43 }
 0x4ad   :  { %v2110_v28 = vadd.f32 1e-05, %v2078_v9  ;;  %v2077_v51 = vmax.f32 %v2045_v34, 0.0  ;;  %v2048_v63 = vsub.f32 %v1984_v29, %v2016_v58  ;;  %v1983_v48 = vmul.f32 0.001953125, %v1832_v21 }
 0x4ae   :  { %v4256_v27 = vpop.f32.mrf.mxu0  ;;  %v5999_v29 = vmul.f32 %v5887_v23, %v5887_v23  ;;  %v6007_v58 = vmul.f32 %v5889_v10, %v5889_v10  ;;  %v6019_v23 = vadd.f32 %v5891_v11, %v5795_v30 }
 0x4af   :  { %4560 = vrsqrt.f32 %v2110_v28  ;;  %v2109_v57 = vadd.f32 1e-05, %v2077_v51  ;;  %v2080_v18 = vmax.f32 %v2048_v63, 0.0  ;;  %v2047_v34 = vsub.f32 %v1983_v48, %v2015_v60 }
 0x4b0   :  { %v1986_v9 = vmul.f32 0.001953125, %v4256_v27  ;;  %v1842_v22 = vpop.f32.mrf.mxu0  ;;  %v6011_v63 = vadd.f32 %v5889_v10, %v5793_v39  ;;  %v6015_v48 = vmul.f32 %v5891_v11, %v5891_v11  ;;  %6944 = vst [vmem:[#allocation43_spill] sm:$0xff] %v6019_v23 }
 0x4b1   :  { %4562 = vrsqrt.f32 %v2109_v57  ;;  %v2112_v21 = vadd.f32 1e-05, %v2080_v18  ;;  %v2079_v28 = vmax.f32 %v2047_v34, 0.0  ;;  %v1985_v51 = vmul.f32 0.001953125, %v1842_v22  ;;  %v6945_v22 = vld [vmem:[#allocation17_spill] sm:$0xff] }
 0x4b2   :  { %6943 = vst [vmem:[#allocation42_spill] sm:$0xff] %v6011_v63  ;;  %v2050_v60 = vsub.f32 %v1986_v9, %v5929_v45  ;;  %v4259_v27 = vpop.f32.mrf.mxu0  ;;  %v6024_v57 = vmul.f32 %v5893_v24, %v5893_v24  ;;  %v6029_v39 = vadd.f32 %v5893_v24, %v6945_v22  ;;  %v6033_v63 = vmul.f32 %v5895_v25, %v5895_v25  ;;  %v6946_v9 = vld [vmem:[#allocation18_spill] sm:$0xff]  ;;  %v6947_v24 = vld [vmem:[#allocation19_spill] sm:$0xff] }
 0x4b3   :  { %v2111_v18 = vadd.f32 1e-05, %v2079_v28  ;;  %v2049_v34 = vsub.f32 %v1985_v51, %v5934_v16  ;;  %v1988_v10 = vmul.f32 0.001953125, %v4259_v27  ;;  %4564 = vrsqrt.f32 %v2112_v21 }
 0x4b4   :  { %v2082_v11 = vmax.f32 %v2050_v60, 0.0  ;;  %v1852_v45 = vpop.f32.mrf.mxu0  ;;  %v6037_v30 = vadd.f32 %v5895_v25, %v6946_v9  ;;  %v6042_v51 = vmul.f32 %v5897_v33, %v5897_v33  ;;  %v6046_v27 = vadd.f32 %v5897_v33, %v6947_v24 }
 0x4b5   :  { %v2081_v23 = vmax.f32 %v2049_v34, 0.0  ;;  %v2052_v28 = vsub.f32 %v1988_v10, %v5939_v62  ;;  %v1987_v16 = vmul.f32 0.001953125, %v1852_v45  ;;  %v6050_v21 = vmul.f32 %v5899_v35, %v5899_v35  ;;  %v6949_v10 = vld [vmem:[#allocation20_spill] sm:$0xff] }
 0x4b6   :  { %6948 = vst [vmem:[#allocation44_spill] sm:$0xff] %v6046_v27  ;;  %v2114_v60 = vadd.f32 1e-05, %v2082_v11  ;;  %v4262_v22 = vpop.f32.mrf.mxu0  ;;  %4566 = vrsqrt.f32 %v2111_v18  ;;  %v6055_v45 = vadd.f32 %v5899_v35, %v6949_v10  ;;  %v6059_v9 = vmul.f32 %v5901_v54, %v5901_v54  ;;  %v6951_v27 = vld [vmem:[#allocation21_spill] sm:$0xff] }
 0x4b7   :  { %v2084_v25 = vmax.f32 %v2052_v28, 0.0  ;;  %v2051_v34 = vsub.f32 %v1987_v16, %v5944_v2  ;;  %v1990_v62 = vmul.f32 0.001953125, %v4262_v22  ;;  %v2113_v33 = vadd.f32 1e-05, %v2081_v23 }
 0x4b8   :  { %6950 = vst [vmem:[#allocation45_spill] sm:$0xff] %v6055_v45  ;;  %4568 = vrsqrt.f32 %v2114_v60  ;;  %v1862_v24 = vpop.f32.mrf.mxu0  ;;  %v6063_v11 = vadd.f32 %v5901_v54, %v6951_v27  ;;  %v6068_v22 = vmul.f32 %v5903_v32, %v5903_v32  ;;  %v6072_v35 = vmul.f32 %v5905_v12, %v5905_v12 }
 0x4b9   :  { %v2116_v18 = vadd.f32 1e-05, %v2084_v25  ;;  %v2083_v28 = vmax.f32 %v2051_v34, 0.0  ;;  %v2054_v2 = vsub.f32 %v1990_v62, %v5949_v6  ;;  %v6076_v23 = vmul.f32 %v5907_v13, %v5907_v13  ;;  %v270_v62 = vld [vmem:[%s6805_s5 + $0x8] sm:$0xff] }
 0x4ba   :  { %6952 = vst [vmem:[#allocation46_spill] sm:$0xff] %v6063_v11  ;;  %v1989_v16 = vmul.f32 0.001953125, %v1862_v24  ;;  %v4265_v60 = vpop.f32.mrf.mxu0  ;;  %v6080_v54 = vmul.f32 %v5909_v42, %v5909_v42  ;;  %v6087_v12 = vmul.f32 %v5911_v47, %v5911_v47  ;;  %v6091_v24 = vmul.f32 %v5913_v52, %v5913_v52  ;;  %v269_v11 = vld [vmem:[%s6805_s5] sm:$0xff] }
 0x4bb   :  { %v2115_v25 = vadd.f32 1e-05, %v2083_v28  ;;  %v2086_v6 = vmax.f32 %v2054_v2, 0.0  ;;  %v1992_v34 = vmul.f32 0.001953125, %v4265_v60  ;;  %4570 = vrsqrt.f32 %v2113_v33 }
 0x4bc   :  { %v4561_v27 = vpop.eup %4560  ;;  %v2053_v42 = vsub.f32 %v1989_v16, %v5954_v31  ;;  %v1872_v13 = vpop.f32.mrf.mxu0  ;;  %4572 = vrsqrt.f32 %v2116_v18  ;;  %v6100_v47 = vmul.f32 %v5921_v15, %v5921_v15 }
 0x4bd   :  { %v2118_v28 = vadd.f32 1e-05, %v2086_v6  ;;  %v2056_v2 = vsub.f32 %v1992_v34, %v5959_v17  ;;  %v1991_v60 = vmul.f32 0.001953125, %v1872_v13  ;;  %4574 = vrsqrt.f32 %v2115_v25  ;;  %v302_v13 = vld [vmem:[%s6806_s6 + $0x8] sm:$0xff] }
 0x4be   :  { %v4563_v10 = vpop.eup %4562  ;;  %v2085_v52 = vmax.f32 %v2053_v42, 0.0  ;;  %v4268_v33 = vpop.f32.mrf.mxu0  ;;  %v2174_v45 = vmul.f32 %v4561_v27, %v270_v62 }
 0x4bf   :  { %4576 = vrsqrt.f32 %v2118_v28  ;;  %v2088_v31 = vmax.f32 %v2056_v2, 0.0  ;;  %v2055_v18 = vsub.f32 %v1991_v60, %v5964_v19  ;;  %v1994_v16 = vmul.f32 0.001953125, %v4268_v33  ;;  %v301_v19 = vld [vmem:[%s6806_s6] sm:$0xff] }
 0x4c0   :  { %v2117_v17 = vadd.f32 1e-05, %v2085_v52  ;;  %2541 = vperm.xlu0 %4542, %v2174_v45   ;;  %v2238_v6 = vmul.f32 %v5916_v37, %v2174_v45  ;;  %v2727_v34 = vmul.f32 %v5699_v0, %v2174_v45  ;;  %v1882_v15 = vpop.f32.mrf.mxu0  ;;  %v2173_v25 = vmul.f32 %v4563_v10, %v269_v11  ;;  %v4565_v42 = vpop.eup %4564  ;;  %v272_v52 = vld [vmem:[%s6805_s5 + $0x18] sm:$0xff] }
 0x4c1   :  { %v2120_v32 = vadd.f32 1e-05, %v2088_v31  ;;  %v2087_v27 = vmax.f32 %v2055_v18, 0.0  ;;  %v2058_v62 = vsub.f32 %v1994_v16, %v5969_v8  ;;  %v1993_v28 = vmul.f32 0.001953125, %v1882_v15 }
 0x4c2   :  { %4578 = vrsqrt.f32 %v2117_v17  ;;  %v2270_v37 = vsub.f32 %v302_v13, %v2238_v6  ;;  %2536 = vperm.xlu1 %4543, %v2173_v25   ;;  %v2237_v0 = vmul.f32 %v5919_v14, %v2173_v25  ;;  %v2726_v10 = vmul.f32 %v2173_v25, %v5705_v1  ;;  %v4271_v45 = vpop.f32.mrf.mxu0  ;;  %v271_v13 = vld [vmem:[%s6805_s5 + $0x10] sm:$0xff]  ;;  %v274_v6 = vld [vmem:[%s6805_s5 + $0x28] sm:$0xff] }
 0x4c3   :  { %4580 = vrsqrt.f32 %v2120_v32  ;;  %v2119_v11 = vadd.f32 1e-05, %v2087_v27  ;;  %v2090_v8 = vmax.f32 %v2058_v62, 0.0  ;;  %v2057_v15 = vsub.f32 %v1993_v28, %v5974_v3  ;;  %v4567_v2 = vpop.eup %4566  ;;  %v304_v32 = vld [vmem:[%s6806_s6 + $0x18] sm:$0xff]  ;;  %v6953_v27 = vld [vmem:[#allocation5_spill] sm:$0xff] }
 0x4c4   :  { %v6118_v60 = vadd.f32 %v2727_v34, %v2270_v37  ;;  %v2269_v33 = vsub.f32 %v301_v19, %v2237_v0  ;;  %v1996_v31 = vmul.f32 0.001953125, %v4271_v45  ;;  %v2176_v18 = vmul.f32 %v4565_v42, %v272_v52  ;;  %v1892_v16 = vpop.f32.mrf.mxu0 }
 0x4c5   :  { %v4569_v14 = vpop.eup %4568  ;;  %4582 = vrsqrt.f32 %v2119_v11  ;;  %v2122_v1 = vadd.f32 1e-05, %v2090_v8  ;;  %v2089_v17 = vmax.f32 %v2057_v15, 0.0  ;;  %v1995_v3 = vmul.f32 0.001953125, %v1892_v16 }
 0x4c6   :  { %v6129_v34 = vadd.f32 %v2726_v10, %v2269_v33  ;;  %v2060_v25 = vsub.f32 %v1996_v31, %v5979_v20  ;;  %2551 = vperm.xlu0 %4542, %v2176_v18   ;;  %v2240_v42 = vmul.f32 %v5924_v59, %v2176_v18  ;;  %v2729_v62 = vmul.f32 %v6953_v27, %v2176_v18  ;;  %v4274_v28 = vpop.f32.mrf.mxu0  ;;  %v303_v10 = vld [vmem:[%s6806_s6 + $0x10] sm:$0xff]  ;;  %v6954_v33 = vld [vmem:[#allocation36_spill] sm:$0xff]  ;;  %v6955_v18 = vld [vmem:[#allocation6_spill] sm:$0xff] }
 0x4c7   :  { %4584 = vrsqrt.f32 %v2122_v1  ;;  %v2121_v19 = vadd.f32 1e-05, %v2089_v17  ;;  %v2059_v52 = vsub.f32 %v1995_v3, %v5984_v46  ;;  %v2175_v37 = vmul.f32 %v4567_v2, %v271_v13  ;;  %v306_v46 = vld [vmem:[%s6806_s6 + $0x28] sm:$0xff]  ;;  %v273_v2 = vld [vmem:[%s6805_s5 + $0x20] sm:$0xff]  ;;  %v6957_v27 = vld [vmem:[#allocation7_spill] sm:$0xff] }
 0x4c8   :  { %v2092_v0 = vmax.f32 %v2060_v25, 0.0  ;;  %v2272_v45 = vsub.f32 %v304_v32, %v2240_v42  ;;  %v1998_v11 = vmul.f32 0.001953125, %v4274_v28  ;;  %v2178_v8 = vmul.f32 %v4569_v14, %v274_v6  ;;  %v1902_v20 = vpop.f32.mrf.mxu0  ;;  %v4571_v15 = vpop.eup %4570 }
 0x4c9   :  { %4586 = vrsqrt.f32 %v2121_v19  ;;  %v2091_v59 = vmax.f32 %v2059_v52, 0.0  ;;  %2546 = vperm.xlu1 %4543, %v2175_v37   ;;  %v2239_v31 = vmul.f32 %v6954_v33, %v2175_v37  ;;  %v2728_v16 = vmul.f32 %v2175_v37, %v6955_v18  ;;  %v4573_v13 = vpop.eup %4572 }
 0x4ca   :  { %v2124_v1 = vadd.f32 1e-05, %v2092_v0  ;;  %v6146_v14 = vadd.f32 %v2729_v62, %v2272_v45  ;;  %v2062_v17 = vsub.f32 %v1998_v11, %v5991_v36  ;;  %2561 = vperm.xlu0 %4542, %v2178_v8   ;;  %v2242_v32 = vmul.f32 %v5932_v56, %v2178_v8  ;;  %v4277_v3 = vpop.f32.mrf.mxu0  ;;  %v4575_v6 = vpop.eup %4574  ;;  %v276_v62 = vld [vmem:[%s6805_s5 + $0x38] sm:$0xff]  ;;  %v305_v45 = vld [vmem:[%s6806_s6 + $0x20] sm:$0xff]  ;;  %v275_v11 = vld [vmem:[%s6805_s5 + $0x30] sm:$0xff] }
 0x4cb   :  { %v2123_v25 = vadd.f32 1e-05, %v2091_v59  ;;  %v2271_v42 = vsub.f32 %v303_v10, %v2239_v31  ;;  %v2731_v28 = vmul.f32 %v6957_v27, %v2178_v8  ;;  %v1997_v19 = vmul.f32 0.001953125, %v1902_v20  ;;  %v6961_v31 = vld [vmem:[#allocation8_spill] sm:$0xff] }
 0x4cc   :  { %6956 = vst [vmem:[#allocation5_spill] sm:$0xff] %v6146_v14  ;;  %v4577_v52 = vpop.eup %4576  ;;  %4588 = vrsqrt.f32 %v2124_v1  ;;  %v2094_v37 = vmax.f32 %v2062_v17, 0.0  ;;  %v2274_v33 = vsub.f32 %v306_v46, %v2242_v32  ;;  %v2177_v18 = vmul.f32 %v4571_v15, %v273_v2  ;;  %v1912_v36 = vpop.f32.mrf.mxu0  ;;  %v6960_v15 = vld [vmem:[#allocation37_spill] sm:$0xff] }
 0x4cd   :  { %4590 = vrsqrt.f32 %v2123_v25  ;;  %v6154_v0 = vadd.f32 %v2728_v16, %v2271_v42  ;;  %v2061_v56 = vsub.f32 %v1997_v19, %v5999_v29  ;;  %v2000_v10 = vmul.f32 0.001953125, %v4277_v3  ;;  %v308_v42 = vld [vmem:[%s6806_s6 + $0x38] sm:$0xff] }
 0x4ce   :  { %v2126_v8 = vadd.f32 1e-05, %v2094_v37  ;;  %v6163_v20 = vadd.f32 %v2731_v28, %v2274_v33  ;;  %2556 = vperm.xlu1 %4543, %v2177_v18   ;;  %v2241_v59 = vmul.f32 %v6960_v15, %v2177_v18  ;;  %v2730_v16 = vmul.f32 %v2177_v18, %v6961_v31  ;;  %v4280_v46 = vpop.f32.mrf.mxu0 }
 0x4cf   :  { %6958 = vst [vmem:[#allocation36_spill] sm:$0xff] %v6154_v0  ;;  %v4579_v2 = vpop.eup %4578  ;;  %v2093_v29 = vmax.f32 %v2061_v56, 0.0  ;;  %v2064_v1 = vsub.f32 %v2000_v10, %v6007_v58  ;;  %v2180_v17 = vmul.f32 %v4573_v13, %v276_v62  ;;  %v1999_v32 = vmul.f32 0.001953125, %v1912_v36  ;;  %v6962_v56 = vld [vmem:[#allocation9_spill] sm:$0xff]  ;;  %v307_v58 = vld [vmem:[%s6806_s6 + $0x30] sm:$0xff]  ;;  %v278_v13 = vld [vmem:[%s6805_s5 + $0x48] sm:$0xff] }
 0x4d0   :  { %6959 = vst [vmem:[#allocation6_spill] sm:$0xff] %v6163_v20  ;;  %v4581_v3 = vpop.eup %4580  ;;  %4592 = vrsqrt.f32 %v2126_v8  ;;  %v2273_v25 = vsub.f32 %v305_v45, %v2241_v59  ;;  %v2179_v27 = vmul.f32 %v4575_v6, %v275_v11  ;;  %v2002_v28 = vmul.f32 0.001953125, %v4280_v46  ;;  %v1922_v19 = vpop.f32.mrf.mxu0  ;;  %v6963_v45 = vld [vmem:[#allocation38_spill] sm:$0xff]  ;;  %v277_v8 = vld [vmem:[%s6805_s5 + $0x40] sm:$0xff] }
 0x4d1   :  { %v2125_v37 = vadd.f32 1e-05, %v2093_v29  ;;  %v2096_v33 = vmax.f32 %v2064_v1, 0.0  ;;  %2571 = vperm.xlu0 %4542, %v2180_v17   ;;  %v2244_v18 = vmul.f32 %v5942_v7, %v2180_v17  ;;  %v2733_v15 = vmul.f32 %v6962_v56, %v2180_v17  ;;  %v6964_v11 = vld [vmem:[#allocation10_spill] sm:$0xff] }
 0x4d2   :  { %v4583_v62 = vpop.eup %4582  ;;  %v6179_v36 = vadd.f32 %v2730_v16, %v2273_v25  ;;  %v2063_v6 = vsub.f32 %v1999_v32, %v6015_v48  ;;  %2566 = vperm.xlu1 %4543, %v2179_v27   ;;  %v2243_v10 = vmul.f32 %v6963_v45, %v2179_v27  ;;  %v2732_v7 = vmul.f32 %v2179_v27, %v6964_v11  ;;  %v4283_v59 = vpop.f32.mrf.mxu0  ;;  %v310_v45 = vld [vmem:[%s6806_s6 + $0x48] sm:$0xff] }
 0x4d3   :  { %4594 = vrsqrt.f32 %v2125_v37  ;;  %v2128_v31 = vadd.f32 1e-05, %v2096_v33  ;;  %v2276_v46 = vsub.f32 %v308_v42, %v2244_v18  ;;  %v2066_v29 = vsub.f32 %v2002_v28, %v6024_v57  ;;  %v280_v42 = vld [vmem:[%s6805_s5 + $0x58] sm:$0xff]  ;;  %v6966_v33 = vld [vmem:[#allocation11_spill] sm:$0xff] }
 0x4d4   :  { %v4585_v1 = vpop.eup %4584  ;;  %v2095_v16 = vmax.f32 %v2063_v6, 0.0  ;;  %v2275_v17 = vsub.f32 %v307_v58, %v2243_v10  ;;  %v2182_v25 = vmul.f32 %v4577_v52, %v278_v13  ;;  %v2001_v48 = vmul.f32 0.001953125, %v1922_v19  ;;  %v1932_v32 = vpop.f32.mrf.mxu0  ;;  %v6965_v52 = vld [vmem:[#allocation39_spill] sm:$0xff]  ;;  %v6967_v6 = vld [vmem:[#allocation40_spill] sm:$0xff] }
 0x4d5   :  { %4596 = vrsqrt.f32 %v2128_v31  ;;  %v6188_v56 = vadd.f32 %v2733_v15, %v2276_v46  ;;  %v2098_v27 = vmax.f32 %v2066_v29, 0.0  ;;  %v2181_v11 = vmul.f32 %v4579_v2, %v277_v8  ;;  %v309_v15 = vld [vmem:[%s6806_s6 + $0x40] sm:$0xff]  ;;  %v6968_v8 = vld [vmem:[#allocation12_spill] sm:$0xff] }
 0x4d6   :  { %v6196_v57 = vpop.eup %4586  ;;  %v2127_v28 = vadd.f32 1e-05, %v2095_v16  ;;  %v6198_v37 = vadd.f32 %v2732_v7, %v2275_v17  ;;  %2581 = vperm.xlu0 %4542, %v2182_v25   ;;  %v2246_v19 = vmul.f32 %v6965_v52, %v2182_v25  ;;  %v2735_v18 = vmul.f32 %v6966_v33, %v2182_v25  ;;  %v4286_v58 = vpop.f32.mrf.mxu0  ;;  %v279_v16 = vld [vmem:[%s6805_s5 + $0x50] sm:$0xff] }
 0x4d7   :  { %v2130_v2 = vadd.f32 1e-05, %v2098_v27  ;;  %v2065_v13 = vsub.f32 %v2001_v48, %v6033_v63  ;;  %2576 = vperm.xlu1 %4543, %v2181_v11   ;;  %v2245_v10 = vmul.f32 %v6967_v6, %v2181_v11  ;;  %v2734_v31 = vmul.f32 %v2181_v11, %v6968_v8  ;;  %v312_v63 = vld [vmem:[%s6806_s6 + $0x58] sm:$0xff] }
 0x4d8   :  { %4598 = vrsqrt.f32 %v2127_v28  ;;  %v2278_v7 = vsub.f32 %v310_v45, %v2246_v19  ;;  %v2004_v46 = vmul.f32 0.001953125, %v4283_v59  ;;  %v2184_v29 = vmul.f32 %v4581_v3, %v280_v42  ;;  %v1942_v17 = vpop.f32.mrf.mxu0  ;;  %v282_v59 = vld [vmem:[%s6805_s5 + $0x68] sm:$0xff]  ;;  %v6969_v28 = vld [vmem:[#allocation13_spill] sm:$0xff] }
 0x4d9   :  { %v6211_v25 = vpop.eup %4588  ;;  %4600 = vrsqrt.f32 %v2130_v2  ;;  %v2097_v27 = vmax.f32 %v2065_v13, 0.0  ;;  %v2277_v52 = vsub.f32 %v309_v15, %v2245_v10  ;;  %v2003_v48 = vmul.f32 0.001953125, %v1932_v32 }
 0x4da   :  { %v4591_v3 = vpop.eup %4590  ;;  %v6219_v45 = vadd.f32 %v2735_v18, %v2278_v7  ;;  %v2068_v11 = vsub.f32 %v2004_v46, %v6042_v51  ;;  %2591 = vperm.xlu0 %4542, %v2184_v29   ;;  %v2248_v42 = vmul.f32 %v5962_v4, %v2184_v29  ;;  %v2737_v19 = vmul.f32 %v6969_v28, %v2184_v29  ;;  %v4289_v33 = vpop.f32.mrf.mxu0  ;;  %v311_v18 = vld [vmem:[%s6806_s6 + $0x50] sm:$0xff]  ;;  %v6971_v29 = vld [vmem:[#allocation41_spill] sm:$0xff] }
 0x4db   :  { %v2129_v15 = vadd.f32 1e-05, %v2097_v27  ;;  %v6224_v2 = vadd.f32 %v2734_v31, %v2277_v52  ;;  %v2067_v32 = vsub.f32 %v2003_v48, %v6050_v21  ;;  %v2183_v13 = vmul.f32 %v4583_v62, %v279_v16  ;;  %v6972_v27 = vld [vmem:[#allocation14_spill] sm:$0xff]  ;;  %v281_v62 = vld [vmem:[%s6805_s5 + $0x60] sm:$0xff] }
 0x4dc   :  { %v2100_v6 = vmax.f32 %v2068_v11, 0.0  ;;  %v2280_v10 = vsub.f32 %v312_v63, %v2248_v42  ;;  %v2006_v8 = vmul.f32 0.001953125, %v4286_v58  ;;  %v2186_v51 = vmul.f32 %v4585_v1, %v282_v59  ;;  %v1952_v7 = vpop.f32.mrf.mxu0  ;;  %v314_v21 = vld [vmem:[%s6806_s6 + $0x68] sm:$0xff] }
 0x4dd   :  { %6970 = vst [vmem:[#allocation7_spill] sm:$0xff] %v6224_v2  ;;  %v6230_v46 = vpop.eup %4592  ;;  %4602 = vrsqrt.f32 %v2129_v15  ;;  %v2099_v4 = vmax.f32 %v2067_v32, 0.0  ;;  %2586 = vperm.xlu1 %4543, %v2183_v13   ;;  %v2247_v31 = vmul.f32 %v6971_v29, %v2183_v13  ;;  %v2736_v52 = vmul.f32 %v2183_v13, %v6972_v27 }
 0x4de   :  { %v2132_v58 = vadd.f32 1e-05, %v2100_v6  ;;  %v6240_v1 = vadd.f32 %v2737_v19, %v2280_v10  ;;  %v2070_v16 = vsub.f32 %v2006_v8, %v6059_v9  ;;  %2601 = vperm.xlu0 %4542, %v2186_v51   ;;  %v2250_v63 = vmul.f32 %v5972_v5, %v2186_v51  ;;  %v4292_v48 = vpop.f32.mrf.mxu0  ;;  %v284_v19 = vld [vmem:[%s6805_s5 + $0x78] sm:$0xff]  ;;  %v283_v6 = vld [vmem:[%s6805_s5 + $0x70] sm:$0xff] }
 0x4df   :  { %v2131_v59 = vadd.f32 1e-05, %v2099_v4  ;;  %v2279_v11 = vsub.f32 %v311_v18, %v2247_v31  ;;  %v2739_v42 = vmul.f32 %v5771_v49, %v2186_v51  ;;  %v2005_v28 = vmul.f32 0.001953125, %v1942_v17  ;;  %v313_v49 = vld [vmem:[%s6806_s6 + $0x60] sm:$0xff] }
 0x4e0   :  { %6973 = vst [vmem:[#allocation37_spill] sm:$0xff] %v6240_v1  ;;  %v4595_v15 = vpop.eup %4594  ;;  %4604 = vrsqrt.f32 %v2132_v58  ;;  %v2102_v32 = vmax.f32 %v2070_v16, 0.0  ;;  %v2282_v13 = vsub.f32 %v314_v21, %v2250_v63  ;;  %v2185_v29 = vmul.f32 %v6196_v57, %v281_v62  ;;  %v1962_v4 = vpop.f32.mrf.mxu0  ;;  %v316_v21 = vld [vmem:[%s6806_s6 + $0x78] sm:$0xff] }
 0x4e1   :  { %4606 = vrsqrt.f32 %v2131_v59  ;;  %v6249_v9 = vadd.f32 %v2736_v52, %v2279_v11  ;;  %v2069_v5 = vsub.f32 %v2005_v28, %v6068_v22  ;;  %v2008_v17 = vmul.f32 0.001953125, %v4289_v33 }
 0x4e2   :  { %v4597_v10 = vpop.eup %4596  ;;  %v2134_v57 = vadd.f32 1e-05, %v2102_v32  ;;  %v6258_v18 = vadd.f32 %v2739_v42, %v2282_v13  ;;  %2596 = vperm.xlu1 %4543, %v2185_v29   ;;  %v2249_v8 = vmul.f32 %v5977_v61, %v2185_v29  ;;  %v2738_v51 = vmul.f32 %v2185_v29, %v5777_v38  ;;  %v4295_v42 = vpop.f32.mrf.mxu0 }
 0x4e3   :  { %6974 = vst [vmem:[#allocation8_spill] sm:$0xff] %v6249_v9  ;;  %v2101_v22 = vmax.f32 %v2069_v5, 0.0  ;;  %v2072_v31 = vsub.f32 %v2008_v17, %v6072_v35  ;;  %v2188_v27 = vmul.f32 %v6211_v25, %v284_v19  ;;  %v2007_v33 = vmul.f32 0.001953125, %v1952_v7  ;;  %v315_v25 = vld [vmem:[%s6806_s6 + $0x70] sm:$0xff]  ;;  %v286_v7 = vld [vmem:[%s6805_s5 + $0x88] sm:$0xff] }
 0x4e4   :  { %6975 = vst [vmem:[#allocation9_spill] sm:$0xff] %v6258_v18  ;;  %4608 = vrsqrt.f32 %v2134_v57  ;;  %v2281_v52 = vsub.f32 %v313_v49, %v2249_v8  ;;  %v2187_v62 = vmul.f32 %v4591_v3, %v283_v6  ;;  %v2010_v58 = vmul.f32 0.001953125, %v4292_v48  ;;  %v288_v6 = vld [vmem:[%s6805_s5 + $0x98] sm:$0xff] }
 0x4e5   :  { %v6267_v16 = vpop.eup %4598  ;;  %v2133_v61 = vadd.f32 1e-05, %v2101_v22  ;;  %v2104_v63 = vmax.f32 %v2072_v31, 0.0  ;;  %2611 = vperm.xlu0 %4542, %v2188_v27   ;;  %v2252_v38 = vmul.f32 %v5982_v40, %v2188_v27  ;;  %v2741_v35 = vmul.f32 %v5783_v44, %v2188_v27  ;;  %v285_v44 = vld [vmem:[%s6805_s5 + $0x80] sm:$0xff]  ;;  %v1972_v22 = vpop.f32.mrf.mxu0 }
 0x4e6   :  { %v4601_v59 = vpop.eup %4600  ;;  %v6277_v3 = vadd.f32 %v2738_v51, %v2281_v52  ;;  %v2071_v48 = vsub.f32 %v2007_v33, %v6076_v23  ;;  %2606 = vperm.xlu1 %4543, %v2187_v62   ;;  %v2251_v11 = vmul.f32 %v5987_v50, %v2187_v62  ;;  %v2740_v40 = vmul.f32 %v2187_v62, %v5787_v26  ;;  %v318_v26 = vld [vmem:[%s6806_s6 + $0x88] sm:$0xff] }
 0x4e7   :  { %4610 = vrsqrt.f32 %v2133_v61  ;;  %v2136_v28 = vadd.f32 1e-05, %v2104_v63  ;;  %v2284_v32 = vsub.f32 %v316_v21, %v2252_v38  ;;  %v2074_v13 = vsub.f32 %v2010_v58, %v6080_v54 }
 0x4e8   :  { %6976 = vst [vmem:[#allocation38_spill] sm:$0xff] %v6277_v3  ;;  %v2103_v29 = vmax.f32 %v2071_v48, 0.0  ;;  %v2283_v19 = vsub.f32 %v315_v25, %v2251_v11  ;;  %v2190_v5 = vmul.f32 %v6230_v46, %v286_v7  ;;  %v2009_v23 = vmul.f32 0.001953125, %v1962_v4  ;;  %v317_v4 = vld [vmem:[%s6806_s6 + $0x80] sm:$0xff]  ;;  %v6978_v25 = vld [vmem:[#allocation42_spill] sm:$0xff]  ;;  %v6979_v48 = vld [vmem:[#allocation15_spill] sm:$0xff] }
 0x4e9   :  { %4612 = vrsqrt.f32 %v2136_v28  ;;  %v6287_v49 = vadd.f32 %v2741_v35, %v2284_v32  ;;  %v2106_v50 = vmax.f32 %v2074_v13, 0.0  ;;  %v2189_v17 = vmul.f32 %v4595_v15, %v285_v44 }
 0x4ea   :  { %v4603_v57 = vpop.eup %4602  ;;  %v2135_v54 = vadd.f32 1e-05, %v2103_v29  ;;  %v6295_v8 = vadd.f32 %v2740_v40, %v2283_v19  ;;  %2621 = vperm.xlu0 %4542, %v2190_v5   ;;  %v2254_v46 = vmul.f32 %v5995_v53, %v2190_v5  ;;  %v2743_v51 = vmul.f32 %v5789_v41, %v2190_v5  ;;  %v287_v41 = vld [vmem:[%s6805_s5 + $0x90] sm:$0xff] }
 0x4eb   :  { %v2138_v31 = vadd.f32 1e-05, %v2106_v50  ;;  %v2073_v15 = vsub.f32 %v2009_v23, %v6087_v12  ;;  %2616 = vperm.xlu1 %4543, %v2189_v17   ;;  %v2253_v27 = vmul.f32 %v6003_v55, %v2189_v17  ;;  %v2742_v33 = vmul.f32 %v2189_v17, %v5791_v43  ;;  %v320_v12 = vld [vmem:[%s6806_s6 + $0x98] sm:$0xff]  ;;  %v290_v43 = vld [vmem:[%s6805_s5 + $0xa8] sm:$0xff]  ;;  %v289_v55 = vld [vmem:[%s6805_s5 + $0xa0] sm:$0xff] }
 0x4ec   :  { %6977 = vst [vmem:[#allocation10_spill] sm:$0xff] %v6295_v8  ;;  %4614 = vrsqrt.f32 %v2135_v54  ;;  %v2286_v52 = vsub.f32 %v318_v26, %v2254_v46  ;;  %v2012_v21 = vmul.f32 0.001953125, %v4295_v42  ;;  %v2192_v62 = vmul.f32 %v4597_v10, %v288_v6  ;;  %v319_v29 = vld [vmem:[%s6806_s6 + $0x90] sm:$0xff]  ;;  %v6981_v17 = vld [vmem:[#allocation16_spill] sm:$0xff] }
 0x4ed   :  { %v4605_v53 = vpop.eup %4604  ;;  %4616 = vrsqrt.f32 %v2138_v31  ;;  %v2105_v58 = vmax.f32 %v2073_v15, 0.0  ;;  %v2285_v61 = vsub.f32 %v317_v4, %v2253_v27  ;;  %v2011_v63 = vmul.f32 0.001953125, %v1972_v22  ;;  %v6980_v50 = vld [vmem:[#allocation43_spill] sm:$0xff]  ;;  %v321_v22 = vld [vmem:[%s6806_s6 + $0xa0] sm:$0xff]  ;;  %v294_v31 = vld [vmem:[%s6805_s5 + $0xc8] sm:$0xff] }
 0x4ee   :  { %v4607_v10 = vpop.eup %4606  ;;  %v6317_v38 = vadd.f32 %v2743_v51, %v2286_v52  ;;  %v2076_v35 = vsub.f32 %v2012_v21, %v6091_v24  ;;  %2631 = vperm.xlu0 %4542, %v2192_v62   ;;  %v2256_v7 = vmul.f32 %v6978_v25, %v2192_v62  ;;  %v2745_v11 = vmul.f32 %v6979_v48, %v2192_v62  ;;  %v6982_v51 = vld [vmem:[#allocation17_spill] sm:$0xff]  ;;  %v6983_v52 = vld [vmem:[#allocation18_spill] sm:$0xff] }
 0x4ef   :  { %v2137_v40 = vadd.f32 1e-05, %v2105_v58  ;;  %v6322_v44 = vadd.f32 %v2742_v33, %v2285_v61  ;;  %v2075_v42 = vsub.f32 %v2011_v63, %v6100_v47  ;;  %v2191_v28 = vmul.f32 %v6267_v16, %v287_v41  ;;  %v322_v47 = vld [vmem:[%s6806_s6 + $0xa8] sm:$0xff]  ;;  %v292_v16 = vld [vmem:[%s6805_s5 + $0xb8] sm:$0xff]  ;;  %v6986_v25 = vld [vmem:[#allocation29_spill] sm:$0xff] }
 0x4f0   :  { %v2108_v32 = vmax.f32 %v2076_v35, 0.0  ;;  %v2288_v13 = vsub.f32 %v320_v12, %v2256_v7  ;;  %v2194_v19 = vmul.f32 %v4601_v59, %v290_v43  ;;  %v2193_v24 = vmul.f32 %v4603_v57, %v289_v55  ;;  %v291_v59 = vld [vmem:[%s6805_s5 + $0xb0] sm:$0xff]  ;;  %v293_v55 = vld [vmem:[%s6805_s5 + $0xc0] sm:$0xff]  ;;  %v296_v35 = vld [vmem:[%s6805_s5 + $0xd8] sm:$0xff] }
 0x4f1   :  { %v4609_v5 = vpop.eup %4608  ;;  %4618 = vrsqrt.f32 %v2137_v40  ;;  %v2107_v23 = vmax.f32 %v2075_v42, 0.0  ;;  %2626 = vperm.xlu1 %4543, %v2191_v28   ;;  %v2255_v26 = vmul.f32 %v6980_v50, %v2191_v28  ;;  %v2744_v6 = vmul.f32 %v2191_v28, %v6981_v17  ;;  %v6988_v42 = vld [vmem:[#allocation45_spill] sm:$0xff] }
 0x4f2   :  { %v2140_v57 = vadd.f32 1e-05, %v2108_v32  ;;  %v6340_v54 = vadd.f32 %v2745_v11, %v2288_v13  ;;  %2641 = vperm.xlu0 %4542, %v2194_v19   ;;  %v2258_v46 = vmul.f32 %v6029_v39, %v2194_v19  ;;  %v2747_v4 = vmul.f32 %v6982_v51, %v2194_v19  ;;  %v324_v39 = vld [vmem:[%s6806_s6 + $0xb8] sm:$0xff]  ;;  %v326_v32 = vld [vmem:[%s6806_s6 + $0xc8] sm:$0xff] }
 0x4f3   :  { %v2139_v15 = vadd.f32 1e-05, %v2107_v23  ;;  %v2287_v27 = vsub.f32 %v319_v29, %v2255_v26  ;;  %v2257_v33 = vmul.f32 %v6037_v30, %v2193_v24  ;;  %v2746_v21 = vmul.f32 %v2193_v24, %v6983_v52  ;;  %v323_v30 = vld [vmem:[%s6806_s6 + $0xb0] sm:$0xff]  ;;  %v6987_v11 = vld [vmem:[#allocation44_spill] sm:$0xff]  ;;  %v6992_v23 = vld [vmem:[#allocation46_spill] sm:$0xff] }
 0x4f4   :  { %v4611_v62 = vpop.eup %4610  ;;  %4620 = vrsqrt.f32 %v2140_v57  ;;  %v2290_v41 = vsub.f32 %v322_v47, %v2258_v46  ;;  %v2196_v58 = vmul.f32 %v4605_v53, %v292_v16  ;;  %v2195_v61 = vmul.f32 %v4607_v10, %v291_v59  ;;  %v6985_v10 = vld [vmem:[#allocation22_spill] sm:$0xff]  ;;  %v6990_v29 = vld [vmem:[#allocation19_spill] sm:$0xff] }
 0x4f5   :  { %4622 = vrsqrt.f32 %v2139_v15  ;;  %v6355_v12 = vadd.f32 %v2744_v6, %v2287_v27  ;;  %2636 = vperm.xlu1 %4543, %v2193_v24   ;;  %v2289_v63 = vsub.f32 %v321_v22, %v2257_v33  ;;  %v2198_v43 = vmul.f32 %v4609_v5, %v294_v31  ;;  %v6991_v24 = vld [vmem:[#allocation20_spill] sm:$0xff]  ;;  %v295_v16 = vld [vmem:[%s6805_s5 + $0xd0] sm:$0xff]  ;;  %v6994_v46 = vld [vmem:[#allocation30_spill] sm:$0xff] }
 0x4f6   :  { %v4613_v53 = vpop.eup %4612  ;;  %v2229_v7 = vadd.f32 %v6986_v25, %v6985_v10  ;;  %v6368_v48 = vadd.f32 %v2747_v4, %v2290_v41  ;;  %2651 = vperm.xlu0 %4542, %v2196_v58   ;;  %v2260_v40 = vmul.f32 %v6987_v11, %v2196_v58  ;;  %v2259_v28 = vmul.f32 %v6988_v42, %v2195_v61  ;;  %v6993_v57 = vld [vmem:[#allocation23_spill] sm:$0xff]  ;;  %v6995_v22 = vld [vmem:[#allocation21_spill] sm:$0xff]  ;;  %v298_v27 = vld [vmem:[%s6805_s5 + $0xe8] sm:$0xff] }
 0x4f7   :  { %6984 = vst [vmem:[#allocation39_spill] sm:$0xff] %v6355_v12  ;;  %v6375_v13 = vadd.f32 %v2746_v21, %v2289_v63  ;;  %v2749_v19 = vmul.f32 %v6990_v29, %v2196_v58  ;;  %v2748_v5 = vmul.f32 %v2195_v61, %v6991_v24  ;;  %v2262_v50 = vmul.f32 %v6992_v23, %v2198_v43  ;;  %v325_v15 = vld [vmem:[%s6806_s6 + $0xc0] sm:$0xff]  ;;  %v328_v41 = vld [vmem:[%s6806_s6 + $0xd8] sm:$0xff]  ;;  %v6998_v58 = vld [vmem:[#allocation31_spill] sm:$0xff] }
 0x4f8   :  { %v2292_v26 = vsub.f32 %v324_v39, %v2260_v40  ;;  %v2291_v17 = vsub.f32 %v323_v30, %v2259_v28  ;;  %v2197_v6 = vmul.f32 %v4611_v62, %v293_v55  ;;  %v2200_v47 = vmul.f32 %v4613_v53, %v296_v35  ;;  %v6997_v39 = vld [vmem:[#allocation24_spill] sm:$0xff]  ;;  %v7000_v35 = vld [vmem:[#allocation25_spill] sm:$0xff] }
 0x4f9   :  { %6989 = vst [vmem:[#allocation11_spill] sm:$0xff] %v6375_v13  ;;  %v4615_v59 = vpop.eup %4614  ;;  %v2232_v51 = vadd.f32 %v6994_v46, %v6993_v57  ;;  %2646 = vperm.xlu1 %4543, %v2195_v61   ;;  %v2294_v4 = vsub.f32 %v326_v32, %v2262_v50  ;;  %v2751_v31 = vmul.f32 %v6995_v22, %v2198_v43  ;;  %v7001_v53 = vld [vmem:[#allocation32_spill] sm:$0xff]  ;;  %v297_v42 = vld [vmem:[%s6805_s5 + $0xe0] sm:$0xff] }
 0x4fa   :  { %v4617_v33 = vpop.eup %4616  ;;  %v6392_v52 = vadd.f32 %v2749_v19, %v2292_v26  ;;  %v6394_v21 = vadd.f32 %v2748_v5, %v2291_v17  ;;  %2661 = vperm.xlu0 %4542, %v2198_v43   ;;  %v2261_v62 = vmul.f32 %v2229_v7, %v2197_v6  ;;  %v2231_v61 = vadd.f32 %v6998_v58, %v6997_v39  ;;  %v327_v43 = vld [vmem:[%s6806_s6 + $0xd0] sm:$0xff]  ;;  %v330_v19 = vld [vmem:[%s6806_s6 + $0xe8] sm:$0xff]  ;;  %v7003_v5 = vld [vmem:[#allocation33_spill] sm:$0xff] }
 0x4fb   :  { %v6401_v63 = vadd.f32 %v2751_v31, %v2294_v4  ;;  %v2264_v30 = vmul.f32 %v2232_v51, %v2200_v47  ;;  %v2199_v55 = vmul.f32 %v4615_v59, %v295_v16  ;;  %v2234_v25 = vadd.f32 %v7001_v53, %v7000_v35  ;;  %v329_v4 = vld [vmem:[%s6806_s6 + $0xe0] sm:$0xff] }
 0x4fc   :  { %6996 = vst [vmem:[#allocation40_spill] sm:$0xff] %v6394_v21  ;;  %v2293_v11 = vsub.f32 %v325_v15, %v2261_v62  ;;  %v2750_v40 = vmul.f32 %v2197_v6, %v6985_v10  ;;  %v2202_v7 = vmul.f32 %v4617_v33, %v298_v27  ;;  %v2753_v32 = vmul.f32 %v6993_v57, %v2200_v47  ;;  %v7002_v10 = vld [vmem:[#allocation26_spill] sm:$0xff]  ;;  %v300_v57 = vld [vmem:[%s6805_s5 + $0xf8] sm:$0xff]  ;;  %v7007_v33 = vld [vmem:[#allocation27_spill] sm:$0xff] }
 0x4fd   :  { %6999 = vst [vmem:[#allocation12_spill] sm:$0xff] %v6401_v63  ;;  %2656 = vperm.xlu1 %4543, %v2197_v6   ;;  %v2296_v28 = vsub.f32 %v328_v41, %v2264_v30  ;;  %v2263_v29 = vmul.f32 %v2231_v61, %v2199_v55  ;;  %v2233_v23 = vadd.f32 %v7003_v5, %v7002_v10  ;;  %v7008_v62 = vld [vmem:[#allocation34_spill] sm:$0xff]  ;;  %v7010_v61 = vld [vmem:[#allocation28_spill] sm:$0xff]  ;;  %v7011_v30 = vld [vmem:[#allocation35_spill] sm:$0xff] }
 0x4fe   :  { %v4619_v24 = vpop.eup %4618  ;;  %v6418_v50 = vadd.f32 %v2750_v40, %v2293_v11  ;;  %2671 = vperm.xlu0 %4542, %v2200_v47   ;;  %v2266_v26 = vmul.f32 %v2234_v25, %v2202_v7  ;;  %v2752_v6 = vmul.f32 %v2199_v55, %v6997_v39  ;;  %v2755_v51 = vmul.f32 %v7000_v35, %v2202_v7  ;;  %v299_v47 = vld [vmem:[%s6805_s5 + $0xf0] sm:$0xff] }
 0x4ff   :  { %v6420_v17 = vadd.f32 %v2753_v32, %v2296_v28  ;;  %v2295_v16 = vsub.f32 %v327_v43, %v2263_v29  ;;  %v2201_v59 = vmul.f32 %v4619_v24, %v297_v42  ;;  %v2236_v41 = vadd.f32 %v7008_v62, %v7007_v33  ;;  %v331_v43 = vld [vmem:[%s6806_s6 + $0xf0] sm:$0xff] }
 0x500   :  { %7004 = vst [vmem:[#allocation13_spill] sm:$0xff] %v6418_v50  ;;  %v2298_v46 = vsub.f32 %v330_v19, %v2266_v26  ;;  %v2235_v35 = vadd.f32 %v7011_v30, %v7010_v61 }
 0x501   :  { %7005 = vst [vmem:[#allocation41_spill] sm:$0xff] %v6420_v17  ;;  %v4621_v22 = vpop.eup %4620  ;;  %2666 = vperm.xlu1 %4543, %v2199_v55   ;;  %v6433_v31 = vadd.f32 %v2752_v6, %v2295_v16  ;;  %v2265_v15 = vmul.f32 %v2233_v23, %v2201_v59  ;;  %v2754_v25 = vmul.f32 %v2201_v59, %v7002_v10  ;;  %v332_v55 = vld [vmem:[%s6806_s6 + $0xf8] sm:$0xff]  ;;  %v4314_v10 = vpop.f32.mrf.mxu1  ;;  %s6520_s6 = smov 0  }
 0x502   :  { %v4623_v27 = vpop.eup %4622  ;;  %2681 = vperm.xlu0 %4542, %v2202_v7   ;;  %v6437_v39 = vadd.f32 %v2755_v51, %v2298_v46  ;;  %v2204_v58 = vmul.f32 %v4621_v22, %v300_v57 }
 0x503   :  { %7006 = vst [vmem:[#allocation14_spill] sm:$0xff] %v6433_v31  ;;  %v2297_v53 = vsub.f32 %v329_v4, %v2265_v15  ;;  %v2203_v11 = vmul.f32 %v4623_v27, %v299_v47  ;;  %v2375_v23 = vpop.f32.mrf.mxu1 }
 0x504   :  { %7009 = vst [vmem:[#allocation42_spill] sm:$0xff] %v6437_v39  ;;  %v2268_v40 = vmul.f32 %v2236_v41, %v2204_v58  ;;  %v2757_v32 = vmul.f32 %v7007_v33, %v2204_v58 }
 0x505   :  { %2676 = vperm.xlu1 %4543, %v2201_v59   ;;  %v6448_v7 = vadd.f32 %v2754_v25, %v2297_v53  ;;  %v2267_v42 = vmul.f32 %v2235_v35, %v2203_v11  ;;  %v2756_v19 = vmul.f32 %v2203_v11, %v7010_v61  ;;  %v4317_v26 = vpop.f32.mrf.mxu1 }
 0x506   :  { %2691 = vperm.xlu0 %4542, %v2204_v58   ;;  %v2300_v28 = vsub.f32 %v332_v55, %v2268_v40 }
 0x507   :  { %7012 = vst [vmem:[#allocation15_spill] sm:$0xff] %v6448_v7  ;;  %v2299_v29 = vsub.f32 %v331_v43, %v2267_v42  ;;  %v2385_v16 = vpop.f32.mrf.mxu1 }
 0x508   :  { %v6452_v24 = vadd.f32 %v2757_v32, %v2300_v28 }
 0x509   :  { %2686 = vperm.xlu1 %4543, %v2203_v11   ;;  %v6454_v5 = vadd.f32 %v2756_v19, %v2299_v29  ;;  %v4320_v6 = vpop.f32.mrf.mxu1 }
 0x50a   :  { %7013 = vst [vmem:[#allocation43_spill] sm:$0xff] %v6452_v24 }
 0x50b   :  { %7014 = vst [vmem:[#allocation16_spill] sm:$0xff] %v6454_v5  ;;  %v2395_v59 = vpop.f32.mrf.mxu1 }
 0x50d   :  { %v4323_v57 = vpop.f32.mrf.mxu1 }
 0x50f   :  { %v2405_v46 = vpop.f32.mrf.mxu1 }
 0x511   :  { %v4326_v51 = vpop.f32.mrf.mxu1 }
 0x513   :  { %v2415_v4 = vpop.f32.mrf.mxu1 }
 0x515   :  { %v4329_v47 = vpop.f32.mrf.mxu1 }
 0x517   :  { %v2425_v22 = vpop.f32.mrf.mxu1 }
 0x519   :  { %v4332_v15 = vpop.f32.mrf.mxu1 }
 0x51b   :  { %v2435_v62 = vpop.f32.mrf.mxu1 }
 0x51d   :  { %v4335_v61 = vpop.f32.mrf.mxu1 }
 0x51f   :  { %v2445_v25 = vpop.f32.mrf.mxu1 }
 0x521   :  { %v4338_v43 = vpop.f32.mrf.mxu1 }
 0x523   :  { %v2455_v29 = vpop.f32.mrf.mxu1 }
 0x53b   :  { %v2542_v27 = vpop.permute.xlu0 %2541 }
 0x53c   :  { %v6456_v33 = vmul.f32 %v4314_v10, %v2542_v27 }
 0x53d   :  { %v2537_v41 = vpop.permute.xlu1 %2536 }
 0x53e   :  { %v6458_v58 = vmul.f32 %v2537_v41, %v2375_v23 }
 0x541   :  { %v2552_v30 = vpop.permute.xlu0 %2551 }
 0x542   :  { %v6460_v35 = vmul.f32 %v4317_v26, %v2552_v30  ;;  %v4341_v26 = vpop.f32.mrf.mxu1 }
 0x544   :  { %v2547_v53 = vpop.permute.xlu1 %2546 }
 0x545   :  { %v6462_v55 = vmul.f32 %v2547_v53, %v2385_v16  ;;  %v2562_v11 = vpop.permute.xlu0 %2561 }
 0x546   :  { %v6464_v40 = vmul.f32 %v4320_v6, %v2562_v11  ;;  %v2465_v6 = vpop.f32.mrf.mxu1 }
 0x549   :  { %v2557_v42 = vpop.permute.xlu1 %2556 }
 0x54a   :  { %v6466_v28 = vmul.f32 %v2557_v42, %v2395_v59  ;;  %v4344_v42 = vpop.f32.mrf.mxu1 }
 0x54c   :  { %v2572_v32 = vpop.permute.xlu0 %2571 }
 0x54d   :  { %v6468_v19 = vmul.f32 %v4323_v57, %v2572_v32  ;;  %v2567_v10 = vpop.permute.xlu1 %2566 }
 0x54e   :  { %v6470_v23 = vmul.f32 %v2567_v10, %v2405_v46  ;;  %v2475_v46 = vpop.f32.mrf.mxu1 }
 0x54f   :  { %7015 = vst [vmem:[#allocation17_spill] sm:$0xff] %v6468_v19 }
 0x550   :  { %7016 = vst [vmem:[#allocation18_spill] sm:$0xff] %v6470_v23 }
 0x551   :  { %v2582_v27 = vpop.permute.xlu0 %2581 }
 0x552   :  { %v6472_v41 = vmul.f32 %v4326_v51, %v2582_v27  ;;  %v2577_v16 = vpop.permute.xlu1 %2576  ;;  %v4347_v27 = vpop.f32.mrf.mxu1 }
 0x553   :  { %v6474_v30 = vmul.f32 %v2577_v16, %v2415_v4 }
 0x555   :  { %v2592_v53 = vpop.permute.xlu0 %2591 }
 0x556   :  { %v6476_v11 = vmul.f32 %v4329_v47, %v2592_v53  ;;  %v2485_v47 = vpop.f32.mrf.mxu1 }
 0x558   :  { %7017 = vst [vmem:[#allocation22_spill] sm:$0xff] %v6476_v11  ;;  %v2587_v59 = vpop.permute.xlu1 %2586 }
 0x559   :  { %v6478_v5 = vmul.f32 %v2587_v59, %v2425_v22  ;;  %v2602_v57 = vpop.permute.xlu0 %2601 }
 0x55a   :  { %v6480_v32 = vmul.f32 %v4332_v15, %v2602_v57  ;;  %v4350_v15 = vpop.f32.mrf.mxu1 }
 0x55b   :  { %7018 = vst [vmem:[#allocation29_spill] sm:$0xff] %v6478_v5 }
 0x55c   :  { %7019 = vst [vmem:[#allocation44_spill] sm:$0xff] %v6480_v32 }
 0x55d   :  { %v2597_v10 = vpop.permute.xlu1 %2596 }
 0x55e   :  { %v6482_v24 = vmul.f32 %v2597_v10, %v2435_v62  ;;  %v2495_v10 = vpop.f32.mrf.mxu1 }
 0x560   :  { %7020 = vst [vmem:[#allocation45_spill] sm:$0xff] %v6482_v24  ;;  %v2612_v51 = vpop.permute.xlu0 %2611 }
 0x561   :  { %v6484_v7 = vmul.f32 %v4335_v61, %v2612_v51  ;;  %v2607_v4 = vpop.permute.xlu1 %2606 }
 0x562   :  { %v6486_v16 = vmul.f32 %v2607_v4, %v2445_v25  ;;  %v4353_v4 = vpop.f32.mrf.mxu1 }
 0x563   :  { %7021 = vst [vmem:[#allocation19_spill] sm:$0xff] %v6484_v7 }
 0x564   :  { %7022 = vst [vmem:[#allocation20_spill] sm:$0xff] %v6486_v16 }
 0x565   :  { %v2622_v53 = vpop.permute.xlu0 %2621 }
 0x566   :  { %v6488_v39 = vmul.f32 %v4338_v43, %v2622_v53  ;;  %v2617_v22 = vpop.permute.xlu1 %2616 }
 0x567   :  { %v6490_v59 = vmul.f32 %v2617_v22, %v2455_v29  ;;  %v2505_v22 = vpop.f32.mrf.mxu1 }
 0x569   :  { %v2632_v57 = vpop.permute.xlu0 %2631 }
 0x56a   :  { %v6492_v32 = vmul.f32 %v4341_v26, %v2632_v57 }
 0x56c   :  { %v2627_v62 = vpop.permute.xlu1 %2626 }
 0x56d   :  { %v6494_v31 = vmul.f32 %v2627_v62, %v2465_v6  ;;  %v2642_v61 = vpop.permute.xlu0 %2641  ;;  %v4356_v6 = vpop.f32.mrf.mxu1 }
 0x56e   :  { %v6496_v51 = vmul.f32 %v4344_v42, %v2642_v61 }
 0x570   :  { %v2637_v25 = vpop.permute.xlu1 %2636 }
 0x571   :  { %v6498_v7 = vmul.f32 %v2637_v25, %v2475_v46  ;;  %v2652_v43 = vpop.permute.xlu0 %2651  ;;  %v2515_v46 = vpop.f32.mrf.mxu1 }
 0x572   :  { %v6500_v53 = vmul.f32 %v4347_v27, %v2652_v43 }
 0x573   :  { %7023 = vst [vmem:[#allocation46_spill] sm:$0xff] %v6498_v7 }
 0x574   :  { %v2647_v29 = vpop.permute.xlu1 %2646 }
 0x575   :  { %v6502_v16 = vmul.f32 %v2647_v29, %v2485_v47  ;;  %v2662_v26 = vpop.permute.xlu0 %2661  ;;  %v4359_v47 = vpop.f32.mrf.mxu1 }
 0x576   :  { %v6504_v57 = vmul.f32 %v4350_v15, %v2662_v26 }
 0x577   :  { %7024 = vst [vmem:[#allocation23_spill] sm:$0xff] %v6502_v16  ;;  %v2525_v63 = vpop.f32.mrf.mxu1 }
 0x578   :  { %v2657_v17 = vpop.permute.xlu1 %2656 }
 0x579   :  { %v6506_v62 = vmul.f32 %v2657_v17, %v2495_v10  ;;  %v2672_v42 = vpop.permute.xlu0 %2671 }
 0x57a   :  { %v6508_v61 = vmul.f32 %v4353_v4, %v2672_v42 }
 0x57c   :  { %v2667_v24 = vpop.permute.xlu1 %2666 }
 0x57d   :  { %v6510_v25 = vmul.f32 %v2667_v24, %v2505_v22  ;;  %v2682_v27 = vpop.permute.xlu0 %2681 }
 0x57e   :  { %v6512_v43 = vmul.f32 %v4356_v6, %v2682_v27 }
 0x57f   :  { %7025 = vst [vmem:[#allocation30_spill] sm:$0xff] %v6510_v25 }
 0x580   :  { %v2677_v50 = vpop.permute.xlu1 %2676 }
 0x581   :  { %v6514_v29 = vmul.f32 %v2677_v50, %v2515_v46  ;;  %v2692_v15 = vpop.permute.xlu0 %2691 }
 0x582   :  { %v6516_v26 = vmul.f32 %v4359_v47, %v2692_v15 }
 0x584   :  { %v2687_v17 = vpop.permute.xlu1 %2686 }
 0x585   :  { %v6518_v10 = vmul.f32 %v2687_v17, %v2525_v63 }
 0x587   :  { %7026 = vst [vmem:[#allocation21_spill] sm:$0xff] %v6518_v10 }
 0x588 LB: > { %v4793_v24 = vmov 0.0   ;;  %s3706_s13 = sshll.u32 %s4790_s6, 7  ;;  %v4794_v50 = vmov 0   ;;  %v7027_v0 = vld [vmem:[#allocation36_spill] sm:$0xff]  ;;  %v7028_v14 = vld [vmem:[#allocation5_spill] sm:$0xff]  ;;  %v7029_v20 = vld [vmem:[#allocation6_spill] sm:$0xff]  ;;  %s4790_s6 = sphi %s6520_s6, %s2795_s6  }
 0x589   : > { %3135 = vmatprep.mubr.f32.mxu0 %v4793_v24  ;;  %3231 = vmatprep.mubr.f32.mxu1 %v4793_v24  ;;  %s6531_s16 = scalar_lea.vmem %s6800_s0, %s3706_s13  ;;  %v7030_v2 = vld [vmem:[#allocation7_spill] sm:$0xff]  ;;  %v7031_v7 = vld [vmem:[#allocation46_spill] sm:$0xff]  ;;  %v7032_v1 = vld [vmem:[#allocation37_spill] sm:$0xff]  ;;  %s3707_s3 = sshll.u32 %s4790_s6, 9 }
 0x58a   : > { %4625 = vset.pattern.permute.xlu1 %v4794_v50  ;;  %4624 = vset.pattern.permute.xlu0 %v4794_v50  ;;  %v2814_v63 = vld [vmem:[%s6531_s16 + $0x78] sm:$0xff]  ;;  %v2813_v4 = vld [vmem:[%s6531_s16 + $0x70] sm:$0xff]  ;;  %v2812_v22 = vld [vmem:[%s6531_s16 + $0x68] sm:$0xff]  ;;  %s6702_s17 = scalar_lea.vmem [#allocation2], %s3707_s3  ;;  %s2795_s6 = sadd.s32 1, %s4790_s6  }
 0x58b   : > { %2827 = vperm.xlu1 %4625, %v7027_v0   ;;  %2817 = vperm.xlu0 %4624, %v6129_v34   ;;  %v2811_v6 = vld [vmem:[%s6531_s16 + $0x60] sm:$0xff]  ;;  %v2810_v42 = vld [vmem:[%s6531_s16 + $0x58] sm:$0xff]  ;;  %v2809_v46 = vld [vmem:[%s6531_s16 + $0x50] sm:$0xff]  ;;  %p2792_p1 = scmp.ge.s32.totalorder %s2795_s6, 2  }
 0x58c   : > { %3087 = vmatprep.subr.mxu0 %v2814_v63  ;;  %4376 = vmatprep.subr.mxu1 %v2814_v63  ;;  %v2808_v27 = vld [vmem:[%s6531_s16 + $0x48] sm:$0xff]  ;;  %v2807_v47 = vld [vmem:[%s6531_s16 + $0x40] sm:$0xff]  ;;  %v2806_v15 = vld [vmem:[%s6531_s16 + $0x38] sm:$0xff]  ;;  %s4795_s18 = smov (%p2792_p1), [#allocation2]  }
 0x58d   : > { %3088 = vmatpush1.msra.mxu0 %v2813_v4  ;;  %4384 = vmatpush1.msra.mxu1 %v2813_v4  ;;  %v2805_v17 = vld [vmem:[%s6531_s16 + $0x30] sm:$0xff]  ;;  %v2804_v50 = vld [vmem:[%s6531_s16 + $0x28] sm:$0xff]  ;;  %v2803_v63 = vld [vmem:[%s6531_s16 + $0x20] sm:$0xff]  ;;  %s3400_s19 = sshll.u32 (%p2792_p1), %s4795_s18, 4  ;;  %s3401_s19 = int_to_ptr.vmem [resolvable:$true] %s3400_s19 }
 0x58e   : > { %3089 = vmatprep.subr.mxu0 %v2812_v22  ;;  %4377 = vmatprep.subr.mxu1 %v2812_v22  ;;  %v2802_v4 = vld [vmem:[%s6531_s16 + $0x18] sm:$0xff]  ;;  %v2801_v22 = vld [vmem:[%s6531_s16 + $0x10] sm:$0xff]  ;;  %v7034_v18 = vld [vmem:[#allocation9_spill] sm:$0xff]  ;;  %s4626_s4 = scalar_lea.vmem (%p2792_p1), %s3401_s19, 16384  ;;  %p4631_p3 = scmp.lt.s32.totalorder (%p2792_p1), %s3401_s19, %s3401_s19 }
 0x58f   : > { %3090 = vmatpush1.msra.mxu0 %v2811_v6  ;;  %4385 = vmatpush1.msra.mxu1 %v2811_v6  ;;  %v2800_v6 = vld [vmem:[%s6531_s16 + $0x8] sm:$0xff]  ;;  %v7033_v9 = vld [vmem:[#allocation8_spill] sm:$0xff]  ;;  %v7037_v16 = vld [vmem:[#allocation23_spill] sm:$0xff]  ;;  %p4627_p2 = scmp.ne.s32.totalorder (%p2792_p1), %s3401_s19, %s4626_s4  ;;  %p4632_p4 = scmp.lt.s32.totalorder (%p2792_p1), %s4626_s4, %s4626_s4 }
 0x590   : > { %3091 = vmatprep.subr.mxu0 %v2810_v42  ;;  %4378 = vmatprep.subr.mxu1 %v2810_v42  ;;  %v2799_v42 = vld [vmem:[%s6531_s16] sm:$0xff]  ;;  %v7035_v3 = vld [vmem:[#allocation38_spill] sm:$0xff]  ;;  %v7040_v12 = vld [vmem:[#allocation39_spill] sm:$0xff] }
 0x591   : > { %3092 = vmatpush1.msra.mxu0 %v2809_v46  ;;  %4386 = vmatpush1.msra.mxu1 %v2809_v46  ;;  %v7036_v23 = vld [vmem:[#allocation18_spill] sm:$0xff]  ;;  %v7039_v19 = vld [vmem:[#allocation17_spill] sm:$0xff]  ;;  %v7041_v13 = vld [vmem:[#allocation11_spill] sm:$0xff]  ;;  %p4633_p5 = por (%p2792_p1), %p4632_p4, %p4631_p3 }
 0x592   : > { %3093 = vmatprep.subr.mxu0 %v2808_v27  ;;  %4379 = vmatprep.subr.mxu1 %v2808_v27  ;;  %v7038_v8 = vld [vmem:[#allocation10_spill] sm:$0xff]  ;;  %v7042_v5 = vld [vmem:[#allocation29_spill] sm:$0xff]  ;;  %v7044_v21 = vld [vmem:[#allocation40_spill] sm:$0xff] }
 0x593   : > { %3094 = vmatpush1.msra.mxu0 %v2807_v47  ;;  %4387 = vmatpush1.msra.mxu1 %v2807_v47  ;;  %v7043_v25 = vld [vmem:[#allocation30_spill] sm:$0xff]  ;;  %v7046_v46 = vld [vmem:[#allocation12_spill] sm:$0xff]  ;;  %v7047_v27 = vld [vmem:[#allocation13_spill] sm:$0xff]  ;;  %p4634_p6 = pnand (%p2792_p1), %p4633_p5, %p4627_p2 }
 0x594   : > { %3095 = vmatprep.subr.mxu0 %v2806_v15  ;;  %4380 = vmatprep.subr.mxu1 %v2806_v15  ;;  %v7045_v11 = vld [vmem:[#allocation22_spill] sm:$0xff]  ;;  %v7048_v47 = vld [vmem:[#allocation45_spill] sm:$0xff] }
 0x595   : > { %3096 = vmatpush1.msra.mxu0 %v2805_v17  ;;  %4388 = vmatpush1.msra.mxu1 %v2805_v17  ;;  %v7049_v15 = vld [vmem:[#allocation41_spill] sm:$0xff]  ;;  %v7050_v17 = vld [vmem:[#allocation14_spill] sm:$0xff] }
 0x596   : > { %3097 = vmatprep.subr.mxu0 %v2804_v50  ;;  %4381 = vmatprep.subr.mxu1 %v2804_v50  ;;  %v7051_v50 = vld [vmem:[#allocation44_spill] sm:$0xff]  ;;  %v7055_v10 = vld [vmem:[#allocation21_spill] sm:$0xff] }
 0x597   : > { %3098 = vmatpush1.msra.mxu0 %v2803_v63  ;;  %4389 = vmatpush1.msra.mxu1 %v2803_v63  ;;  %v7052_v63 = vld [vmem:[#allocation42_spill] sm:$0xff] }
 0x598   : > { %3099 = vmatprep.subr.mxu0 %v2802_v4  ;;  %4382 = vmatprep.subr.mxu1 %v2802_v4  ;;  %v7053_v4 = vld [vmem:[#allocation15_spill] sm:$0xff] }
 0x599   : > { %3100 = vmatpush1.msra.mxu0 %v2801_v22  ;;  %4390 = vmatpush1.msra.mxu1 %v2801_v22  ;;  %v7054_v22 = vld [vmem:[#allocation20_spill] sm:$0xff] }
 0x59a   : > { %3101 = vmatprep.subr.mxu0 %v2800_v6  ;;  %4383 = vmatprep.subr.mxu1 %v2800_v6  ;;  %v7056_v6 = vld [vmem:[#allocation43_spill] sm:$0xff] }
 0x59b   : > { %3102 = vmatpush1.msra.mxu0 %v2799_v42  ;;  %4391 = vmatpush1.msra.mxu1 %v2799_v42  ;;  %v7057_v42 = vld [vmem:[#allocation16_spill] sm:$0xff] }
 0x59c   : > { %3671 = vmatmul.mubr.msk.f32.vlgmr.msra.gmra.mxu0 %vm333_vm0, %v6458_v58  ;;  %3687 = vmatmul.mubr.msk.f32.vlgmr.msra.gmra.mxu1 %vm333_vm0, %v6490_v59 }
 0x59d   : > { %3141 = vmatprep.mubr.f32.mxu0 %v4793_v24  ;;  %3237 = vmatprep.mubr.f32.mxu1 %v4793_v24 }
 0x59e   : > { %2832 = vperm.xlu1 %4625, %v7028_v14   ;;  %2822 = vperm.xlu0 %4624, %v6118_v60  }
 0x5a0   : > { %3672 = vmatmul.mubr.msk.f32.gmra.mxu0 %vm333_vm0, %v6456_v33  ;;  %3688 = vmatmul.mubr.msk.f32.gmra.mxu1 %vm333_vm0, %v6488_v39 }
 0x5a1   : > { %3147 = vmatprep.mubr.f32.mxu0 %v4793_v24  ;;  %3243 = vmatprep.mubr.f32.mxu1 %v4793_v24 }
 0x5a2   : > { %2842 = vperm.xlu1 %4625, %v7029_v20   ;;  %2837 = vperm.xlu0 %4624, %v6179_v36  }
 0x5a4   : > { %3673 = vmatmul.mubr.msk.f32.gmra.mxu0 %vm333_vm0, %v6462_v55  ;;  %3689 = vmatmul.mubr.msk.f32.gmra.mxu1 %vm333_vm0, %v6494_v31 }
 0x5a5   : > { %3153 = vmatprep.mubr.f32.mxu0 %v4793_v24  ;;  %3249 = vmatprep.mubr.f32.mxu1 %v4793_v24 }
 0x5a6   : > { %2852 = vperm.xlu1 %4625, %v6188_v56   ;;  %2847 = vperm.xlu0 %4624, %v6198_v37  }
 0x5a8   : > { %3674 = vmatmul.mubr.msk.f32.gmra.mxu0 %vm333_vm0, %v6460_v35  ;;  %3690 = vmatmul.mubr.msk.f32.gmra.mxu1 %vm333_vm0, %v6492_v32 }
 0x5a9   : > { %3159 = vmatprep.mubr.f32.mxu0 %v4793_v24  ;;  %3255 = vmatprep.mubr.f32.mxu1 %v4793_v24 }
 0x5aa   : > { %2862 = vperm.xlu1 %4625, %v6219_v45   ;;  %2857 = vperm.xlu0 %4624, %v7030_v2  }
 0x5ac   : > { %3675 = vmatmul.mubr.msk.f32.gmra.mxu0 %vm333_vm0, %v6466_v28  ;;  %3691 = vmatmul.mubr.msk.f32.gmra.mxu1 %vm333_vm0, %v7031_v7 }
 0x5ad   : > { %3165 = vmatprep.mubr.f32.mxu0 %v4793_v24  ;;  %3261 = vmatprep.mubr.f32.mxu1 %v4793_v24 }
 0x5ae   : > { %2872 = vperm.xlu1 %4625, %v7032_v1   ;;  %2867 = vperm.xlu0 %4624, %v7033_v9  }
 0x5b0   : > { %3676 = vmatmul.mubr.msk.f32.gmra.mxu0 %vm333_vm0, %v6464_v40  ;;  %3692 = vmatmul.mubr.msk.f32.gmra.mxu1 %vm333_vm0, %v6496_v51 }
 0x5b1   : > { %3171 = vmatprep.mubr.f32.mxu0 %v4793_v24  ;;  %3267 = vmatprep.mubr.f32.mxu1 %v4793_v24 }
 0x5b2   : > { %2882 = vperm.xlu1 %4625, %v7034_v18   ;;  %2877 = vperm.xlu0 %4624, %v7035_v3  }
 0x5b4   : > { %3677 = vmatmul.mubr.msk.f32.gmra.mxu0 %vm333_vm0, %v7036_v23  ;;  %3693 = vmatmul.mubr.msk.f32.gmra.mxu1 %vm333_vm0, %v7037_v16 }
 0x5b5   : > { %3177 = vmatprep.mubr.f32.mxu0 %v4793_v24  ;;  %3273 = vmatprep.mubr.f32.mxu1 %v4793_v24 }
 0x5b6   : > { %2892 = vperm.xlu1 %4625, %v6287_v49   ;;  %2887 = vperm.xlu0 %4624, %v7038_v8  }
 0x5b8   : > { %3678 = vmatmul.mubr.msk.f32.gmra.mxu0 %vm333_vm0, %v7039_v19  ;;  %3694 = vmatmul.mubr.msk.f32.gmra.mxu1 %vm333_vm0, %v6500_v53 }
 0x5b9   : > { %3183 = vmatprep.mubr.f32.mxu0 %v4793_v24  ;;  %3279 = vmatprep.mubr.f32.mxu1 %v4793_v24 }
 0x5ba   : > { %2902 = vperm.xlu1 %4625, %v6317_v38   ;;  %2897 = vperm.xlu0 %4624, %v6322_v44  }
 0x5bc   : > { %3679 = vmatmul.mubr.msk.f32.gmra.mxu0 %vm333_vm0, %v6474_v30  ;;  %3695 = vmatmul.mubr.msk.f32.gmra.mxu1 %vm333_vm0, %v6506_v62 }
 0x5bd   : > { %3189 = vmatprep.mubr.f32.mxu0 %v4793_v24  ;;  %3285 = vmatprep.mubr.f32.mxu1 %v4793_v24 }
 0x5be   : > { %2912 = vperm.xlu1 %4625, %v6340_v54   ;;  %2907 = vperm.xlu0 %4624, %v7040_v12  }
 0x5c0   : > { %3680 = vmatmul.mubr.msk.f32.gmra.mxu0 %vm333_vm0, %v6472_v41  ;;  %3696 = vmatmul.mubr.msk.f32.gmra.mxu1 %vm333_vm0, %v6504_v57 }
 0x5c1   : > { %3195 = vmatprep.mubr.f32.mxu0 %v4793_v24  ;;  %3291 = vmatprep.mubr.f32.mxu1 %v4793_v24 }
 0x5c2   : > { %2922 = vperm.xlu1 %4625, %v6368_v48   ;;  %2917 = vperm.xlu0 %4624, %v7041_v13  }
 0x5c4   : > { %3681 = vmatmul.mubr.msk.f32.gmra.mxu0 %vm333_vm0, %v7042_v5  ;;  %3697 = vmatmul.mubr.msk.f32.gmra.mxu1 %vm333_vm0, %v7043_v25 }
 0x5c5   : > { %3201 = vmatprep.mubr.f32.mxu0 %v4793_v24  ;;  %3297 = vmatprep.mubr.f32.mxu1 %v4793_v24 }
 0x5c6   : > { %2932 = vperm.xlu1 %4625, %v6392_v52   ;;  %2927 = vperm.xlu0 %4624, %v7044_v21  }
 0x5c8   : > { %3682 = vmatmul.mubr.msk.f32.gmra.mxu0 %vm333_vm0, %v7045_v11  ;;  %3698 = vmatmul.mubr.msk.f32.gmra.mxu1 %vm333_vm0, %v6508_v61 }
 0x5c9   : > { %3207 = vmatprep.mubr.f32.mxu0 %v4793_v24  ;;  %3303 = vmatprep.mubr.f32.mxu1 %v4793_v24 }
 0x5ca   : > { %2942 = vperm.xlu1 %4625, %v7046_v46   ;;  %2937 = vperm.xlu0 %4624, %v7047_v27   ;;  %v7058_v46 = vld [vmem:[#allocation19_spill] sm:$0xff] }
 0x5cc   : > { %3683 = vmatmul.mubr.msk.f32.gmra.mxu0 %vm333_vm0, %v7048_v47  ;;  %3699 = vmatmul.mubr.msk.f32.gmra.mxu1 %vm333_vm0, %v6514_v29 }
 0x5cd   : > { %3213 = vmatprep.mubr.f32.mxu0 %v4793_v24  ;;  %3309 = vmatprep.mubr.f32.mxu1 %v4793_v24 }
 0x5ce   : > { %2952 = vperm.xlu1 %4625, %v7049_v15   ;;  %2947 = vperm.xlu0 %4624, %v7050_v17  }
 0x5d0   : > { %3684 = vmatmul.mubr.msk.f32.gmra.mxu0 %vm333_vm0, %v7051_v50  ;;  %3700 = vmatmul.mubr.msk.f32.gmra.mxu1 %vm333_vm0, %v6512_v43 }
 0x5d1   : > { %3219 = vmatprep.mubr.f32.mxu0 %v4793_v24  ;;  %3315 = vmatprep.mubr.f32.mxu1 %v4793_v24 }
 0x5d2   : > { %2962 = vperm.xlu1 %4625, %v7052_v63   ;;  %2957 = vperm.xlu0 %4624, %v7053_v4  }
 0x5d4   : > { %3685 = vmatmul.mubr.msk.f32.gmra.mxu0 %vm333_vm0, %v7054_v22  ;;  %3701 = vmatmul.mubr.msk.f32.gmra.mxu1 %vm333_vm0, %v7055_v10 }
 0x5d5   : > { %3225 = vmatprep.mubr.f32.mxu0 %v4793_v24  ;;  %3321 = vmatprep.mubr.f32.mxu1 %v4793_v24 }
 0x5d6   : > { %2972 = vperm.xlu1 %4625, %v7056_v6   ;;  %2967 = vperm.xlu0 %4624, %v7057_v42  }
 0x5d8   : > { %3686 = vmatmul.mubr.msk.f32.gmra.mxu0 %vm333_vm0, %v7058_v46  ;;  %3702 = vmatmul.mubr.msk.f32.gmra.mxu1 %vm333_vm0, %v6516_v26 }
 0x606   : > { %v2818_v27 = vpop.permute.xlu0 %2817  ;;  %v2828_v47 = vpop.permute.xlu1 %2827 }
 0x619   : > { %v2823_v15 = vpop.permute.xlu0 %2822  ;;  %v6675_v17 = vpop.permute.xlu1 %2832 }
 0x61d   : > { %v6677_v50 = vpop.permute.xlu0 %2837  ;;  %v6679_v63 = vpop.permute.xlu1 %2842 }
 0x621   : > { %v6681_v24 = vpop.permute.xlu0 %2847  ;;  %v6683_v4 = vpop.permute.xlu1 %2852 }
 0x625   : > { %v6685_v22 = vpop.permute.xlu0 %2857  ;;  %v6687_v6 = vpop.permute.xlu1 %2862 }
 0x629   : > { %v6689_v42 = vpop.permute.xlu0 %2867  ;;  %v6691_v46 = vpop.permute.xlu1 %2872 }
 0x62d   : > { %v6693_v0 = vpop.permute.xlu0 %2877  ;;  %v6695_v1 = vpop.permute.xlu1 %2882 }
 0x631   : > { %v6697_v2 = vpop.permute.xlu0 %2887  ;;  %v6699_v3 = vpop.permute.xlu1 %2892 }
 0x635   : > { %v2898_v5 = vpop.permute.xlu0 %2897  ;;  %v2903_v13 = vpop.permute.xlu1 %2902 }
 0x639   : > { %v2908_v23 = vpop.permute.xlu0 %2907 }
 0x65c   : > { %v3137_v7 = vpop.f32.mrf.mxu0  ;;  %v3233_v8 = vpop.f32.mrf.mxu1 }
 0x65d   : > { %v3138_v9 = vadd.f32 %v3137_v7, %v2818_v27  ;;  %v3234_v10 = vadd.f32 %v3233_v8, %v2898_v5 }
 0x65e   : > { %v3139_v11 = vpop.f32.mrf.mxu0  ;;  %v3235_v12 = vpop.f32.mrf.mxu1 }
 0x65f   : > { %3331 = vst [vmem:[%s6702_s17] sm:$0xff] %v3138_v9  ;;  %3363 = vst [vmem:[%s6702_s17 + $0x100] sm:$0xff] %v3234_v10  ;;  %v3140_v14 = vadd.f32 %v3139_v11, %v2818_v27  ;;  %v3236_v16 = vadd.f32 %v3235_v12, %v2898_v5  ;;  %v2913_v10 = vpop.permute.xlu1 %2912 }
 0x660   : > { %v3143_v18 = vpop.f32.mrf.mxu0  ;;  %v3239_v7 = vpop.f32.mrf.mxu1 }
 0x661   : > { %3332 = vst [vmem:[%s6702_s17 + $0x8] sm:$0xff] %v3140_v14  ;;  %3364 = vst [vmem:[%s6702_s17 + $0x108] sm:$0xff] %v3236_v16  ;;  %v3144_v8 = vadd.f32 %v3143_v18, %v2823_v15  ;;  %v3240_v19 = vadd.f32 %v3239_v7, %v2903_v13 }
 0x662   : > { %v3145_v20 = vpop.f32.mrf.mxu0  ;;  %v3241_v21 = vpop.f32.mrf.mxu1 }
 0x663   : > { %3333 = vst [vmem:[%s6702_s17 + $0x10] sm:$0xff] %v3144_v8  ;;  %3365 = vst [vmem:[%s6702_s17 + $0x110] sm:$0xff] %v3240_v19  ;;  %v3146_v25 = vadd.f32 %v3145_v20, %v2823_v15  ;;  %v3242_v9 = vadd.f32 %v3241_v21, %v2903_v13  ;;  %v2918_v8 = vpop.permute.xlu0 %2917 }
 0x664   : > { %v3149_v11 = vpop.f32.mrf.mxu0  ;;  %v3245_v12 = vpop.f32.mrf.mxu1 }
 0x665   : > { %3334 = vst [vmem:[%s6702_s17 + $0x18] sm:$0xff] %v3146_v25  ;;  %3366 = vst [vmem:[%s6702_s17 + $0x118] sm:$0xff] %v3242_v9  ;;  %v3150_v5 = vadd.f32 %v3149_v11, %v2828_v47  ;;  %v3246_v14 = vadd.f32 %v3245_v12, %v2908_v23 }
 0x666   : > { %v3151_v16 = vpop.f32.mrf.mxu0  ;;  %v3247_v18 = vpop.f32.mrf.mxu1 }
 0x667   : > { %3335 = vst [vmem:[%s6702_s17 + $0x20] sm:$0xff] %v3150_v5  ;;  %3367 = vst [vmem:[%s6702_s17 + $0x120] sm:$0xff] %v3246_v14  ;;  %v3152_v27 = vadd.f32 %v3151_v16, %v2828_v47  ;;  %v3248_v7 = vadd.f32 %v3247_v18, %v2908_v23  ;;  %v2923_v18 = vpop.permute.xlu1 %2922 }
 0x668   : > { %v3155_v20 = vpop.f32.mrf.mxu0  ;;  %v3251_v13 = vpop.f32.mrf.mxu1 }
 0x669   : > { %3336 = vst [vmem:[%s6702_s17 + $0x28] sm:$0xff] %v3152_v27  ;;  %3368 = vst [vmem:[%s6702_s17 + $0x128] sm:$0xff] %v3248_v7  ;;  %v3156_v21 = vadd.f32 %v3155_v20, %v6675_v17  ;;  %v3252_v19 = vadd.f32 %v3251_v13, %v2913_v10 }
 0x66a   : > { %v3157_v25 = vpop.f32.mrf.mxu0  ;;  %v3253_v15 = vpop.f32.mrf.mxu1 }
 0x66b   : > { %3337 = vst [vmem:[%s6702_s17 + $0x30] sm:$0xff] %v3156_v21  ;;  %3369 = vst [vmem:[%s6702_s17 + $0x130] sm:$0xff] %v3252_v19  ;;  %v3158_v9 = vadd.f32 %v3157_v25, %v6675_v17  ;;  %v3254_v47 = vadd.f32 %v3253_v15, %v2913_v10  ;;  %v2928_v25 = vpop.permute.xlu0 %2927 }
 0x66c   : > { %v3161_v23 = vpop.f32.mrf.mxu0  ;;  %v3257_v11 = vpop.f32.mrf.mxu1 }
 0x66d   : > { %3338 = vst [vmem:[%s6702_s17 + $0x38] sm:$0xff] %v3158_v9  ;;  %3370 = vst [vmem:[%s6702_s17 + $0x138] sm:$0xff] %v3254_v47  ;;  %v3162_v12 = vadd.f32 %v3161_v23, %v6677_v50  ;;  %v3258_v5 = vadd.f32 %v3257_v11, %v2918_v8 }
 0x66e   : > { %v3163_v14 = vpop.f32.mrf.mxu0  ;;  %v3259_v16 = vpop.f32.mrf.mxu1 }
 0x66f   : > { %3339 = vst [vmem:[%s6702_s17 + $0x40] sm:$0xff] %v3162_v12  ;;  %3371 = vst [vmem:[%s6702_s17 + $0x140] sm:$0xff] %v3258_v5  ;;  %v3164_v27 = vadd.f32 %v3163_v14, %v6677_v50  ;;  %v3260_v17 = vadd.f32 %v3259_v16, %v2918_v8  ;;  %v2933_v5 = vpop.permute.xlu1 %2932 }
 0x670   : > { %v3167_v10 = vpop.f32.mrf.mxu0  ;;  %v3263_v7 = vpop.f32.mrf.mxu1 }
 0x671   : > { %3340 = vst [vmem:[%s6702_s17 + $0x48] sm:$0xff] %v3164_v27  ;;  %3372 = vst [vmem:[%s6702_s17 + $0x148] sm:$0xff] %v3260_v17  ;;  %v3168_v20 = vadd.f32 %v3167_v10, %v6679_v63  ;;  %v3264_v13 = vadd.f32 %v3263_v7, %v2923_v18 }
 0x672   : > { %v3169_v21 = vpop.f32.mrf.mxu0  ;;  %v3265_v19 = vpop.f32.mrf.mxu1 }
 0x673   : > { %3341 = vst [vmem:[%s6702_s17 + $0x50] sm:$0xff] %v3168_v20  ;;  %3373 = vst [vmem:[%s6702_s17 + $0x150] sm:$0xff] %v3264_v13  ;;  %v3170_v15 = vadd.f32 %v3169_v21, %v6679_v63  ;;  %v3266_v50 = vadd.f32 %v3265_v19, %v2923_v18  ;;  %v2938_v20 = vpop.permute.xlu0 %2937 }
 0x674   : > { %v3173_v8 = vpop.f32.mrf.mxu0  ;;  %v3269_v9 = vpop.f32.mrf.mxu1 }
 0x675   : > { %3342 = vst [vmem:[%s6702_s17 + $0x58] sm:$0xff] %v3170_v15  ;;  %3374 = vst [vmem:[%s6702_s17 + $0x158] sm:$0xff] %v3266_v50  ;;  %v3174_v47 = vadd.f32 %v3173_v8, %v6681_v24  ;;  %v3270_v23 = vadd.f32 %v3269_v9, %v2928_v25  ;;  %v2943_v9 = vpop.permute.xlu1 %2942 }
 0x676   : > { %v3175_v11 = vpop.f32.mrf.mxu0  ;;  %v3271_v12 = vpop.f32.mrf.mxu1 }
 0x677   : > { %3343 = vst [vmem:[%s6702_s17 + $0x60] sm:$0xff] %v3174_v47  ;;  %3375 = vst [vmem:[%s6702_s17 + $0x160] sm:$0xff] %v3270_v23  ;;  %v3176_v14 = vadd.f32 %v3175_v11, %v6681_v24  ;;  %v3272_v63 = vadd.f32 %v3271_v12, %v2928_v25 }
 0x678   : > { %v3179_v16 = vpop.f32.mrf.mxu0  ;;  %v3275_v18 = vpop.f32.mrf.mxu1 }
 0x679   : > { %3344 = vst [vmem:[%s6702_s17 + $0x68] sm:$0xff] %v3176_v14  ;;  %3376 = vst [vmem:[%s6702_s17 + $0x168] sm:$0xff] %v3272_v63  ;;  %v3180_v27 = vadd.f32 %v3179_v16, %v6683_v4  ;;  %v3276_v17 = vadd.f32 %v3275_v18, %v2933_v5  ;;  %v2948_v16 = vpop.permute.xlu0 %2947 }
 0x67a   : > { %v3181_v10 = vpop.f32.mrf.mxu0  ;;  %v3277_v7 = vpop.f32.mrf.mxu1 }
 0x67b   : > { %3345 = vst [vmem:[%s6702_s17 + $0x70] sm:$0xff] %v3180_v27  ;;  %3377 = vst [vmem:[%s6702_s17 + $0x170] sm:$0xff] %v3276_v17  ;;  %v3182_v13 = vadd.f32 %v3181_v10, %v6683_v4  ;;  %v3278_v24 = vadd.f32 %v3277_v7, %v2933_v5 }
 0x67c   : > { %v3185_v21 = vpop.f32.mrf.mxu0  ;;  %v3281_v19 = vpop.f32.mrf.mxu1 }
 0x67d   : > { %3346 = vst [vmem:[%s6702_s17 + $0x78] sm:$0xff] %v3182_v13  ;;  %3378 = vst [vmem:[%s6702_s17 + $0x178] sm:$0xff] %v3278_v24  ;;  %v3186_v25 = vadd.f32 %v3185_v21, %v6685_v22  ;;  %v3282_v15 = vadd.f32 %v3281_v19, %v2938_v20  ;;  %v2953_v24 = vpop.permute.xlu1 %2952 }
 0x67e   : > { %v3187_v50 = vpop.f32.mrf.mxu0  ;;  %v3283_v8 = vpop.f32.mrf.mxu1 }
 0x67f   : > { %3347 = vst [vmem:[%s6702_s17 + $0x80] sm:$0xff] %v3186_v25  ;;  %3379 = vst [vmem:[%s6702_s17 + $0x180] sm:$0xff] %v3282_v15  ;;  %v3188_v47 = vadd.f32 %v3187_v50, %v6685_v22  ;;  %v3284_v4 = vadd.f32 %v3283_v8, %v2938_v20 }
 0x680   : > { %v3191_v23 = vpop.f32.mrf.mxu0  ;;  %v3287_v11 = vpop.f32.mrf.mxu1 }
 0x681   : > { %3348 = vst [vmem:[%s6702_s17 + $0x88] sm:$0xff] %v3188_v47  ;;  %3380 = vst [vmem:[%s6702_s17 + $0x188] sm:$0xff] %v3284_v4  ;;  %v3192_v12 = vadd.f32 %v3191_v23, %v6687_v6  ;;  %v3288_v5 = vadd.f32 %v3287_v11, %v2943_v9  ;;  %v2958_v47 = vpop.permute.xlu0 %2957 }
 0x682   : > { %v3193_v14 = vpop.f32.mrf.mxu0  ;;  %v3289_v63 = vpop.f32.mrf.mxu1 }
 0x683   : > { %3349 = vst [vmem:[%s6702_s17 + $0x90] sm:$0xff] %v3192_v12  ;;  %3381 = vst [vmem:[%s6702_s17 + $0x190] sm:$0xff] %v3288_v5  ;;  %v3194_v18 = vadd.f32 %v3193_v14, %v6687_v6  ;;  %v3290_v22 = vadd.f32 %v3289_v63, %v2943_v9 }
 0x684   : > { %v3197_v27 = vpop.f32.mrf.mxu0  ;;  %v3293_v17 = vpop.f32.mrf.mxu1 }
 0x685   : > { %3350 = vst [vmem:[%s6702_s17 + $0x98] sm:$0xff] %v3194_v18  ;;  %3382 = vst [vmem:[%s6702_s17 + $0x198] sm:$0xff] %v3290_v22  ;;  %v3198_v10 = vadd.f32 %v3197_v27, %v6689_v42  ;;  %v3294_v7 = vadd.f32 %v3293_v17, %v2948_v16 }
 0x686   : > { %v3199_v20 = vpop.f32.mrf.mxu0  ;;  %v3295_v13 = vpop.f32.mrf.mxu1 }
 0x687   : > { %3351 = vst [vmem:[%s6702_s17 + $0xa0] sm:$0xff] %v3198_v10  ;;  %3383 = vst [vmem:[%s6702_s17 + $0x1a0] sm:$0xff] %v3294_v7  ;;  %v3200_v21 = vadd.f32 %v3199_v20, %v6689_v42  ;;  %v3296_v6 = vadd.f32 %v3295_v13, %v2948_v16  ;;  %v2963_v16 = vpop.permute.xlu1 %2962  ;;  %v2968_v13 = vpop.permute.xlu0 %2967 }
 0x688   : > { %v3203_v19 = vpop.f32.mrf.mxu0  ;;  %v3299_v25 = vpop.f32.mrf.mxu1 }
 0x689   : > { %3352 = vst [vmem:[%s6702_s17 + $0xa8] sm:$0xff] %v3200_v21  ;;  %3384 = vst [vmem:[%s6702_s17 + $0x1a8] sm:$0xff] %v3296_v6  ;;  %v3204_v15 = vadd.f32 %v3203_v19, %v6691_v46  ;;  %v3300_v50 = vadd.f32 %v3299_v25, %v2953_v24 }
 0x68a   : > { %v3205_v8 = vpop.f32.mrf.mxu0  ;;  %v3301_v9 = vpop.f32.mrf.mxu1 }
 0x68b   : > { %3353 = vst [vmem:[%s6702_s17 + $0xb0] sm:$0xff] %v3204_v15  ;;  %3385 = vst [vmem:[%s6702_s17 + $0x1b0] sm:$0xff] %v3300_v50  ;;  %v3206_v4 = vadd.f32 %v3205_v8, %v6691_v46  ;;  %v3302_v42 = vadd.f32 %v3301_v9, %v2953_v24  ;;  %v2973_v8 = vpop.permute.xlu1 %2972 }
 0x68c   : > { %v3209_v23 = vpop.f32.mrf.mxu0  ;;  %v3305_v11 = vpop.f32.mrf.mxu1 }
 0x68d   : > { %3354 = vst [vmem:[%s6702_s17 + $0xb8] sm:$0xff] %v3206_v4  ;;  %3386 = vst [vmem:[%s6702_s17 + $0x1b8] sm:$0xff] %v3302_v42  ;;  %v3210_v12 = vadd.f32 %v3209_v23, %v6693_v0  ;;  %v3306_v5 = vadd.f32 %v3305_v11, %v2958_v47 }
 0x68e   : > { %v3211_v14 = vpop.f32.mrf.mxu0  ;;  %v3307_v63 = vpop.f32.mrf.mxu1 }
 0x68f   : > { %3355 = vst [vmem:[%s6702_s17 + $0xc0] sm:$0xff] %v3210_v12  ;;  %3387 = vst [vmem:[%s6702_s17 + $0x1c0] sm:$0xff] %v3306_v5  ;;  %v3212_v18 = vadd.f32 %v3211_v14, %v6693_v0  ;;  %v3308_v46 = vadd.f32 %v3307_v63, %v2958_v47 }
 0x690   : > { %v3215_v22 = vpop.f32.mrf.mxu0  ;;  %v3311_v27 = vpop.f32.mrf.mxu1 }
 0x691   : > { %3356 = vst [vmem:[%s6702_s17 + $0xc8] sm:$0xff] %v3212_v18  ;;  %3388 = vst [vmem:[%s6702_s17 + $0x1c8] sm:$0xff] %v3308_v46  ;;  %v3216_v17 = vadd.f32 %v3215_v22, %v6695_v1  ;;  %v3312_v10 = vadd.f32 %v3311_v27, %v2963_v16 }
 0x692   : > { %v3217_v7 = vpop.f32.mrf.mxu0  ;;  %v3313_v20 = vpop.f32.mrf.mxu1 }
 0x693   : > { %3357 = vst [vmem:[%s6702_s17 + $0xd0] sm:$0xff] %v3216_v17  ;;  %3389 = vst [vmem:[%s6702_s17 + $0x1d0] sm:$0xff] %v3312_v10  ;;  %v3218_v24 = vadd.f32 %v3217_v7, %v6695_v1  ;;  %v3314_v0 = vadd.f32 %v3313_v20, %v2963_v16 }
 0x694   : > { %v3221_v21 = vpop.f32.mrf.mxu0  ;;  %v3317_v6 = vpop.f32.mrf.mxu1 }
 0x695   : > { %3358 = vst [vmem:[%s6702_s17 + $0xd8] sm:$0xff] %v3218_v24  ;;  %3390 = vst [vmem:[%s6702_s17 + $0x1d8] sm:$0xff] %v3314_v0  ;;  %v3222_v19 = vadd.f32 %v3221_v21, %v6697_v2  ;;  %v3318_v25 = vadd.f32 %v3317_v6, %v2968_v13 }
 0x696   : > { %v3223_v15 = vpop.f32.mrf.mxu0  ;;  %v3319_v50 = vpop.f32.mrf.mxu1 }
 0x697   : > { %3359 = vst [vmem:[%s6702_s17 + $0xe0] sm:$0xff] %v3222_v19  ;;  %3391 = vst [vmem:[%s6702_s17 + $0x1e0] sm:$0xff] %v3318_v25  ;;  %v3224_v1 = vadd.f32 %v3223_v15, %v6697_v2  ;;  %v3320_v9 = vadd.f32 %v3319_v50, %v2968_v13 }
 0x698   : > { %v3227_v47 = vpop.f32.mrf.mxu0  ;;  %v3323_v4 = vpop.f32.mrf.mxu1 }
 0x699   : > { %3360 = vst [vmem:[%s6702_s17 + $0xe8] sm:$0xff] %v3224_v1  ;;  %3392 = vst [vmem:[%s6702_s17 + $0x1e8] sm:$0xff] %v3320_v9  ;;  %v3228_v42 = vadd.f32 %v3227_v47, %v6699_v3  ;;  %v3324_v23 = vadd.f32 %v3323_v4, %v2973_v8  ;;  %2794 = sbr.rel (!%p2792_p1) target bundleno = 1416 (0x588), region = 76 }
 0x69a   : > { %v3229_v11 = vpop.f32.mrf.mxu0  ;;  %v3325_v12 = vpop.f32.mrf.mxu1 }
 0x69b   : > { %3361 = vst [vmem:[%s6702_s17 + $0xf0] sm:$0xff] %v3228_v42  ;;  %3393 = vst [vmem:[%s6702_s17 + $0x1f0] sm:$0xff] %v3324_v23  ;;  %v3230_v5 = vadd.f32 %v3229_v11, %v6699_v3  ;;  %v3326_v14 = vadd.f32 %v3325_v12, %v2973_v8 }
 0x69d   : > { %3362 = vst [vmem:[%s6702_s17 + $0xf8] sm:$0xff] %v3230_v5  ;;  %3394 = vst [vmem:[%s6702_s17 + $0x1f8] sm:$0xff] %v3326_v14 }
 0x69e   :  { %4637 = shalt.err (!%p4634_p6)
}
 0x69f   :  { %s4796_s20 = smov 256   ;;  %s4797_s21 = smov 16  }
 0x6a0   :  { %3406 = dma.vmem_to_hbm [thread:$0]  %s3401_s19, 16384, %s6807_s7, [#allocation3], %s4796_s20, %s4796_s20, %s4797_s21  }
 0x6a1   :  { %4718 = dma.done.wait [#allocation3], 16384  }
 0x6a2   :  { %4719 = vsyncadd [#allocation3], 4294950912 }
 0x6a3   :  { %3410 = vsyncpa [#allocation3], 1 }

</bundles_post_ra>
